<compile_context>
chip_gen: v5e
topology: v5e:2x2
jax: 0.10.0
libtpu: 0.0.40
codegen_flags: <defaults>
</compile_context>

<pallas_src>
import numpy as np
import jax
import jax.numpy as jnp
from jax import lax
from jax.experimental import pallas as pl
from jax.experimental.pallas import tpu as pltpu

# ---- scaled-down dims (original: Cin=3, Cfeat=512, H=500, out=100, 224x224) ----
CIN  = 4      # input channels
S_IN = 16     # input spatial size (3x3 conv, pad=1 keeps it)
C1   = 32     # conv1 out channels
C2   = 64     # conv2 out channels (stand-in for VGG's 512)
POOL = 7      # adaptive avg-pool output spatial -> 49 RNN steps (as in module)
T    = POOL * POOL
HID  = 32     # RNN hidden size (stand-in for 500)
OUT  = 16     # output features (stand-in for 100)

HW   = S_IN * S_IN          # flattened spatial size (256)
FPAD = HW + 2 * S_IN        # rows of the lane-grouped padded conv scratch (288)
PADT = S_IN + 1             # zero rows at the top of the scratch (17)
PADB = FPAD - (HW + S_IN - 1)  # zero rows at the bottom of the scratch (17)


# ------------------------------ fused kernel ------------------------------
def captioner_kernel(x_ref, w1_ref, w2_ref, pool_ref, vec_ref, mat_ref,
                     o_ref,
                     f1_sc, f2_sc, xproj_sc, hseq_sc):
    f32 = jnp.float32

    # Horizontal-padding masks, built ONCE and reused by both convs.
    # (mask is keyed on the *input* element's column; see fill_padded.)
    col = lax.broadcasted_iota(jnp.int32, (HW, 1), 0) % S_IN
    mask_l = (col != 0).astype(f32)           # drop input column 0       (kw=2 group)
    mask_r = (col != S_IN - 1).astype(f32)    # drop input column S_IN-1  (kw=0 group)

    def fill_padded(fref, x, cin):
        """Fill the lane-grouped padded scratch (FPAD, 3*cin).

        Lane group kw holds the flattened input shifted by (1 - kw) rows, with
        the left/right padding mask baked into the copy, so that the slab
        fref[kh*S_IN : kh*S_IN + HW, :] is exactly the im2col block for the
        three (kh, kw=0..2) taps concatenated along the contraction dim.
        """
        # zero only the row-padding regions; the interior is overwritten below
        fref[pl.ds(0, PADT), :] = jnp.zeros((PADT, 3 * cin), f32)
        fref[pl.ds(FPAD - PADB, PADB), :] = jnp.zeros((PADB, 3 * cin), f32)
        fref[pl.ds(S_IN + 1, HW), 0:cin]           = x * mask_r   # kw = 0
        fref[pl.ds(S_IN,     HW), cin:2 * cin]     = x            # kw = 1
        fref[pl.ds(S_IN - 1, HW), 2 * cin:3 * cin] = x * mask_l   # kw = 2

    def conv3x3_relu(fref, w_ref, bias, cout):
        """3x3 conv (pad=1) + bias + ReLU as 3 (HW, 3*Cin) @ (3*Cin, Cout) matmuls.

        Slab read offsets kh*S_IN (0, 16, 32) are 8-aligned sublane offsets.
        """
        acc = jnp.zeros((HW, cout), f32)
        for kh in range(3):
            acc = acc + jnp.dot(fref[pl.ds(kh * S_IN, HW), :], w_ref[kh],
                                preferred_element_type=f32)
        return jnp.maximum(acc + bias, 0.0)

    # ---- unpack the packed small operands (one DMA each for vec/mat packs) ----
    b1    = vec_ref[0:1, 0:C1]
    b2    = vec_ref[1:2, 0:C2]
    b_rnn = vec_ref[2:3, 0:HID]              # b_ih + b_hh
    h0    = vec_ref[3:4, 0:HID]
    bout  = vec_ref[4:5, 0:OUT]
    wih   = mat_ref[0:C2, 0:HID]             # (C2, HID)
    whh   = mat_ref[C2:C2 + HID, 0:HID]      # (HID, HID) -- loaded once, reused 49x
    wout  = mat_ref[C2 + HID:C2 + 2 * HID, 0:OUT]   # (HID, OUT)

    # ---- conv1 / conv2 (synthetic feature extractor) ----
    fill_padded(f1_sc, x_ref[...], CIN)
    y1 = conv3x3_relu(f1_sc, w1_ref, b1, C1)          # (HW, C1)
    fill_padded(f2_sc, y1, C1)
    y2 = conv3x3_relu(f2_sc, w2_ref, b2, C2)          # (HW, C2)

    # ---- adaptive avg-pool (as matmul) + hoisted RNNCell input projection ----
    pooled = jnp.dot(pool_ref[...], y2, preferred_element_type=f32)        # (T, C2)
    xproj_sc[...] = jnp.dot(pooled, wih, preferred_element_type=f32) + b_rnn  # (T, HID)

    # ---- fully-unrolled serial recurrence: only h @ W_hh + tanh on the chain ----
    h = h0
    for t in range(T):
        h = jnp.tanh(xproj_sc[pl.ds(t, 1), :]
                     + jnp.dot(h, whh, preferred_element_type=f32))
        hseq_sc[pl.ds(t, 1), :] = h

    # ---- batched output head + tanh, single lane-dense (T, OUT) store ----
    o_ref[...] = jnp.tanh(
        jnp.dot(hseq_sc[...], wout, preferred_element_type=f32) + bout)


def captioner_pallas(x_flat, w1, w2, pool_mat, vec_pack, mat_pack):
    return pl.pallas_call(
        captioner_kernel,
        out_shape=jax.ShapeDtypeStruct((T, OUT), jnp.float32),
        scratch_shapes=[
            pltpu.VMEM((FPAD, 3 * CIN), jnp.float32),  # lane-grouped padded conv1 input
            pltpu.VMEM((FPAD, 3 * C1), jnp.float32),   # lane-grouped padded conv2 input
            pltpu.VMEM((T, HID), jnp.float32),         # hoisted input projection
            pltpu.VMEM((T, HID), jnp.float32),         # hidden-state sequence
        ],
    )(x_flat, w1, w2, pool_mat, vec_pack, mat_pack)


@jax.jit
def captioner_forward(x_nchw, params, pool_mat, h0):
    # NCHW -> flattened HWC (batch of 1, like the reference module)
    x_flat = jnp.transpose(x_nchw[0], (1, 2, 0)).reshape(HW, CIN)

    # kw-fused conv weights: (3, 3, Cin, Cout) -> (3, 3*Cin, Cout)
    w1 = params["w1"].reshape(3, 3 * CIN, C1)
    w2 = params["w2"].reshape(3, 3 * C1, C2)

    # pack the small vector operands into one lane-dense (8, C2) array
    vec_pack = jnp.zeros((8, C2), jnp.float32)
    vec_pack = vec_pack.at[0, :C1].set(params["b1"][0])
    vec_pack = vec_pack.at[1, :C2].set(params["b2"][0])
    vec_pack = vec_pack.at[2, :HID].set(params["b_rnn"][0])
    vec_pack = vec_pack.at[3, :HID].set(h0[0])
    vec_pack = vec_pack.at[4, :OUT].set(params["bout"][0])

    # pack the small RNN / head matrices into one (128, HID) array
    mat_pack = jnp.zeros((C2 + 2 * HID, HID), jnp.float32)
    mat_pack = mat_pack.at[:C2, :HID].set(params["wih"])
    mat_pack = mat_pack.at[C2:C2 + HID, :HID].set(params["whh"])
    mat_pack = mat_pack.at[C2 + HID:, :OUT].set(params["wout"])

    out = captioner_pallas(x_flat, w1, w2, pool_mat, vec_pack, mat_pack)
    # torch.stack(op, 0).squeeze().unsqueeze(0)
    return out.reshape(1, T, OUT)


# --------------------------------- glue / setup ---------------------------------
def adaptive_pool_matrix(in_size, out_size):
    P = np.zeros((out_size, in_size), dtype=np.float32)
    for i in range(out_size):
        s = (i * in_size) // out_size
        e = -(-((i + 1) * in_size) // out_size)   # ceil
        P[i, s:e] = 1.0 / (e - s)
    return P


def init_params(key):
    keys = jax.random.split(key, 10)

    def u(k, shape, fan_in):
        bound = 1.0 / np.sqrt(fan_in)
        return jax.random.uniform(k, shape, jnp.float32, -bound, bound)

    p = {}
    p["w1"] = u(keys[0], (3, 3, CIN, C1), 9 * CIN)
    p["b1"] = u(keys[1], (1, C1), 9 * CIN)
    p["w2"] = u(keys[2], (3, 3, C1, C2), 9 * C1)
    p["b2"] = u(keys[3], (1, C2), 9 * C1)
    # nn.RNNCell(C2, HID): weights stored pre-transposed for x @ W^T form
    p["wih"] = u(keys[4], (C2, HID), HID)
    p["whh"] = u(keys[5], (HID, HID), HID)
    p["b_rnn"] = u(keys[6], (1, HID), HID) + u(keys[7], (1, HID), HID)  # b_ih + b_hh
    # nn.Linear(HID, OUT), stored pre-transposed
    p["wout"] = u(keys[8], (HID, OUT), HID)
    p["bout"] = u(keys[9], (1, OUT), HID)
    return p


def reference_forward(x_nchw, params, pool_mat, h0):
    """Pure-JAX (XLA) reference of the same forward, for a numerical check."""
    hp = lax.Precision.HIGHEST
    x = jnp.transpose(x_nchw[0], (1, 2, 0))

    def conv(xin, w, b):
        H, W, _ = xin.shape
        cout = w.shape[-1]
        xp = jnp.pad(xin, ((1, 1), (1, 1), (0, 0)))
        acc = jnp.zeros((H, W, cout), jnp.float32)
        for kh in range(3):
            for kw in range(3):
                acc = acc + jnp.einsum("hwc,cd->hwd",
                                       xp[kh:kh + H, kw:kw + W, :], w[kh, kw],
                                       precision=hp)
        return jnp.maximum(acc + b, 0.0)

    y = conv(x, params["w1"], params["b1"])
    y = conv(y, params["w2"], params["b2"])
    feat = y.reshape(HW, C2)
    pooled = jnp.dot(pool_mat, feat, precision=hp)
    xproj = jnp.dot(pooled, params["wih"], precision=hp) + params["b_rnn"]
    h = h0
    outs = []
    for t in range(T):
        h = jnp.tanh(xproj[t:t + 1] + jnp.dot(h, params["whh"], precision=hp))
        outs.append(jnp.tanh(jnp.dot(h, params["wout"], precision=hp) + params["bout"]))
    return jnp.concatenate(outs, axis=0).reshape(1, T, OUT)


if __name__ == "__main__":
    key = jax.random.PRNGKey(0)
    k_x, k_h, k_p = jax.random.split(key, 3)

    x = jax.random.normal(k_x, (1, CIN, S_IN, S_IN), jnp.float32)
    h0 = jax.random.uniform(k_h, (1, HID), jnp.float32)   # torch.rand((1, H))
    params = init_params(k_p)
    p1 = adaptive_pool_matrix(S_IN, POOL)
    pool_mat = jnp.asarray(np.kron(p1, p1))               # (49, S*S)

    out = captioner_forward(x, params, pool_mat, h0)
    jax.block_until_ready(out)
    assert out.shape == (1, T, OUT), out.shape
    assert bool(jnp.all(jnp.isfinite(out)))

    ref = reference_forward(x, params, pool_mat, h0)
    max_diff = float(jnp.max(jnp.abs(out - ref)))
    assert max_diff < 1e-2, f"mismatch vs reference: {max_diff}"

    print("KERNEL_OK")
</pallas_src>

<mosaic_0001>
module attributes {stable_mosaic.version = 11 : i64} {
  func.func @captioner_kernel(%arg0: memref<256x4xf32, #tpu.memory_space<vmem>>, %arg1: memref<3x12x32xf32, #tpu.memory_space<vmem>>, %arg2: memref<3x96x64xf32, #tpu.memory_space<vmem>>, %arg3: memref<49x256xf32, #tpu.memory_space<vmem>>, %arg4: memref<8x64xf32, #tpu.memory_space<vmem>>, %arg5: memref<128x32xf32, #tpu.memory_space<vmem>>, %arg6: memref<49x16xf32, #tpu.memory_space<vmem>>, %arg7: memref<288x12xf32, #tpu.memory_space<vmem>>, %arg8: memref<288x96xf32, #tpu.memory_space<vmem>>, %arg9: memref<49x32xf32, #tpu.memory_space<vmem>>, %arg10: memref<49x32xf32, #tpu.memory_space<vmem>>) attributes {dimension_semantics = [], scalar_prefetch = 0 : i64, scratch_operands = 4 : i64, tpu.core_type = #tpu.core_type<tc>} {
    %0 = tpu.iota {dimensions = array<i32: 0>} : vector<256x1xi32>
    %c16_i32 = arith.constant 16 : i32
    %c0_i32 = arith.constant 0 : i32
    %1 = arith.cmpi eq, %c16_i32, %c0_i32 : i32
    %c1_i32 = arith.constant 1 : i32
    %2 = arith.select %1, %c1_i32, %c16_i32 : i32
    %3 = vector.broadcast %2 : i32 to vector<256x1xi32>
    %4 = arith.remsi %0, %3 : vector<256x1xi32>
    %c0_i32_0 = arith.constant 0 : i32
    %5 = vector.broadcast %c0_i32_0 : i32 to vector<256x1xi32>
    %6 = arith.cmpi ne, %4, %5 : vector<256x1xi32>
    %c0_i32_1 = arith.constant 0 : i32
    %7 = vector.broadcast %c0_i32_1 : i32 to vector<256x1xi32>
    %8 = arith.cmpi slt, %4, %7 : vector<256x1xi32>
    %c0_i32_2 = arith.constant 0 : i32
    %9 = arith.cmpi slt, %2, %c0_i32_2 : i32
    %10 = vector.broadcast %9 : i1 to vector<256x1xi1>
    %11 = vector.broadcast %10 : vector<256x1xi1> to vector<256x1xi1>
    %12 = arith.xori %8, %11 : vector<256x1xi1>
    %13 = arith.andi %12, %6 : vector<256x1xi1>
    %14 = vector.broadcast %2 : i32 to vector<256x1xi32>
    %15 = arith.addi %4, %14 : vector<256x1xi32>
    %16 = arith.select %13, %15, %4 : vector<256x1xi1>, vector<256x1xi32>
    %c0_i32_3 = arith.constant 0 : i32
    %17 = vector.broadcast %c0_i32_3 : i32 to vector<256x1xi32>
    %18 = arith.cmpi ne, %16, %17 : vector<256x1xi32>
    %19 = arith.extui %18 : vector<256x1xi1> to vector<256x1xi32>
    %20 = arith.sitofp %19 : vector<256x1xi32> to vector<256x1xf32>
    %c15_i32 = arith.constant 15 : i32
    %21 = vector.broadcast %c15_i32 : i32 to vector<256x1xi32>
    %22 = arith.cmpi ne, %16, %21 : vector<256x1xi32>
    %23 = arith.extui %22 : vector<256x1xi1> to vector<256x1xi32>
    %24 = arith.sitofp %23 : vector<256x1xi32> to vector<256x1xf32>
    %c0 = arith.constant 0 : index
    %c0_4 = arith.constant 0 : index
    %25 = vector.load %arg4[%c0, %c0_4] : memref<8x64xf32, #tpu.memory_space<vmem>>, vector<1x32xf32>
    %c1 = arith.constant 1 : index
    %c0_5 = arith.constant 0 : index
    %26 = vector.load %arg4[%c1, %c0_5] : memref<8x64xf32, #tpu.memory_space<vmem>>, vector<1x64xf32>
    %c2 = arith.constant 2 : index
    %c0_6 = arith.constant 0 : index
    %27 = vector.load %arg4[%c2, %c0_6] : memref<8x64xf32, #tpu.memory_space<vmem>>, vector<1x32xf32>
    %c3 = arith.constant 3 : index
    %c0_7 = arith.constant 0 : index
    %28 = vector.load %arg4[%c3, %c0_7] : memref<8x64xf32, #tpu.memory_space<vmem>>, vector<1x32xf32>
    %c4 = arith.constant 4 : index
    %c0_8 = arith.constant 0 : index
    %29 = vector.load %arg4[%c4, %c0_8] : memref<8x64xf32, #tpu.memory_space<vmem>>, vector<1x16xf32>
    %c0_9 = arith.constant 0 : index
    %c0_10 = arith.constant 0 : index
    %30 = vector.load %arg5[%c0_9, %c0_10] : memref<128x32xf32, #tpu.memory_space<vmem>>, vector<64x32xf32>
    %c64 = arith.constant 64 : index
    %c0_11 = arith.constant 0 : index
    %31 = vector.load %arg5[%c64, %c0_11] : memref<128x32xf32, #tpu.memory_space<vmem>>, vector<32x32xf32>
    %c96 = arith.constant 96 : index
    %c0_12 = arith.constant 0 : index
    %32 = vector.load %arg5[%c96, %c0_12] : memref<128x32xf32, #tpu.memory_space<vmem>>, vector<32x16xf32>
    %c0_13 = arith.constant 0 : index
    %c0_14 = arith.constant 0 : index
    %33 = vector.load %arg0[%c0_13, %c0_14] : memref<256x4xf32, #tpu.memory_space<vmem>>, vector<256x4xf32>
    %cst = arith.constant 0.000000e+00 : f32
    %34 = vector.broadcast %cst : f32 to vector<17x12xf32>
    %c0_15 = arith.constant 0 : index
    %c0_16 = arith.constant 0 : index
    %35 = vector.load %arg7[%c0_15, %c0_16] : memref<288x12xf32, #tpu.memory_space<vmem>>, vector<17x12xf32>
    tpu.vector_store %arg7[%c0_15, %c0_16], %34 {strides = array<i32>} : memref<288x12xf32, #tpu.memory_space<vmem>>, vector<17x12xf32>,
    %cst_17 = arith.constant 0.000000e+00 : f32
    %36 = vector.broadcast %cst_17 : f32 to vector<17x12xf32>
    %c271 = arith.constant 271 : index
    %c0_18 = arith.constant 0 : index
    %37 = vector.load %arg7[%c271, %c0_18] : memref<288x12xf32, #tpu.memory_space<vmem>>, vector<17x12xf32>
    tpu.vector_store %arg7[%c271, %c0_18], %36 {strides = array<i32>} : memref<288x12xf32, #tpu.memory_space<vmem>>, vector<17x12xf32>,
    %38 = vector.broadcast %24 : vector<256x1xf32> to vector<256x4xf32>
    %39 = arith.mulf %33, %38 : vector<256x4xf32>
    %c17 = arith.constant 17 : index
    %c0_19 = arith.constant 0 : index
    %40 = vector.load %arg7[%c17, %c0_19] : memref<288x12xf32, #tpu.memory_space<vmem>>, vector<256x4xf32>
    tpu.vector_store %arg7[%c17, %c0_19], %39 {strides = array<i32>} : memref<288x12xf32, #tpu.memory_space<vmem>>, vector<256x4xf32>,
    %c16 = arith.constant 16 : index
    %c4_20 = arith.constant 4 : index
    %41 = vector.load %arg7[%c16, %c4_20] : memref<288x12xf32, #tpu.memory_space<vmem>>, vector<256x4xf32>
    tpu.vector_store %arg7[%c16, %c4_20], %33 {strides = array<i32>} : memref<288x12xf32, #tpu.memory_space<vmem>>, vector<256x4xf32>,
    %42 = vector.broadcast %20 : vector<256x1xf32> to vector<256x4xf32>
    %43 = arith.mulf %33, %42 : vector<256x4xf32>
    %c15 = arith.constant 15 : index
    %c8 = arith.constant 8 : index
    %44 = vector.load %arg7[%c15, %c8] : memref<288x12xf32, #tpu.memory_space<vmem>>, vector<256x4xf32>
    tpu.vector_store %arg7[%c15, %c8], %43 {strides = array<i32>} : memref<288x12xf32, #tpu.memory_space<vmem>>, vector<256x4xf32>,
    %cst_21 = arith.constant 0.000000e+00 : f32
    %45 = vector.broadcast %cst_21 : f32 to vector<256x32xf32>
    %c0_22 = arith.constant 0 : index
    %c0_23 = arith.constant 0 : index
    %46 = vector.load %arg7[%c0_22, %c0_23] : memref<288x12xf32, #tpu.memory_space<vmem>>, vector<256x12xf32>
    %c0_24 = arith.constant 0 : index
    %c0_25 = arith.constant 0 : index
    %c0_26 = arith.constant 0 : index
    %47 = vector.load %arg1[%c0_24, %c0_25, %c0_26] : memref<3x12x32xf32, #tpu.memory_space<vmem>>, vector<1x12x32xf32>
    %48 = vector.shape_cast %47 : vector<1x12x32xf32> to vector<12x32xf32>
    %cst_27 = arith.constant dense<0.000000e+00> : vector<256x32xf32>
    %49 = tpu.matmul %46, %48, %cst_27 {dimension_numbers = #tpu.dot_dimension_numbers<[1], [0], [0], [1], [0, 0, 1, 1], [], []>} : vector<256x12xf32>, vector<12x32xf32>, vector<256x32xf32> -> vector<256x32xf32>
    %50 = arith.addf %45, %49 : vector<256x32xf32>
    %c16_28 = arith.constant 16 : index
    %c0_29 = arith.constant 0 : index
    %51 = vector.load %arg7[%c16_28, %c0_29] : memref<288x12xf32, #tpu.memory_space<vmem>>, vector<256x12xf32>
    %c1_30 = arith.constant 1 : index
    %c0_31 = arith.constant 0 : index
    %c0_32 = arith.constant 0 : index
    %52 = vector.load %arg1[%c1_30, %c0_31, %c0_32] : memref<3x12x32xf32, #tpu.memory_space<vmem>>, vector<1x12x32xf32>
    %53 = vector.shape_cast %52 : vector<1x12x32xf32> to vector<12x32xf32>
    %cst_33 = arith.constant dense<0.000000e+00> : vector<256x32xf32>
    %54 = tpu.matmul %51, %53, %cst_33 {dimension_numbers = #tpu.dot_dimension_numbers<[1], [0], [0], [1], [0, 0, 1, 1], [], []>} : vector<256x12xf32>, vector<12x32xf32>, vector<256x32xf32> -> vector<256x32xf32>
    %55 = arith.addf %50, %54 : vector<256x32xf32>
    %c32 = arith.constant 32 : index
    %c0_34 = arith.constant 0 : index
    %56 = vector.load %arg7[%c32, %c0_34] : memref<288x12xf32, #tpu.memory_space<vmem>>, vector<256x12xf32>
    %c2_35 = arith.constant 2 : index
    %c0_36 = arith.constant 0 : index
    %c0_37 = arith.constant 0 : index
    %57 = vector.load %arg1[%c2_35, %c0_36, %c0_37] : memref<3x12x32xf32, #tpu.memory_space<vmem>>, vector<1x12x32xf32>
    %58 = vector.shape_cast %57 : vector<1x12x32xf32> to vector<12x32xf32>
    %cst_38 = arith.constant dense<0.000000e+00> : vector<256x32xf32>
    %59 = tpu.matmul %56, %58, %cst_38 {dimension_numbers = #tpu.dot_dimension_numbers<[1], [0], [0], [1], [0, 0, 1, 1], [], []>} : vector<256x12xf32>, vector<12x32xf32>, vector<256x32xf32> -> vector<256x32xf32>
    %60 = arith.addf %55, %59 : vector<256x32xf32>
    %61 = vector.broadcast %25 : vector<1x32xf32> to vector<256x32xf32>
    %62 = arith.addf %60, %61 : vector<256x32xf32>
    %cst_39 = arith.constant 0.000000e+00 : f32
    %63 = vector.broadcast %cst_39 : f32 to vector<256x32xf32>
    %64 = arith.maximumf %62, %63 : vector<256x32xf32>
    %cst_40 = arith.constant 0.000000e+00 : f32
    %65 = vector.broadcast %cst_40 : f32 to vector<17x96xf32>
    %c0_41 = arith.constant 0 : index
    %c0_42 = arith.constant 0 : index
    %66 = vector.load %arg8[%c0_41, %c0_42] : memref<288x96xf32, #tpu.memory_space<vmem>>, vector<17x96xf32>
    tpu.vector_store %arg8[%c0_41, %c0_42], %65 {strides = array<i32>} : memref<288x96xf32, #tpu.memory_space<vmem>>, vector<17x96xf32>,
    %cst_43 = arith.constant 0.000000e+00 : f32
    %67 = vector.broadcast %cst_43 : f32 to vector<17x96xf32>
    %c271_44 = arith.constant 271 : index
    %c0_45 = arith.constant 0 : index
    %68 = vector.load %arg8[%c271_44, %c0_45] : memref<288x96xf32, #tpu.memory_space<vmem>>, vector<17x96xf32>
    tpu.vector_store %arg8[%c271_44, %c0_45], %67 {strides = array<i32>} : memref<288x96xf32, #tpu.memory_space<vmem>>, vector<17x96xf32>,
    %69 = vector.broadcast %24 : vector<256x1xf32> to vector<256x32xf32>
    %70 = arith.mulf %64, %69 : vector<256x32xf32>
    %c17_46 = arith.constant 17 : index
    %c0_47 = arith.constant 0 : index
    %71 = vector.load %arg8[%c17_46, %c0_47] : memref<288x96xf32, #tpu.memory_space<vmem>>, vector<256x32xf32>
    tpu.vector_store %arg8[%c17_46, %c0_47], %70 {strides = array<i32>} : memref<288x96xf32, #tpu.memory_space<vmem>>, vector<256x32xf32>,
    %c16_48 = arith.constant 16 : index
    %c32_49 = arith.constant 32 : index
    %72 = vector.load %arg8[%c16_48, %c32_49] : memref<288x96xf32, #tpu.memory_space<vmem>>, vector<256x32xf32>
    tpu.vector_store %arg8[%c16_48, %c32_49], %64 {strides = array<i32>} : memref<288x96xf32, #tpu.memory_space<vmem>>, vector<256x32xf32>,
    %73 = vector.broadcast %20 : vector<256x1xf32> to vector<256x32xf32>
    %74 = arith.mulf %64, %73 : vector<256x32xf32>
    %c15_50 = arith.constant 15 : index
    %c64_51 = arith.constant 64 : index
    %75 = vector.load %arg8[%c15_50, %c64_51] : memref<288x96xf32, #tpu.memory_space<vmem>>, vector<256x32xf32>
    tpu.vector_store %arg8[%c15_50, %c64_51], %74 {strides = array<i32>} : memref<288x96xf32, #tpu.memory_space<vmem>>, vector<256x32xf32>,
    %cst_52 = arith.constant 0.000000e+00 : f32
    %76 = vector.broadcast %cst_52 : f32 to vector<256x64xf32>
    %c0_53 = arith.constant 0 : index
    %c0_54 = arith.constant 0 : index
    %77 = vector.load %arg8[%c0_53, %c0_54] : memref<288x96xf32, #tpu.memory_space<vmem>>, vector<256x96xf32>
    %c0_55 = arith.constant 0 : index
    %c0_56 = arith.constant 0 : index
    %c0_57 = arith.constant 0 : index
    %78 = vector.load %arg2[%c0_55, %c0_56, %c0_57] : memref<3x96x64xf32, #tpu.memory_space<vmem>>, vector<1x96x64xf32>
    %79 = vector.shape_cast %78 : vector<1x96x64xf32> to vector<96x64xf32>
    %cst_58 = arith.constant dense<0.000000e+00> : vector<256x64xf32>
    %80 = tpu.matmul %77, %79, %cst_58 {dimension_numbers = #tpu.dot_dimension_numbers<[1], [0], [0], [1], [0, 0, 1, 1], [], []>} : vector<256x96xf32>, vector<96x64xf32>, vector<256x64xf32> -> vector<256x64xf32>
    %81 = arith.addf %76, %80 : vector<256x64xf32>
    %c16_59 = arith.constant 16 : index
    %c0_60 = arith.constant 0 : index
    %82 = vector.load %arg8[%c16_59, %c0_60] : memref<288x96xf32, #tpu.memory_space<vmem>>, vector<256x96xf32>
    %c1_61 = arith.constant 1 : index
    %c0_62 = arith.constant 0 : index
    %c0_63 = arith.constant 0 : index
    %83 = vector.load %arg2[%c1_61, %c0_62, %c0_63] : memref<3x96x64xf32, #tpu.memory_space<vmem>>, vector<1x96x64xf32>
    %84 = vector.shape_cast %83 : vector<1x96x64xf32> to vector<96x64xf32>
    %cst_64 = arith.constant dense<0.000000e+00> : vector<256x64xf32>
    %85 = tpu.matmul %82, %84, %cst_64 {dimension_numbers = #tpu.dot_dimension_numbers<[1], [0], [0], [1], [0, 0, 1, 1], [], []>} : vector<256x96xf32>, vector<96x64xf32>, vector<256x64xf32> -> vector<256x64xf32>
    %86 = arith.addf %81, %85 : vector<256x64xf32>
    %c32_65 = arith.constant 32 : index
    %c0_66 = arith.constant 0 : index
    %87 = vector.load %arg8[%c32_65, %c0_66] : memref<288x96xf32, #tpu.memory_space<vmem>>, vector<256x96xf32>
    %c2_67 = arith.constant 2 : index
    %c0_68 = arith.constant 0 : index
    %c0_69 = arith.constant 0 : index
    %88 = vector.load %arg2[%c2_67, %c0_68, %c0_69] : memref<3x96x64xf32, #tpu.memory_space<vmem>>, vector<1x96x64xf32>
    %89 = vector.shape_cast %88 : vector<1x96x64xf32> to vector<96x64xf32>
    %cst_70 = arith.constant dense<0.000000e+00> : vector<256x64xf32>
    %90 = tpu.matmul %87, %89, %cst_70 {dimension_numbers = #tpu.dot_dimension_numbers<[1], [0], [0], [1], [0, 0, 1, 1], [], []>} : vector<256x96xf32>, vector<96x64xf32>, vector<256x64xf32> -> vector<256x64xf32>
    %91 = arith.addf %86, %90 : vector<256x64xf32>
    %92 = vector.broadcast %26 : vector<1x64xf32> to vector<256x64xf32>
    %93 = arith.addf %91, %92 : vector<256x64xf32>
    %cst_71 = arith.constant 0.000000e+00 : f32
    %94 = vector.broadcast %cst_71 : f32 to vector<256x64xf32>
    %95 = arith.maximumf %93, %94 : vector<256x64xf32>
    %c0_72 = arith.constant 0 : index
    %c0_73 = arith.constant 0 : index
    %96 = vector.load %arg3[%c0_72, %c0_73] : memref<49x256xf32, #tpu.memory_space<vmem>>, vector<49x256xf32>
    %cst_74 = arith.constant dense<0.000000e+00> : vector<49x64xf32>
    %97 = tpu.matmul %96, %95, %cst_74 {dimension_numbers = #tpu.dot_dimension_numbers<[1], [0], [0], [1], [0, 0, 1, 1], [], []>} : vector<49x256xf32>, vector<256x64xf32>, vector<49x64xf32> -> vector<49x64xf32>
    %cst_75 = arith.constant dense<0.000000e+00> : vector<49x32xf32>
    %98 = tpu.matmul %97, %30, %cst_75 {dimension_numbers = #tpu.dot_dimension_numbers<[1], [0], [0], [1], [0, 0, 1, 1], [], []>} : vector<49x64xf32>, vector<64x32xf32>, vector<49x32xf32> -> vector<49x32xf32>
    %99 = vector.broadcast %27 : vector<1x32xf32> to vector<49x32xf32>
    %100 = arith.addf %98, %99 : vector<49x32xf32>
    %c0_76 = arith.constant 0 : index
    %c0_77 = arith.constant 0 : index
    %101 = vector.load %arg9[%c0_76, %c0_77] : memref<49x32xf32, #tpu.memory_space<vmem>>, vector<49x32xf32>
    tpu.vector_store %arg9[%c0_76, %c0_77], %100 {strides = array<i32>} : memref<49x32xf32, #tpu.memory_space<vmem>>, vector<49x32xf32>,
    %c0_78 = arith.constant 0 : index
    %c0_79 = arith.constant 0 : index
    %102 = vector.load %arg9[%c0_78, %c0_79] : memref<49x32xf32, #tpu.memory_space<vmem>>, vector<1x32xf32>
    %cst_80 = arith.constant dense<0.000000e+00> : vector<1x32xf32>
    %103 = tpu.matmul %28, %31, %cst_80 {dimension_numbers = #tpu.dot_dimension_numbers<[1], [0], [0], [1], [0, 0, 1, 1], [], []>} : vector<1x32xf32>, vector<32x32xf32>, vector<1x32xf32> -> vector<1x32xf32>
    %104 = arith.addf %102, %103 : vector<1x32xf32>
    %105 = math.tanh %104 : vector<1x32xf32>
    %c0_81 = arith.constant 0 : index
    %c0_82 = arith.constant 0 : index
    %106 = vector.load %arg10[%c0_81, %c0_82] : memref<49x32xf32, #tpu.memory_space<vmem>>, vector<1x32xf32>
    tpu.vector_store %arg10[%c0_81, %c0_82], %105 {strides = array<i32>} : memref<49x32xf32, #tpu.memory_space<vmem>>, vector<1x32xf32>,
    %c1_83 = arith.constant 1 : index
    %c0_84 = arith.constant 0 : index
    %107 = vector.load %arg9[%c1_83, %c0_84] : memref<49x32xf32, #tpu.memory_space<vmem>>, vector<1x32xf32>
    %cst_85 = arith.constant dense<0.000000e+00> : vector<1x32xf32>
    %108 = tpu.matmul %105, %31, %cst_85 {dimension_numbers = #tpu.dot_dimension_numbers<[1], [0], [0], [1], [0, 0, 1, 1], [], []>} : vector<1x32xf32>, vector<32x32xf32>, vector<1x32xf32> -> vector<1x32xf32>
    %109 = arith.addf %107, %108 : vector<1x32xf32>
    %110 = math.tanh %109 : vector<1x32xf32>
    %c1_86 = arith.constant 1 : index
    %c0_87 = arith.constant 0 : index
    %111 = vector.load %arg10[%c1_86, %c0_87] : memref<49x32xf32, #tpu.memory_space<vmem>>, vector<1x32xf32>
    tpu.vector_store %arg10[%c1_86, %c0_87], %110 {strides = array<i32>} : memref<49x32xf32, #tpu.memory_space<vmem>>, vector<1x32xf32>,
    %c2_88 = arith.constant 2 : index
    %c0_89 = arith.constant 0 : index
    %112 = vector.load %arg9[%c2_88, %c0_89] : memref<49x32xf32, #tpu.memory_space<vmem>>, vector<1x32xf32>
    %cst_90 = arith.constant dense<0.000000e+00> : vector<1x32xf32>
    %113 = tpu.matmul %110, %31, %cst_90 {dimension_numbers = #tpu.dot_dimension_numbers<[1], [0], [0], [1], [0, 0, 1, 1], [], []>} : vector<1x32xf32>, vector<32x32xf32>, vector<1x32xf32> -> vector<1x32xf32>
    %114 = arith.addf %112, %113 : vector<1x32xf32>
    %115 = math.tanh %114 : vector<1x32xf32>
    %c2_91 = arith.constant 2 : index
    %c0_92 = arith.constant 0 : index
    %116 = vector.load %arg10[%c2_91, %c0_92] : memref<49x32xf32, #tpu.memory_space<vmem>>, vector<1x32xf32>
    tpu.vector_store %arg10[%c2_91, %c0_92], %115 {strides = array<i32>} : memref<49x32xf32, #tpu.memory_space<vmem>>, vector<1x32xf32>,
    %c3_93 = arith.constant 3 : index
    %c0_94 = arith.constant 0 : index
    %117 = vector.load %arg9[%c3_93, %c0_94] : memref<49x32xf32, #tpu.memory_space<vmem>>, vector<1x32xf32>
    %cst_95 = arith.constant dense<0.000000e+00> : vector<1x32xf32>
    %118 = tpu.matmul %115, %31, %cst_95 {dimension_numbers = #tpu.dot_dimension_numbers<[1], [0], [0], [1], [0, 0, 1, 1], [], []>} : vector<1x32xf32>, vector<32x32xf32>, vector<1x32xf32> -> vector<1x32xf32>
    %119 = arith.addf %117, %118 : vector<1x32xf32>
    %120 = math.tanh %119 : vector<1x32xf32>
    %c3_96 = arith.constant 3 : index
    %c0_97 = arith.constant 0 : index
    %121 = vector.load %arg10[%c3_96, %c0_97] : memref<49x32xf32, #tpu.memory_space<vmem>>, vector<1x32xf32>
    tpu.vector_store %arg10[%c3_96, %c0_97], %120 {strides = array<i32>} : memref<49x32xf32, #tpu.memory_space<vmem>>, vector<1x32xf32>,
    %c4_98 = arith.constant 4 : index
    %c0_99 = arith.constant 0 : index
    %122 = vector.load %arg9[%c4_98, %c0_99] : memref<49x32xf32, #tpu.memory_space<vmem>>, vector<1x32xf32>
    %cst_100 = arith.constant dense<0.000000e+00> : vector<1x32xf32>
    %123 = tpu.matmul %120, %31, %cst_100 {dimension_numbers = #tpu.dot_dimension_numbers<[1], [0], [0], [1], [0, 0, 1, 1], [], []>} : vector<1x32xf32>, vector<32x32xf32>, vector<1x32xf32> -> vector<1x32xf32>
    %124 = arith.addf %122, %123 : vector<1x32xf32>
    %125 = math.tanh %124 : vector<1x32xf32>
    %c4_101 = arith.constant 4 : index
    %c0_102 = arith.constant 0 : index
    %126 = vector.load %arg10[%c4_101, %c0_102] : memref<49x32xf32, #tpu.memory_space<vmem>>, vector<1x32xf32>
    tpu.vector_store %arg10[%c4_101, %c0_102], %125 {strides = array<i32>} : memref<49x32xf32, #tpu.memory_space<vmem>>, vector<1x32xf32>,
    %c5 = arith.constant 5 : index
    %c0_103 = arith.constant 0 : index
    %127 = vector.load %arg9[%c5, %c0_103] : memref<49x32xf32, #tpu.memory_space<vmem>>, vector<1x32xf32>
    %cst_104 = arith.constant dense<0.000000e+00> : vector<1x32xf32>
    %128 = tpu.matmul %125, %31, %cst_104 {dimension_numbers = #tpu.dot_dimension_numbers<[1], [0], [0], [1], [0, 0, 1, 1], [], []>} : vector<1x32xf32>, vector<32x32xf32>, vector<1x32xf32> -> vector<1x32xf32>
    %129 = arith.addf %127, %128 : vector<1x32xf32>
    %130 = math.tanh %129 : vector<1x32xf32>
    %c5_105 = arith.constant 5 : index
    %c0_106 = arith.constant 0 : index
    %131 = vector.load %arg10[%c5_105, %c0_106] : memref<49x32xf32, #tpu.memory_space<vmem>>, vector<1x32xf32>
    tpu.vector_store %arg10[%c5_105, %c0_106], %130 {strides = array<i32>} : memref<49x32xf32, #tpu.memory_space<vmem>>, vector<1x32xf32>,
    %c6 = arith.constant 6 : index
    %c0_107 = arith.constant 0 : index
    %132 = vector.load %arg9[%c6, %c0_107] : memref<49x32xf32, #tpu.memory_space<vmem>>, vector<1x32xf32>
    %cst_108 = arith.constant dense<0.000000e+00> : vector<1x32xf32>
    %133 = tpu.matmul %130, %31, %cst_108 {dimension_numbers = #tpu.dot_dimension_numbers<[1], [0], [0], [1], [0, 0, 1, 1], [], []>} : vector<1x32xf32>, vector<32x32xf32>, vector<1x32xf32> -> vector<1x32xf32>
    %134 = arith.addf %132, %133 : vector<1x32xf32>
    %135 = math.tanh %134 : vector<1x32xf32>
    %c6_109 = arith.constant 6 : index
    %c0_110 = arith.constant 0 : index
    %136 = vector.load %arg10[%c6_109, %c0_110] : memref<49x32xf32, #tpu.memory_space<vmem>>, vector<1x32xf32>
    tpu.vector_store %arg10[%c6_109, %c0_110], %135 {strides = array<i32>} : memref<49x32xf32, #tpu.memory_space<vmem>>, vector<1x32xf32>,
    %c7 = arith.constant 7 : index
    %c0_111 = arith.constant 0 : index
    %137 = vector.load %arg9[%c7, %c0_111] : memref<49x32xf32, #tpu.memory_space<vmem>>, vector<1x32xf32>
    %cst_112 = arith.constant dense<0.000000e+00> : vector<1x32xf32>
    %138 = tpu.matmul %135, %31, %cst_112 {dimension_numbers = #tpu.dot_dimension_numbers<[1], [0], [0], [1], [0, 0, 1, 1], [], []>} : vector<1x32xf32>, vector<32x32xf32>, vector<1x32xf32> -> vector<1x32xf32>
    %139 = arith.addf %137, %138 : vector<1x32xf32>
    %140 = math.tanh %139 : vector<1x32xf32>
    %c7_113 = arith.constant 7 : index
    %c0_114 = arith.constant 0 : index
    %141 = vector.load %arg10[%c7_113, %c0_114] : memref<49x32xf32, #tpu.memory_space<vmem>>, vector<1x32xf32>
    tpu.vector_store %arg10[%c7_113, %c0_114], %140 {strides = array<i32>} : memref<49x32xf32, #tpu.memory_space<vmem>>, vector<1x32xf32>,
    %c8_115 = arith.constant 8 : index
    %c0_116 = arith.constant 0 : index
    %142 = vector.load %arg9[%c8_115, %c0_116] : memref<49x32xf32, #tpu.memory_space<vmem>>, vector<1x32xf32>
    %cst_117 = arith.constant dense<0.000000e+00> : vector<1x32xf32>
    %143 = tpu.matmul %140, %31, %cst_117 {dimension_numbers = #tpu.dot_dimension_numbers<[1], [0], [0], [1], [0, 0, 1, 1], [], []>} : vector<1x32xf32>, vector<32x32xf32>, vector<1x32xf32> -> vector<1x32xf32>
    %144 = arith.addf %142, %143 : vector<1x32xf32>
    %145 = math.tanh %144 : vector<1x32xf32>
    %c8_118 = arith.constant 8 : index
    %c0_119 = arith.constant 0 : index
    %146 = vector.load %arg10[%c8_118, %c0_119] : memref<49x32xf32, #tpu.memory_space<vmem>>, vector<1x32xf32>
    tpu.vector_store %arg10[%c8_118, %c0_119], %145 {strides = array<i32>} : memref<49x32xf32, #tpu.memory_space<vmem>>, vector<1x32xf32>,
    %c9 = arith.constant 9 : index
    %c0_120 = arith.constant 0 : index
    %147 = vector.load %arg9[%c9, %c0_120] : memref<49x32xf32, #tpu.memory_space<vmem>>, vector<1x32xf32>
    %cst_121 = arith.constant dense<0.000000e+00> : vector<1x32xf32>
    %148 = tpu.matmul %145, %31, %cst_121 {dimension_numbers = #tpu.dot_dimension_numbers<[1], [0], [0], [1], [0, 0, 1, 1], [], []>} : vector<1x32xf32>, vector<32x32xf32>, vector<1x32xf32> -> vector<1x32xf32>
    %149 = arith.addf %147, %148 : vector<1x32xf32>
    %150 = math.tanh %149 : vector<1x32xf32>
    %c9_122 = arith.constant 9 : index
    %c0_123 = arith.constant 0 : index
    %151 = vector.load %arg10[%c9_122, %c0_123] : memref<49x32xf32, #tpu.memory_space<vmem>>, vector<1x32xf32>
    tpu.vector_store %arg10[%c9_122, %c0_123], %150 {strides = array<i32>} : memref<49x32xf32, #tpu.memory_space<vmem>>, vector<1x32xf32>,
    %c10 = arith.constant 10 : index
    %c0_124 = arith.constant 0 : index
    %152 = vector.load %arg9[%c10, %c0_124] : memref<49x32xf32, #tpu.memory_space<vmem>>, vector<1x32xf32>
    %cst_125 = arith.constant dense<0.000000e+00> : vector<1x32xf32>
    %153 = tpu.matmul %150, %31, %cst_125 {dimension_numbers = #tpu.dot_dimension_numbers<[1], [0], [0], [1], [0, 0, 1, 1], [], []>} : vector<1x32xf32>, vector<32x32xf32>, vector<1x32xf32> -> vector<1x32xf32>
    %154 = arith.addf %152, %153 : vector<1x32xf32>
    %155 = math.tanh %154 : vector<1x32xf32>
    %c10_126 = arith.constant 10 : index
    %c0_127 = arith.constant 0 : index
    %156 = vector.load %arg10[%c10_126, %c0_127] : memref<49x32xf32, #tpu.memory_space<vmem>>, vector<1x32xf32>
    tpu.vector_store %arg10[%c10_126, %c0_127], %155 {strides = array<i32>} : memref<49x32xf32, #tpu.memory_space<vmem>>, vector<1x32xf32>,
    %c11 = arith.constant 11 : index
    %c0_128 = arith.constant 0 : index
    %157 = vector.load %arg9[%c11, %c0_128] : memref<49x32xf32, #tpu.memory_space<vmem>>, vector<1x32xf32>
    %cst_129 = arith.constant dense<0.000000e+00> : vector<1x32xf32>
    %158 = tpu.matmul %155, %31, %cst_129 {dimension_numbers = #tpu.dot_dimension_numbers<[1], [0], [0], [1], [0, 0, 1, 1], [], []>} : vector<1x32xf32>, vector<32x32xf32>, vector<1x32xf32> -> vector<1x32xf32>
    %159 = arith.addf %157, %158 : vector<1x32xf32>
    %160 = math.tanh %159 : vector<1x32xf32>
    %c11_130 = arith.constant 11 : index
    %c0_131 = arith.constant 0 : index
    %161 = vector.load %arg10[%c11_130, %c0_131] : memref<49x32xf32, #tpu.memory_space<vmem>>, vector<1x32xf32>
    tpu.vector_store %arg10[%c11_130, %c0_131], %160 {strides = array<i32>} : memref<49x32xf32, #tpu.memory_space<vmem>>, vector<1x32xf32>,
    %c12 = arith.constant 12 : index
    %c0_132 = arith.constant 0 : index
    %162 = vector.load %arg9[%c12, %c0_132] : memref<49x32xf32, #tpu.memory_space<vmem>>, vector<1x32xf32>
    %cst_133 = arith.constant dense<0.000000e+00> : vector<1x32xf32>
    %163 = tpu.matmul %160, %31, %cst_133 {dimension_numbers = #tpu.dot_dimension_numbers<[1], [0], [0], [1], [0, 0, 1, 1], [], []>} : vector<1x32xf32>, vector<32x32xf32>, vector<1x32xf32> -> vector<1x32xf32>
    %164 = arith.addf %162, %163 : vector<1x32xf32>
    %165 = math.tanh %164 : vector<1x32xf32>
    %c12_134 = arith.constant 12 : index
    %c0_135 = arith.constant 0 : index
    %166 = vector.load %arg10[%c12_134, %c0_135] : memref<49x32xf32, #tpu.memory_space<vmem>>, vector<1x32xf32>
    tpu.vector_store %arg10[%c12_134, %c0_135], %165 {strides = array<i32>} : memref<49x32xf32, #tpu.memory_space<vmem>>, vector<1x32xf32>,
    %c13 = arith.constant 13 : index
    %c0_136 = arith.constant 0 : index
    %167 = vector.load %arg9[%c13, %c0_136] : memref<49x32xf32, #tpu.memory_space<vmem>>, vector<1x32xf32>
    %cst_137 = arith.constant dense<0.000000e+00> : vector<1x32xf32>
    %168 = tpu.matmul %165, %31, %cst_137 {dimension_numbers = #tpu.dot_dimension_numbers<[1], [0], [0], [1], [0, 0, 1, 1], [], []>} : vector<1x32xf32>, vector<32x32xf32>, vector<1x32xf32> -> vector<1x32xf32>
    %169 = arith.addf %167, %168 : vector<1x32xf32>
    %170 = math.tanh %169 : vector<1x32xf32>
    %c13_138 = arith.constant 13 : index
    %c0_139 = arith.constant 0 : index
    %171 = vector.load %arg10[%c13_138, %c0_139] : memref<49x32xf32, #tpu.memory_space<vmem>>, vector<1x32xf32>
    tpu.vector_store %arg10[%c13_138, %c0_139], %170 {strides = array<i32>} : memref<49x32xf32, #tpu.memory_space<vmem>>, vector<1x32xf32>,
    %c14 = arith.constant 14 : index
    %c0_140 = arith.constant 0 : index
    %172 = vector.load %arg9[%c14, %c0_140] : memref<49x32xf32, #tpu.memory_space<vmem>>, vector<1x32xf32>
    %cst_141 = arith.constant dense<0.000000e+00> : vector<1x32xf32>
    %173 = tpu.matmul %170, %31, %cst_141 {dimension_numbers = #tpu.dot_dimension_numbers<[1], [0], [0], [1], [0, 0, 1, 1], [], []>} : vector<1x32xf32>, vector<32x32xf32>, vector<1x32xf32> -> vector<1x32xf32>
    %174 = arith.addf %172, %173 : vector<1x32xf32>
    %175 = math.tanh %174 : vector<1x32xf32>
    %c14_142 = arith.constant 14 : index
    %c0_143 = arith.constant 0 : index
    %176 = vector.load %arg10[%c14_142, %c0_143] : memref<49x32xf32, #tpu.memory_space<vmem>>, vector<1x32xf32>
    tpu.vector_store %arg10[%c14_142, %c0_143], %175 {strides = array<i32>} : memref<49x32xf32, #tpu.memory_space<vmem>>, vector<1x32xf32>,
    %c15_144 = arith.constant 15 : index
    %c0_145 = arith.constant 0 : index
    %177 = vector.load %arg9[%c15_144, %c0_145] : memref<49x32xf32, #tpu.memory_space<vmem>>, vector<1x32xf32>
    %cst_146 = arith.constant dense<0.000000e+00> : vector<1x32xf32>
    %178 = tpu.matmul %175, %31, %cst_146 {dimension_numbers = #tpu.dot_dimension_numbers<[1], [0], [0], [1], [0, 0, 1, 1], [], []>} : vector<1x32xf32>, vector<32x32xf32>, vector<1x32xf32> -> vector<1x32xf32>
    %179 = arith.addf %177, %178 : vector<1x32xf32>
    %180 = math.tanh %179 : vector<1x32xf32>
    %c15_147 = arith.constant 15 : index
    %c0_148 = arith.constant 0 : index
    %181 = vector.load %arg10[%c15_147, %c0_148] : memref<49x32xf32, #tpu.memory_space<vmem>>, vector<1x32xf32>
    tpu.vector_store %arg10[%c15_147, %c0_148], %180 {strides = array<i32>} : memref<49x32xf32, #tpu.memory_space<vmem>>, vector<1x32xf32>,
    %c16_149 = arith.constant 16 : index
    %c0_150 = arith.constant 0 : index
    %182 = vector.load %arg9[%c16_149, %c0_150] : memref<49x32xf32, #tpu.memory_space<vmem>>, vector<1x32xf32>
    %cst_151 = arith.constant dense<0.000000e+00> : vector<1x32xf32>
    %183 = tpu.matmul %180, %31, %cst_151 {dimension_numbers = #tpu.dot_dimension_numbers<[1], [0], [0], [1], [0, 0, 1, 1], [], []>} : vector<1x32xf32>, vector<32x32xf32>, vector<1x32xf32> -> vector<1x32xf32>
    %184 = arith.addf %182, %183 : vector<1x32xf32>
    %185 = math.tanh %184 : vector<1x32xf32>
    %c16_152 = arith.constant 16 : index
    %c0_153 = arith.constant 0 : index
    %186 = vector.load %arg10[%c16_152, %c0_153] : memref<49x32xf32, #tpu.memory_space<vmem>>, vector<1x32xf32>
    tpu.vector_store %arg10[%c16_152, %c0_153], %185 {strides = array<i32>} : memref<49x32xf32, #tpu.memory_space<vmem>>, vector<1x32xf32>,
    %c17_154 = arith.constant 17 : index
    %c0_155 = arith.constant 0 : index
    %187 = vector.load %arg9[%c17_154, %c0_155] : memref<49x32xf32, #tpu.memory_space<vmem>>, vector<1x32xf32>
    %cst_156 = arith.constant dense<0.000000e+00> : vector<1x32xf32>
    %188 = tpu.matmul %185, %31, %cst_156 {dimension_numbers = #tpu.dot_dimension_numbers<[1], [0], [0], [1], [0, 0, 1, 1], [], []>} : vector<1x32xf32>, vector<32x32xf32>, vector<1x32xf32> -> vector<1x32xf32>
    %189 = arith.addf %187, %188 : vector<1x32xf32>
    %190 = math.tanh %189 : vector<1x32xf32>
    %c17_157 = arith.constant 17 : index
    %c0_158 = arith.constant 0 : index
    %191 = vector.load %arg10[%c17_157, %c0_158] : memref<49x32xf32, #tpu.memory_space<vmem>>, vector<1x32xf32>
    tpu.vector_store %arg10[%c17_157, %c0_158], %190 {strides = array<i32>} : memref<49x32xf32, #tpu.memory_space<vmem>>, vector<1x32xf32>,
    %c18 = arith.constant 18 : index
    %c0_159 = arith.constant 0 : index
    %192 = vector.load %arg9[%c18, %c0_159] : memref<49x32xf32, #tpu.memory_space<vmem>>, vector<1x32xf32>
    %cst_160 = arith.constant dense<0.000000e+00> : vector<1x32xf32>
    %193 = tpu.matmul %190, %31, %cst_160 {dimension_numbers = #tpu.dot_dimension_numbers<[1], [0], [0], [1], [0, 0, 1, 1], [], []>} : vector<1x32xf32>, vector<32x32xf32>, vector<1x32xf32> -> vector<1x32xf32>
    %194 = arith.addf %192, %193 : vector<1x32xf32>
    %195 = math.tanh %194 : vector<1x32xf32>
    %c18_161 = arith.constant 18 : index
    %c0_162 = arith.constant 0 : index
    %196 = vector.load %arg10[%c18_161, %c0_162] : memref<49x32xf32, #tpu.memory_space<vmem>>, vector<1x32xf32>
    tpu.vector_store %arg10[%c18_161, %c0_162], %195 {strides = array<i32>} : memref<49x32xf32, #tpu.memory_space<vmem>>, vector<1x32xf32>,
    %c19 = arith.constant 19 : index
    %c0_163 = arith.constant 0 : index
    %197 = vector.load %arg9[%c19, %c0_163] : memref<49x32xf32, #tpu.memory_space<vmem>>, vector<1x32xf32>
    %cst_164 = arith.constant dense<0.000000e+00> : vector<1x32xf32>
    %198 = tpu.matmul %195, %31, %cst_164 {dimension_numbers = #tpu.dot_dimension_numbers<[1], [0], [0], [1], [0, 0, 1, 1], [], []>} : vector<1x32xf32>, vector<32x32xf32>, vector<1x32xf32> -> vector<1x32xf32>
    %199 = arith.addf %197, %198 : vector<1x32xf32>
    %200 = math.tanh %199 : vector<1x32xf32>
    %c19_165 = arith.constant 19 : index
    %c0_166 = arith.constant 0 : index
    %201 = vector.load %arg10[%c19_165, %c0_166] : memref<49x32xf32, #tpu.memory_space<vmem>>, vector<1x32xf32>
    tpu.vector_store %arg10[%c19_165, %c0_166], %200 {strides = array<i32>} : memref<49x32xf32, #tpu.memory_space<vmem>>, vector<1x32xf32>,
    %c20 = arith.constant 20 : index
    %c0_167 = arith.constant 0 : index
    %202 = vector.load %arg9[%c20, %c0_167] : memref<49x32xf32, #tpu.memory_space<vmem>>, vector<1x32xf32>
    %cst_168 = arith.constant dense<0.000000e+00> : vector<1x32xf32>
    %203 = tpu.matmul %200, %31, %cst_168 {dimension_numbers = #tpu.dot_dimension_numbers<[1], [0], [0], [1], [0, 0, 1, 1], [], []>} : vector<1x32xf32>, vector<32x32xf32>, vector<1x32xf32> -> vector<1x32xf32>
    %204 = arith.addf %202, %203 : vector<1x32xf32>
    %205 = math.tanh %204 : vector<1x32xf32>
    %c20_169 = arith.constant 20 : index
    %c0_170 = arith.constant 0 : index
    %206 = vector.load %arg10[%c20_169, %c0_170] : memref<49x32xf32, #tpu.memory_space<vmem>>, vector<1x32xf32>
    tpu.vector_store %arg10[%c20_169, %c0_170], %205 {strides = array<i32>} : memref<49x32xf32, #tpu.memory_space<vmem>>, vector<1x32xf32>,
    %c21 = arith.constant 21 : index
    %c0_171 = arith.constant 0 : index
    %207 = vector.load %arg9[%c21, %c0_171] : memref<49x32xf32, #tpu.memory_space<vmem>>, vector<1x32xf32>
    %cst_172 = arith.constant dense<0.000000e+00> : vector<1x32xf32>
    %208 = tpu.matmul %205, %31, %cst_172 {dimension_numbers = #tpu.dot_dimension_numbers<[1], [0], [0], [1], [0, 0, 1, 1], [], []>} : vector<1x32xf32>, vector<32x32xf32>, vector<1x32xf32> -> vector<1x32xf32>
    %209 = arith.addf %207, %208 : vector<1x32xf32>
    %210 = math.tanh %209 : vector<1x32xf32>
    %c21_173 = arith.constant 21 : index
    %c0_174 = arith.constant 0 : index
    %211 = vector.load %arg10[%c21_173, %c0_174] : memref<49x32xf32, #tpu.memory_space<vmem>>, vector<1x32xf32>
    tpu.vector_store %arg10[%c21_173, %c0_174], %210 {strides = array<i32>} : memref<49x32xf32, #tpu.memory_space<vmem>>, vector<1x32xf32>,
    %c22 = arith.constant 22 : index
    %c0_175 = arith.constant 0 : index
    %212 = vector.load %arg9[%c22, %c0_175] : memref<49x32xf32, #tpu.memory_space<vmem>>, vector<1x32xf32>
    %cst_176 = arith.constant dense<0.000000e+00> : vector<1x32xf32>
    %213 = tpu.matmul %210, %31, %cst_176 {dimension_numbers = #tpu.dot_dimension_numbers<[1], [0], [0], [1], [0, 0, 1, 1], [], []>} : vector<1x32xf32>, vector<32x32xf32>, vector<1x32xf32> -> vector<1x32xf32>
    %214 = arith.addf %212, %213 : vector<1x32xf32>
    %215 = math.tanh %214 : vector<1x32xf32>
    %c22_177 = arith.constant 22 : index
    %c0_178 = arith.constant 0 : index
    %216 = vector.load %arg10[%c22_177, %c0_178] : memref<49x32xf32, #tpu.memory_space<vmem>>, vector<1x32xf32>
    tpu.vector_store %arg10[%c22_177, %c0_178], %215 {strides = array<i32>} : memref<49x32xf32, #tpu.memory_space<vmem>>, vector<1x32xf32>,
    %c23 = arith.constant 23 : index
    %c0_179 = arith.constant 0 : index
    %217 = vector.load %arg9[%c23, %c0_179] : memref<49x32xf32, #tpu.memory_space<vmem>>, vector<1x32xf32>
    %cst_180 = arith.constant dense<0.000000e+00> : vector<1x32xf32>
    %218 = tpu.matmul %215, %31, %cst_180 {dimension_numbers = #tpu.dot_dimension_numbers<[1], [0], [0], [1], [0, 0, 1, 1], [], []>} : vector<1x32xf32>, vector<32x32xf32>, vector<1x32xf32> -> vector<1x32xf32>
    %219 = arith.addf %217, %218 : vector<1x32xf32>
    %220 = math.tanh %219 : vector<1x32xf32>
    %c23_181 = arith.constant 23 : index
    %c0_182 = arith.constant 0 : index
    %221 = vector.load %arg10[%c23_181, %c0_182] : memref<49x32xf32, #tpu.memory_space<vmem>>, vector<1x32xf32>
    tpu.vector_store %arg10[%c23_181, %c0_182], %220 {strides = array<i32>} : memref<49x32xf32, #tpu.memory_space<vmem>>, vector<1x32xf32>,
    %c24 = arith.constant 24 : index
    %c0_183 = arith.constant 0 : index
    %222 = vector.load %arg9[%c24, %c0_183] : memref<49x32xf32, #tpu.memory_space<vmem>>, vector<1x32xf32>
    %cst_184 = arith.constant dense<0.000000e+00> : vector<1x32xf32>
    %223 = tpu.matmul %220, %31, %cst_184 {dimension_numbers = #tpu.dot_dimension_numbers<[1], [0], [0], [1], [0, 0, 1, 1], [], []>} : vector<1x32xf32>, vector<32x32xf32>, vector<1x32xf32> -> vector<1x32xf32>
    %224 = arith.addf %222, %223 : vector<1x32xf32>
    %225 = math.tanh %224 : vector<1x32xf32>
    %c24_185 = arith.constant 24 : index
    %c0_186 = arith.constant 0 : index
    %226 = vector.load %arg10[%c24_185, %c0_186] : memref<49x32xf32, #tpu.memory_space<vmem>>, vector<1x32xf32>
    tpu.vector_store %arg10[%c24_185, %c0_186], %225 {strides = array<i32>} : memref<49x32xf32, #tpu.memory_space<vmem>>, vector<1x32xf32>,
    %c25 = arith.constant 25 : index
    %c0_187 = arith.constant 0 : index
    %227 = vector.load %arg9[%c25, %c0_187] : memref<49x32xf32, #tpu.memory_space<vmem>>, vector<1x32xf32>
    %cst_188 = arith.constant dense<0.000000e+00> : vector<1x32xf32>
    %228 = tpu.matmul %225, %31, %cst_188 {dimension_numbers = #tpu.dot_dimension_numbers<[1], [0], [0], [1], [0, 0, 1, 1], [], []>} : vector<1x32xf32>, vector<32x32xf32>, vector<1x32xf32> -> vector<1x32xf32>
    %229 = arith.addf %227, %228 : vector<1x32xf32>
    %230 = math.tanh %229 : vector<1x32xf32>
    %c25_189 = arith.constant 25 : index
    %c0_190 = arith.constant 0 : index
    %231 = vector.load %arg10[%c25_189, %c0_190] : memref<49x32xf32, #tpu.memory_space<vmem>>, vector<1x32xf32>
    tpu.vector_store %arg10[%c25_189, %c0_190], %230 {strides = array<i32>} : memref<49x32xf32, #tpu.memory_space<vmem>>, vector<1x32xf32>,
    %c26 = arith.constant 26 : index
    %c0_191 = arith.constant 0 : index
    %232 = vector.load %arg9[%c26, %c0_191] : memref<49x32xf32, #tpu.memory_space<vmem>>, vector<1x32xf32>
    %cst_192 = arith.constant dense<0.000000e+00> : vector<1x32xf32>
    %233 = tpu.matmul %230, %31, %cst_192 {dimension_numbers = #tpu.dot_dimension_numbers<[1], [0], [0], [1], [0, 0, 1, 1], [], []>} : vector<1x32xf32>, vector<32x32xf32>, vector<1x32xf32> -> vector<1x32xf32>
    %234 = arith.addf %232, %233 : vector<1x32xf32>
    %235 = math.tanh %234 : vector<1x32xf32>
    %c26_193 = arith.constant 26 : index
    %c0_194 = arith.constant 0 : index
    %236 = vector.load %arg10[%c26_193, %c0_194] : memref<49x32xf32, #tpu.memory_space<vmem>>, vector<1x32xf32>
    tpu.vector_store %arg10[%c26_193, %c0_194], %235 {strides = array<i32>} : memref<49x32xf32, #tpu.memory_space<vmem>>, vector<1x32xf32>,
    %c27 = arith.constant 27 : index
    %c0_195 = arith.constant 0 : index
    %237 = vector.load %arg9[%c27, %c0_195] : memref<49x32xf32, #tpu.memory_space<vmem>>, vector<1x32xf32>
    %cst_196 = arith.constant dense<0.000000e+00> : vector<1x32xf32>
    %238 = tpu.matmul %235, %31, %cst_196 {dimension_numbers = #tpu.dot_dimension_numbers<[1], [0], [0], [1], [0, 0, 1, 1], [], []>} : vector<1x32xf32>, vector<32x32xf32>, vector<1x32xf32> -> vector<1x32xf32>
    %239 = arith.addf %237, %238 : vector<1x32xf32>
    %240 = math.tanh %239 : vector<1x32xf32>
    %c27_197 = arith.constant 27 : index
    %c0_198 = arith.constant 0 : index
    %241 = vector.load %arg10[%c27_197, %c0_198] : memref<49x32xf32, #tpu.memory_space<vmem>>, vector<1x32xf32>
    tpu.vector_store %arg10[%c27_197, %c0_198], %240 {strides = array<i32>} : memref<49x32xf32, #tpu.memory_space<vmem>>, vector<1x32xf32>,
    %c28 = arith.constant 28 : index
    %c0_199 = arith.constant 0 : index
    %242 = vector.load %arg9[%c28, %c0_199] : memref<49x32xf32, #tpu.memory_space<vmem>>, vector<1x32xf32>
    %cst_200 = arith.constant dense<0.000000e+00> : vector<1x32xf32>
    %243 = tpu.matmul %240, %31, %cst_200 {dimension_numbers = #tpu.dot_dimension_numbers<[1], [0], [0], [1], [0, 0, 1, 1], [], []>} : vector<1x32xf32>, vector<32x32xf32>, vector<1x32xf32> -> vector<1x32xf32>
    %244 = arith.addf %242, %243 : vector<1x32xf32>
    %245 = math.tanh %244 : vector<1x32xf32>
    %c28_201 = arith.constant 28 : index
    %c0_202 = arith.constant 0 : index
    %246 = vector.load %arg10[%c28_201, %c0_202] : memref<49x32xf32, #tpu.memory_space<vmem>>, vector<1x32xf32>
    tpu.vector_store %arg10[%c28_201, %c0_202], %245 {strides = array<i32>} : memref<49x32xf32, #tpu.memory_space<vmem>>, vector<1x32xf32>,
    %c29 = arith.constant 29 : index
    %c0_203 = arith.constant 0 : index
    %247 = vector.load %arg9[%c29, %c0_203] : memref<49x32xf32, #tpu.memory_space<vmem>>, vector<1x32xf32>
    %cst_204 = arith.constant dense<0.000000e+00> : vector<1x32xf32>
    %248 = tpu.matmul %245, %31, %cst_204 {dimension_numbers = #tpu.dot_dimension_numbers<[1], [0], [0], [1], [0, 0, 1, 1], [], []>} : vector<1x32xf32>, vector<32x32xf32>, vector<1x32xf32> -> vector<1x32xf32>
    %249 = arith.addf %247, %248 : vector<1x32xf32>
    %250 = math.tanh %249 : vector<1x32xf32>
    %c29_205 = arith.constant 29 : index
    %c0_206 = arith.constant 0 : index
    %251 = vector.load %arg10[%c29_205, %c0_206] : memref<49x32xf32, #tpu.memory_space<vmem>>, vector<1x32xf32>
    tpu.vector_store %arg10[%c29_205, %c0_206], %250 {strides = array<i32>} : memref<49x32xf32, #tpu.memory_space<vmem>>, vector<1x32xf32>,
    %c30 = arith.constant 30 : index
    %c0_207 = arith.constant 0 : index
    %252 = vector.load %arg9[%c30, %c0_207] : memref<49x32xf32, #tpu.memory_space<vmem>>, vector<1x32xf32>
    %cst_208 = arith.constant dense<0.000000e+00> : vector<1x32xf32>
    %253 = tpu.matmul %250, %31, %cst_208 {dimension_numbers = #tpu.dot_dimension_numbers<[1], [0], [0], [1], [0, 0, 1, 1], [], []>} : vector<1x32xf32>, vector<32x32xf32>, vector<1x32xf32> -> vector<1x32xf32>
    %254 = arith.addf %252, %253 : vector<1x32xf32>
    %255 = math.tanh %254 : vector<1x32xf32>
    %c30_209 = arith.constant 30 : index
    %c0_210 = arith.constant 0 : index
    %256 = vector.load %arg10[%c30_209, %c0_210] : memref<49x32xf32, #tpu.memory_space<vmem>>, vector<1x32xf32>
    tpu.vector_store %arg10[%c30_209, %c0_210], %255 {strides = array<i32>} : memref<49x32xf32, #tpu.memory_space<vmem>>, vector<1x32xf32>,
    %c31 = arith.constant 31 : index
    %c0_211 = arith.constant 0 : index
    %257 = vector.load %arg9[%c31, %c0_211] : memref<49x32xf32, #tpu.memory_space<vmem>>, vector<1x32xf32>
    %cst_212 = arith.constant dense<0.000000e+00> : vector<1x32xf32>
    %258 = tpu.matmul %255, %31, %cst_212 {dimension_numbers = #tpu.dot_dimension_numbers<[1], [0], [0], [1], [0, 0, 1, 1], [], []>} : vector<1x32xf32>, vector<32x32xf32>, vector<1x32xf32> -> vector<1x32xf32>
    %259 = arith.addf %257, %258 : vector<1x32xf32>
    %260 = math.tanh %259 : vector<1x32xf32>
    %c31_213 = arith.constant 31 : index
    %c0_214 = arith.constant 0 : index
    %261 = vector.load %arg10[%c31_213, %c0_214] : memref<49x32xf32, #tpu.memory_space<vmem>>, vector<1x32xf32>
    tpu.vector_store %arg10[%c31_213, %c0_214], %260 {strides = array<i32>} : memref<49x32xf32, #tpu.memory_space<vmem>>, vector<1x32xf32>,
    %c32_215 = arith.constant 32 : index
    %c0_216 = arith.constant 0 : index
    %262 = vector.load %arg9[%c32_215, %c0_216] : memref<49x32xf32, #tpu.memory_space<vmem>>, vector<1x32xf32>
    %cst_217 = arith.constant dense<0.000000e+00> : vector<1x32xf32>
    %263 = tpu.matmul %260, %31, %cst_217 {dimension_numbers = #tpu.dot_dimension_numbers<[1], [0], [0], [1], [0, 0, 1, 1], [], []>} : vector<1x32xf32>, vector<32x32xf32>, vector<1x32xf32> -> vector<1x32xf32>
    %264 = arith.addf %262, %263 : vector<1x32xf32>
    %265 = math.tanh %264 : vector<1x32xf32>
    %c32_218 = arith.constant 32 : index
    %c0_219 = arith.constant 0 : index
    %266 = vector.load %arg10[%c32_218, %c0_219] : memref<49x32xf32, #tpu.memory_space<vmem>>, vector<1x32xf32>
    tpu.vector_store %arg10[%c32_218, %c0_219], %265 {strides = array<i32>} : memref<49x32xf32, #tpu.memory_space<vmem>>, vector<1x32xf32>,
    %c33 = arith.constant 33 : index
    %c0_220 = arith.constant 0 : index
    %267 = vector.load %arg9[%c33, %c0_220] : memref<49x32xf32, #tpu.memory_space<vmem>>, vector<1x32xf32>
    %cst_221 = arith.constant dense<0.000000e+00> : vector<1x32xf32>
    %268 = tpu.matmul %265, %31, %cst_221 {dimension_numbers = #tpu.dot_dimension_numbers<[1], [0], [0], [1], [0, 0, 1, 1], [], []>} : vector<1x32xf32>, vector<32x32xf32>, vector<1x32xf32> -> vector<1x32xf32>
    %269 = arith.addf %267, %268 : vector<1x32xf32>
    %270 = math.tanh %269 : vector<1x32xf32>
    %c33_222 = arith.constant 33 : index
    %c0_223 = arith.constant 0 : index
    %271 = vector.load %arg10[%c33_222, %c0_223] : memref<49x32xf32, #tpu.memory_space<vmem>>, vector<1x32xf32>
    tpu.vector_store %arg10[%c33_222, %c0_223], %270 {strides = array<i32>} : memref<49x32xf32, #tpu.memory_space<vmem>>, vector<1x32xf32>,
    %c34 = arith.constant 34 : index
    %c0_224 = arith.constant 0 : index
    %272 = vector.load %arg9[%c34, %c0_224] : memref<49x32xf32, #tpu.memory_space<vmem>>, vector<1x32xf32>
    %cst_225 = arith.constant dense<0.000000e+00> : vector<1x32xf32>
    %273 = tpu.matmul %270, %31, %cst_225 {dimension_numbers = #tpu.dot_dimension_numbers<[1], [0], [0], [1], [0, 0, 1, 1], [], []>} : vector<1x32xf32>, vector<32x32xf32>, vector<1x32xf32> -> vector<1x32xf32>
    %274 = arith.addf %272, %273 : vector<1x32xf32>
    %275 = math.tanh %274 : vector<1x32xf32>
    %c34_226 = arith.constant 34 : index
    %c0_227 = arith.constant 0 : index
    %276 = vector.load %arg10[%c34_226, %c0_227] : memref<49x32xf32, #tpu.memory_space<vmem>>, vector<1x32xf32>
    tpu.vector_store %arg10[%c34_226, %c0_227], %275 {strides = array<i32>} : memref<49x32xf32, #tpu.memory_space<vmem>>, vector<1x32xf32>,
    %c35 = arith.constant 35 : index
    %c0_228 = arith.constant 0 : index
    %277 = vector.load %arg9[%c35, %c0_228] : memref<49x32xf32, #tpu.memory_space<vmem>>, vector<1x32xf32>
    %cst_229 = arith.constant dense<0.000000e+00> : vector<1x32xf32>
    %278 = tpu.matmul %275, %31, %cst_229 {dimension_numbers = #tpu.dot_dimension_numbers<[1], [0], [0], [1], [0, 0, 1, 1], [], []>} : vector<1x32xf32>, vector<32x32xf32>, vector<1x32xf32> -> vector<1x32xf32>
    %279 = arith.addf %277, %278 : vector<1x32xf32>
    %280 = math.tanh %279 : vector<1x32xf32>
    %c35_230 = arith.constant 35 : index
    %c0_231 = arith.constant 0 : index
    %281 = vector.load %arg10[%c35_230, %c0_231] : memref<49x32xf32, #tpu.memory_space<vmem>>, vector<1x32xf32>
    tpu.vector_store %arg10[%c35_230, %c0_231], %280 {strides = array<i32>} : memref<49x32xf32, #tpu.memory_space<vmem>>, vector<1x32xf32>,
    %c36 = arith.constant 36 : index
    %c0_232 = arith.constant 0 : index
    %282 = vector.load %arg9[%c36, %c0_232] : memref<49x32xf32, #tpu.memory_space<vmem>>, vector<1x32xf32>
    %cst_233 = arith.constant dense<0.000000e+00> : vector<1x32xf32>
    %283 = tpu.matmul %280, %31, %cst_233 {dimension_numbers = #tpu.dot_dimension_numbers<[1], [0], [0], [1], [0, 0, 1, 1], [], []>} : vector<1x32xf32>, vector<32x32xf32>, vector<1x32xf32> -> vector<1x32xf32>
    %284 = arith.addf %282, %283 : vector<1x32xf32>
    %285 = math.tanh %284 : vector<1x32xf32>
    %c36_234 = arith.constant 36 : index
    %c0_235 = arith.constant 0 : index
    %286 = vector.load %arg10[%c36_234, %c0_235] : memref<49x32xf32, #tpu.memory_space<vmem>>, vector<1x32xf32>
    tpu.vector_store %arg10[%c36_234, %c0_235], %285 {strides = array<i32>} : memref<49x32xf32, #tpu.memory_space<vmem>>, vector<1x32xf32>,
    %c37 = arith.constant 37 : index
    %c0_236 = arith.constant 0 : index
    %287 = vector.load %arg9[%c37, %c0_236] : memref<49x32xf32, #tpu.memory_space<vmem>>, vector<1x32xf32>
    %cst_237 = arith.constant dense<0.000000e+00> : vector<1x32xf32>
    %288 = tpu.matmul %285, %31, %cst_237 {dimension_numbers = #tpu.dot_dimension_numbers<[1], [0], [0], [1], [0, 0, 1, 1], [], []>} : vector<1x32xf32>, vector<32x32xf32>, vector<1x32xf32> -> vector<1x32xf32>
    %289 = arith.addf %287, %288 : vector<1x32xf32>
    %290 = math.tanh %289 : vector<1x32xf32>
    %c37_238 = arith.constant 37 : index
    %c0_239 = arith.constant 0 : index
    %291 = vector.load %arg10[%c37_238, %c0_239] : memref<49x32xf32, #tpu.memory_space<vmem>>, vector<1x32xf32>
    tpu.vector_store %arg10[%c37_238, %c0_239], %290 {strides = array<i32>} : memref<49x32xf32, #tpu.memory_space<vmem>>, vector<1x32xf32>,
    %c38 = arith.constant 38 : index
    %c0_240 = arith.constant 0 : index
    %292 = vector.load %arg9[%c38, %c0_240] : memref<49x32xf32, #tpu.memory_space<vmem>>, vector<1x32xf32>
    %cst_241 = arith.constant dense<0.000000e+00> : vector<1x32xf32>
    %293 = tpu.matmul %290, %31, %cst_241 {dimension_numbers = #tpu.dot_dimension_numbers<[1], [0], [0], [1], [0, 0, 1, 1], [], []>} : vector<1x32xf32>, vector<32x32xf32>, vector<1x32xf32> -> vector<1x32xf32>
    %294 = arith.addf %292, %293 : vector<1x32xf32>
    %295 = math.tanh %294 : vector<1x32xf32>
    %c38_242 = arith.constant 38 : index
    %c0_243 = arith.constant 0 : index
    %296 = vector.load %arg10[%c38_242, %c0_243] : memref<49x32xf32, #tpu.memory_space<vmem>>, vector<1x32xf32>
    tpu.vector_store %arg10[%c38_242, %c0_243], %295 {strides = array<i32>} : memref<49x32xf32, #tpu.memory_space<vmem>>, vector<1x32xf32>,
    %c39 = arith.constant 39 : index
    %c0_244 = arith.constant 0 : index
    %297 = vector.load %arg9[%c39, %c0_244] : memref<49x32xf32, #tpu.memory_space<vmem>>, vector<1x32xf32>
    %cst_245 = arith.constant dense<0.000000e+00> : vector<1x32xf32>
    %298 = tpu.matmul %295, %31, %cst_245 {dimension_numbers = #tpu.dot_dimension_numbers<[1], [0], [0], [1], [0, 0, 1, 1], [], []>} : vector<1x32xf32>, vector<32x32xf32>, vector<1x32xf32> -> vector<1x32xf32>
    %299 = arith.addf %297, %298 : vector<1x32xf32>
    %300 = math.tanh %299 : vector<1x32xf32>
    %c39_246 = arith.constant 39 : index
    %c0_247 = arith.constant 0 : index
    %301 = vector.load %arg10[%c39_246, %c0_247] : memref<49x32xf32, #tpu.memory_space<vmem>>, vector<1x32xf32>
    tpu.vector_store %arg10[%c39_246, %c0_247], %300 {strides = array<i32>} : memref<49x32xf32, #tpu.memory_space<vmem>>, vector<1x32xf32>,
    %c40 = arith.constant 40 : index
    %c0_248 = arith.constant 0 : index
    %302 = vector.load %arg9[%c40, %c0_248] : memref<49x32xf32, #tpu.memory_space<vmem>>, vector<1x32xf32>
    %cst_249 = arith.constant dense<0.000000e+00> : vector<1x32xf32>
    %303 = tpu.matmul %300, %31, %cst_249 {dimension_numbers = #tpu.dot_dimension_numbers<[1], [0], [0], [1], [0, 0, 1, 1], [], []>} : vector<1x32xf32>, vector<32x32xf32>, vector<1x32xf32> -> vector<1x32xf32>
    %304 = arith.addf %302, %303 : vector<1x32xf32>
    %305 = math.tanh %304 : vector<1x32xf32>
    %c40_250 = arith.constant 40 : index
    %c0_251 = arith.constant 0 : index
    %306 = vector.load %arg10[%c40_250, %c0_251] : memref<49x32xf32, #tpu.memory_space<vmem>>, vector<1x32xf32>
    tpu.vector_store %arg10[%c40_250, %c0_251], %305 {strides = array<i32>} : memref<49x32xf32, #tpu.memory_space<vmem>>, vector<1x32xf32>,
    %c41 = arith.constant 41 : index
    %c0_252 = arith.constant 0 : index
    %307 = vector.load %arg9[%c41, %c0_252] : memref<49x32xf32, #tpu.memory_space<vmem>>, vector<1x32xf32>
    %cst_253 = arith.constant dense<0.000000e+00> : vector<1x32xf32>
    %308 = tpu.matmul %305, %31, %cst_253 {dimension_numbers = #tpu.dot_dimension_numbers<[1], [0], [0], [1], [0, 0, 1, 1], [], []>} : vector<1x32xf32>, vector<32x32xf32>, vector<1x32xf32> -> vector<1x32xf32>
    %309 = arith.addf %307, %308 : vector<1x32xf32>
    %310 = math.tanh %309 : vector<1x32xf32>
    %c41_254 = arith.constant 41 : index
    %c0_255 = arith.constant 0 : index
    %311 = vector.load %arg10[%c41_254, %c0_255] : memref<49x32xf32, #tpu.memory_space<vmem>>, vector<1x32xf32>
    tpu.vector_store %arg10[%c41_254, %c0_255], %310 {strides = array<i32>} : memref<49x32xf32, #tpu.memory_space<vmem>>, vector<1x32xf32>,
    %c42 = arith.constant 42 : index
    %c0_256 = arith.constant 0 : index
    %312 = vector.load %arg9[%c42, %c0_256] : memref<49x32xf32, #tpu.memory_space<vmem>>, vector<1x32xf32>
    %cst_257 = arith.constant dense<0.000000e+00> : vector<1x32xf32>
    %313 = tpu.matmul %310, %31, %cst_257 {dimension_numbers = #tpu.dot_dimension_numbers<[1], [0], [0], [1], [0, 0, 1, 1], [], []>} : vector<1x32xf32>, vector<32x32xf32>, vector<1x32xf32> -> vector<1x32xf32>
    %314 = arith.addf %312, %313 : vector<1x32xf32>
    %315 = math.tanh %314 : vector<1x32xf32>
    %c42_258 = arith.constant 42 : index
    %c0_259 = arith.constant 0 : index
    %316 = vector.load %arg10[%c42_258, %c0_259] : memref<49x32xf32, #tpu.memory_space<vmem>>, vector<1x32xf32>
    tpu.vector_store %arg10[%c42_258, %c0_259], %315 {strides = array<i32>} : memref<49x32xf32, #tpu.memory_space<vmem>>, vector<1x32xf32>,
    %c43 = arith.constant 43 : index
    %c0_260 = arith.constant 0 : index
    %317 = vector.load %arg9[%c43, %c0_260] : memref<49x32xf32, #tpu.memory_space<vmem>>, vector<1x32xf32>
    %cst_261 = arith.constant dense<0.000000e+00> : vector<1x32xf32>
    %318 = tpu.matmul %315, %31, %cst_261 {dimension_numbers = #tpu.dot_dimension_numbers<[1], [0], [0], [1], [0, 0, 1, 1], [], []>} : vector<1x32xf32>, vector<32x32xf32>, vector<1x32xf32> -> vector<1x32xf32>
    %319 = arith.addf %317, %318 : vector<1x32xf32>
    %320 = math.tanh %319 : vector<1x32xf32>
    %c43_262 = arith.constant 43 : index
    %c0_263 = arith.constant 0 : index
    %321 = vector.load %arg10[%c43_262, %c0_263] : memref<49x32xf32, #tpu.memory_space<vmem>>, vector<1x32xf32>
    tpu.vector_store %arg10[%c43_262, %c0_263], %320 {strides = array<i32>} : memref<49x32xf32, #tpu.memory_space<vmem>>, vector<1x32xf32>,
    %c44 = arith.constant 44 : index
    %c0_264 = arith.constant 0 : index
    %322 = vector.load %arg9[%c44, %c0_264] : memref<49x32xf32, #tpu.memory_space<vmem>>, vector<1x32xf32>
    %cst_265 = arith.constant dense<0.000000e+00> : vector<1x32xf32>
    %323 = tpu.matmul %320, %31, %cst_265 {dimension_numbers = #tpu.dot_dimension_numbers<[1], [0], [0], [1], [0, 0, 1, 1], [], []>} : vector<1x32xf32>, vector<32x32xf32>, vector<1x32xf32> -> vector<1x32xf32>
    %324 = arith.addf %322, %323 : vector<1x32xf32>
    %325 = math.tanh %324 : vector<1x32xf32>
    %c44_266 = arith.constant 44 : index
    %c0_267 = arith.constant 0 : index
    %326 = vector.load %arg10[%c44_266, %c0_267] : memref<49x32xf32, #tpu.memory_space<vmem>>, vector<1x32xf32>
    tpu.vector_store %arg10[%c44_266, %c0_267], %325 {strides = array<i32>} : memref<49x32xf32, #tpu.memory_space<vmem>>, vector<1x32xf32>,
    %c45 = arith.constant 45 : index
    %c0_268 = arith.constant 0 : index
    %327 = vector.load %arg9[%c45, %c0_268] : memref<49x32xf32, #tpu.memory_space<vmem>>, vector<1x32xf32>
    %cst_269 = arith.constant dense<0.000000e+00> : vector<1x32xf32>
    %328 = tpu.matmul %325, %31, %cst_269 {dimension_numbers = #tpu.dot_dimension_numbers<[1], [0], [0], [1], [0, 0, 1, 1], [], []>} : vector<1x32xf32>, vector<32x32xf32>, vector<1x32xf32> -> vector<1x32xf32>
    %329 = arith.addf %327, %328 : vector<1x32xf32>
    %330 = math.tanh %329 : vector<1x32xf32>
    %c45_270 = arith.constant 45 : index
    %c0_271 = arith.constant 0 : index
    %331 = vector.load %arg10[%c45_270, %c0_271] : memref<49x32xf32, #tpu.memory_space<vmem>>, vector<1x32xf32>
    tpu.vector_store %arg10[%c45_270, %c0_271], %330 {strides = array<i32>} : memref<49x32xf32, #tpu.memory_space<vmem>>, vector<1x32xf32>,
    %c46 = arith.constant 46 : index
    %c0_272 = arith.constant 0 : index
    %332 = vector.load %arg9[%c46, %c0_272] : memref<49x32xf32, #tpu.memory_space<vmem>>, vector<1x32xf32>
    %cst_273 = arith.constant dense<0.000000e+00> : vector<1x32xf32>
    %333 = tpu.matmul %330, %31, %cst_273 {dimension_numbers = #tpu.dot_dimension_numbers<[1], [0], [0], [1], [0, 0, 1, 1], [], []>} : vector<1x32xf32>, vector<32x32xf32>, vector<1x32xf32> -> vector<1x32xf32>
    %334 = arith.addf %332, %333 : vector<1x32xf32>
    %335 = math.tanh %334 : vector<1x32xf32>
    %c46_274 = arith.constant 46 : index
    %c0_275 = arith.constant 0 : index
    %336 = vector.load %arg10[%c46_274, %c0_275] : memref<49x32xf32, #tpu.memory_space<vmem>>, vector<1x32xf32>
    tpu.vector_store %arg10[%c46_274, %c0_275], %335 {strides = array<i32>} : memref<49x32xf32, #tpu.memory_space<vmem>>, vector<1x32xf32>,
    %c47 = arith.constant 47 : index
    %c0_276 = arith.constant 0 : index
    %337 = vector.load %arg9[%c47, %c0_276] : memref<49x32xf32, #tpu.memory_space<vmem>>, vector<1x32xf32>
    %cst_277 = arith.constant dense<0.000000e+00> : vector<1x32xf32>
    %338 = tpu.matmul %335, %31, %cst_277 {dimension_numbers = #tpu.dot_dimension_numbers<[1], [0], [0], [1], [0, 0, 1, 1], [], []>} : vector<1x32xf32>, vector<32x32xf32>, vector<1x32xf32> -> vector<1x32xf32>
    %339 = arith.addf %337, %338 : vector<1x32xf32>
    %340 = math.tanh %339 : vector<1x32xf32>
    %c47_278 = arith.constant 47 : index
    %c0_279 = arith.constant 0 : index
    %341 = vector.load %arg10[%c47_278, %c0_279] : memref<49x32xf32, #tpu.memory_space<vmem>>, vector<1x32xf32>
    tpu.vector_store %arg10[%c47_278, %c0_279], %340 {strides = array<i32>} : memref<49x32xf32, #tpu.memory_space<vmem>>, vector<1x32xf32>,
    %c48 = arith.constant 48 : index
    %c0_280 = arith.constant 0 : index
    %342 = vector.load %arg9[%c48, %c0_280] : memref<49x32xf32, #tpu.memory_space<vmem>>, vector<1x32xf32>
    %cst_281 = arith.constant dense<0.000000e+00> : vector<1x32xf32>
    %343 = tpu.matmul %340, %31, %cst_281 {dimension_numbers = #tpu.dot_dimension_numbers<[1], [0], [0], [1], [0, 0, 1, 1], [], []>} : vector<1x32xf32>, vector<32x32xf32>, vector<1x32xf32> -> vector<1x32xf32>
    %344 = arith.addf %342, %343 : vector<1x32xf32>
    %345 = math.tanh %344 : vector<1x32xf32>
    %c48_282 = arith.constant 48 : index
    %c0_283 = arith.constant 0 : index
    %346 = vector.load %arg10[%c48_282, %c0_283] : memref<49x32xf32, #tpu.memory_space<vmem>>, vector<1x32xf32>
    tpu.vector_store %arg10[%c48_282, %c0_283], %345 {strides = array<i32>} : memref<49x32xf32, #tpu.memory_space<vmem>>, vector<1x32xf32>,
    %c0_284 = arith.constant 0 : index
    %c0_285 = arith.constant 0 : index
    %347 = vector.load %arg10[%c0_284, %c0_285] : memref<49x32xf32, #tpu.memory_space<vmem>>, vector<49x32xf32>
    %cst_286 = arith.constant dense<0.000000e+00> : vector<49x16xf32>
    %348 = tpu.matmul %347, %32, %cst_286 {dimension_numbers = #tpu.dot_dimension_numbers<[1], [0], [0], [1], [0, 0, 1, 1], [], []>} : vector<49x32xf32>, vector<32x16xf32>, vector<49x16xf32> -> vector<49x16xf32>
    %349 = vector.broadcast %29 : vector<1x16xf32> to vector<49x16xf32>
    %350 = arith.addf %348, %349 : vector<49x16xf32>
    %351 = math.tanh %350 : vector<49x16xf32>
    %c0_287 = arith.constant 0 : index
    %c0_288 = arith.constant 0 : index
    %352 = vector.load %arg6[%c0_287, %c0_288] : memref<49x16xf32, #tpu.memory_space<vmem>>, vector<49x16xf32>
    tpu.vector_store %arg6[%c0_287, %c0_288], %351 {strides = array<i32>} : memref<49x16xf32, #tpu.memory_space<vmem>>, vector<49x16xf32>,
    return
  }
}

</mosaic_0001>

<bundles_post_ra>
// kernel: captioner_forward.1
= control target key start
LH: loop header
LB: loop body
LE: loop exit
PB: predicated region body
PF: predicated region fallthrough
CT: control target
= control target key end

     0   :  { %vm725_vm0 = vcmask 31744   ;;  %v23_v0 = vlaneseq  ;;  %s5012_s25 = smov 4   ;;  %v5013_v18 = vmov 0.0   ;;  %s5014_s14 = smov 8   ;;  %s6778_s0 = inlined_call_operand.vmem [shape: f32[256,4], index: 0, kind: input, shape index: {}]   ;;  %s6779_s1 = inlined_call_operand.vmem [shape: f32[3,12,32], index: 1, kind: input, shape index: {}]   ;;  %s6780_s4 = inlined_call_operand.vmem [shape: f32[8,64], index: 4, kind: input, shape index: {}]   ;;  %s6781_s2 = inlined_call_operand.vmem [shape: f32[3,96,64], index: 2, kind: input, shape index: {}]   ;;  %s6782_s3 = inlined_call_operand.vmem [shape: f32[49,256], index: 3, kind: input, shape index: {}]   ;;  %s6783_s5 = inlined_call_operand.vmem [shape: f32[128,32], index: 5, kind: input, shape index: {}]   ;;  %s6784_s6 = inlined_call_operand.vmem [shape: f32[49,16], index: 6, kind: output, shape index: {}]  }
   0x1   :  { %v681_v1 = vld [vmem:[%s6778_s0 + $0xe0] sm:$0xff]  ;;  %v5058_v2 = vld [vmem:[%s6778_s0 + $0xd0] sm:$0xff]  ;;  %v680_v16 = vld [vmem:[%s6778_s0 + $0xd8] sm:$0xff]  ;;  %s5016_s7 = smov 64  }
   0x2   :  { %846 = vrot.lane.b32.xlu1 %v681_v1, %s5012_s25  ;;  %754 = vst.msk [vmem:[#allocation2 + $0xf1] sm:$0xff] %vm725_vm0, %v681_v1  ;;  %842 = vrot.lane.b32.xlu0 %v5058_v2, %s5012_s25  ;;  %v5064_v3 = vshrl.u32 %v23_v0, 7  ;;  %v5071_v4 = vld [vmem:[%s6778_s0] sm:$0xff]  ;;  %v5082_v9 = vld [vmem:[%s6778_s0 + $0x10] sm:$0xff] }
   0x3   :  { %752 = vst.msk [vmem:[#allocation2 + $0xe1] sm:$0xff] %vm725_vm0, %v5058_v2  ;;  %v5090_v11 = vld [vmem:[%s6778_s0 + $0x20] sm:$0xff]  ;;  %v682_v21 = vld [vmem:[%s6778_s0 + $0xe8] sm:$0xff]  ;;  %v656_v30 = vld [vmem:[%s6778_s0 + $0x18] sm:$0xff] }
   0x4   :  { %v51_v5 = vadd.s32 216, %v5064_v3  ;;  %v53_v6 = vadd.s32 232, %v5064_v3  ;;  %726 = vst.msk [vmem:[#allocation2 + $0x11] sm:$0xff] %vm725_vm0, %v5071_v4  ;;  %v25_v7 = vadd.s32 8, %v5064_v3  ;;  %v52_v8 = vadd.s32 224, %v5064_v3  ;;  %v654_v23 = vld [vmem:[%s6778_s0 + $0x8] sm:$0xff] }
   0x5   :  { %728 = vst.msk [vmem:[#allocation2 + $0x21] sm:$0xff] %vm725_vm0, %v5082_v9  ;;  %v27_v10 = vadd.s32 24, %v5064_v3  ;;  %v29_v32 = vadd.s32 40, %v5064_v3  ;;  %v60_v33 = vand.u32 15, %v5064_v3  ;;  %v26_v35 = vadd.s32 16, %v5064_v3  ;;  %v5139_v36 = vld [vmem:[%s6778_s0 + $0x30] sm:$0xff] }
   0x6   :  { %v249_v12 = vand.u32 15, %v51_v5  ;;  %v263_v13 = vand.u32 15, %v53_v6  ;;  %v67_v14 = vand.u32 15, %v25_v7  ;;  %v256_v15 = vand.u32 15, %v52_v8  ;;  %730 = vst.msk [vmem:[#allocation2 + $0x31] sm:$0xff] %vm725_vm0, %v5090_v11  ;;  %v658_v38 = vld [vmem:[%s6778_s0 + $0x28] sm:$0xff] }
   0x7   :  { %v81_v17 = vand.u32 15, %v27_v10  ;;  %v95_v34 = vand.u32 15, %v29_v32  ;;  %732 = vst.msk [vmem:[#allocation2 + $0x41] sm:$0xff] %vm725_vm0, %v5139_v36  ;;  %v31_v39 = vadd.s32 56, %v5064_v3  ;;  %vm440_vm7 = vcmp.ne.s32.totalorder %v60_v33, 0  ;;  %v660_v45 = vld [vmem:[%s6778_s0 + $0x38] sm:$0xff] }
   0x8   :  { %vm563_vm1 = vcmp.ne.s32.totalorder %v249_v12, 15  ;;  %vm565_vm2 = vcmp.ne.s32.totalorder %v263_v13, 15  ;;  %vm537_vm3 = vcmp.ne.s32.totalorder %v67_v14, 15  ;;  %vm468_vm4 = vcmp.ne.s32.totalorder %v256_v15, 0  ;;  %v5175_v49 = vld [vmem:[%s6778_s0 + $0x40] sm:$0xff]  ;;  %v5191_v54 = vld [vmem:[%s6778_s0 + $0x50] sm:$0xff] }
   0x9   :  { %v5098_v19 = vsel %vm563_vm1, 1.0, %v5013_v18  ;;  %v5101_v20 = vsel %vm565_vm2, 1.0, %v5013_v18  ;;  %v5107_v22 = vsel %vm537_vm3, 1.0, %v5013_v18  ;;  %v5113_v24 = vsel %vm468_vm4, 1.0, %v5013_v18  ;;  %734 = vst.msk [vmem:[#allocation2 + $0x51] sm:$0xff] %vm725_vm0, %v5175_v49  ;;  %v662_v59 = vld [vmem:[%s6778_s0 + $0x48] sm:$0xff] }
   0xa   :  { %1037 = vrot.lane.b32.xlu1 %v680_v16, %s5014_s14  ;;  %v720_v25 = vmul.f32 %v5098_v19, %v680_v16  ;;  %844 = vrot.lane.b32.xlu0 %v680_v16, %s5012_s25  ;;  %v722_v26 = vmul.f32 %v5101_v20, %v682_v21  ;;  %v694_v27 = vmul.f32 %v5107_v22, %v654_v23  ;;  %vm539_vm5 = vcmp.ne.s32.totalorder %v81_v17, 15  ;;  %v5234_v7 = vld [vmem:[%s6778_s0 + $0x60] sm:$0xff]  ;;  %v666_v13 = vld [vmem:[%s6778_s0 + $0x68] sm:$0xff] }
   0xb   :  { %v947_v28 = vmul.f32 %v5113_v24, %v681_v1  ;;  %v5123_v29 = vsel %vm539_vm5, 1.0, %v5013_v18  ;;  %vm541_vm6 = vcmp.ne.s32.totalorder %v95_v34, 15  ;;  %v74_v41 = vand.u32 15, %v26_v35  ;;  %736 = vst.msk [vmem:[#allocation2 + $0x61] sm:$0xff] %vm725_vm0, %v5191_v54  ;;  %v5259_v17 = vld [vmem:[%s6778_s0 + $0x70] sm:$0xff]  ;;  %v5292_v33 = vld [vmem:[%s6778_s0 + $0x78] sm:$0xff] }
   0xc   :  { %753 = vst.msk [vmem:[#allocation2 + $0xe9] sm:$0xff] %vm725_vm0, %v720_v25  ;;  %v696_v31 = vmul.f32 %v5123_v29, %v656_v30  ;;  %v5145_v37 = vsel %vm541_vm6, 1.0, %v5013_v18  ;;  %v109_v42 = vand.u32 15, %v31_v39  ;;  %v5157_v43 = vsel %vm440_vm7, 1.0, %v5013_v18 }
   0xd   :  { %755 = vst.msk [vmem:[#allocation2 + $0xf9] sm:$0xff] %vm725_vm0, %v722_v26  ;;  %1039 = vrot.lane.b32.xlu2 %v947_v28, %s5014_s14  ;;  %v698_v40 = vmul.f32 %v5145_v37, %v658_v38  ;;  %vm442_vm9 = vcmp.ne.s32.totalorder %v74_v41, 0  ;;  %v28_v46 = vadd.s32 32, %v5064_v3  ;;  %v919_v48 = vmul.f32 %v5157_v43, %v5071_v4 }
   0xe   :  { %727 = vst.msk [vmem:[#allocation2 + $0x19] sm:$0xff] %vm725_vm0, %v694_v27  ;;  %vm543_vm8 = vcmp.ne.s32.totalorder %v109_v42, 15  ;;  %v5178_v50 = vsel %vm442_vm9, 1.0, %v5013_v18  ;;  %v33_v53 = vadd.s32 72, %v5064_v3  ;;  %v35_v61 = vadd.s32 88, %v5064_v3  ;;  %v5275_v27 = vld [vmem:[%s6778_s0 + $0x80] sm:$0xff] }
   0xf   :  { %729 = vst.msk [vmem:[#allocation2 + $0x29] sm:$0xff] %vm725_vm0, %v696_v31  ;;  %v5160_v44 = vsel %vm543_vm8, 1.0, %v5013_v18  ;;  %v88_v51 = vand.u32 15, %v28_v46  ;;  %v921_v52 = vmul.f32 %v5178_v50, %v5082_v9  ;;  %v30_v62 = vadd.s32 48, %v5064_v3 }
  0x10   :  { %731 = vst.msk [vmem:[#allocation2 + $0x39] sm:$0xff] %vm725_vm0, %v698_v40  ;;  %v700_v47 = vmul.f32 %v5160_v44, %v660_v45  ;;  %v123_v56 = vand.u32 15, %v33_v53  ;;  %v137_v63 = vand.u32 15, %v35_v61  ;;  %v32_v5 = vadd.s32 64, %v5064_v3 }
  0x11   :  { %vm444_vm10 = vcmp.ne.s32.totalorder %v88_v51, 0  ;;  %v102_v0 = vand.u32 15, %v30_v62  ;;  %v37_v8 = vadd.s32 104, %v5064_v3  ;;  %738 = vst.msk [vmem:[#allocation2 + $0x71] sm:$0xff] %vm725_vm0, %v5234_v7  ;;  %v34_v14 = vadd.s32 80, %v5064_v3  ;;  %v5331_v51 = vld [vmem:[%s6778_s0 + $0x90] sm:$0xff] }
  0x12   :  { %1041 = vrot.lane.b32.xlu0 %v682_v21, %s5014_s14  ;;  %790 = vrot.lane.b32.xlu1 %v5071_v4, %s5012_s25  ;;  %733 = vst.msk [vmem:[#allocation2 + $0x49] sm:$0xff] %vm725_vm0, %v700_v47  ;;  %v5194_v55 = vsel %vm444_vm10, 1.0, %v5013_v18  ;;  %vm545_vm11 = vcmp.ne.s32.totalorder %v123_v56, 15  ;;  %vm547_vm12 = vcmp.ne.s32.totalorder %v137_v63, 15  ;;  %v5222_v4 = vld [vmem:[%s6778_s0 + $0x58] sm:$0xff]  ;;  %v39_v26 = vadd.s32 120, %v5064_v3 }
  0x13   :  { %v923_v57 = vmul.f32 %v5194_v55, %v5090_v11  ;;  %v5203_v58 = vsel %vm545_vm11, 1.0, %v5013_v18  ;;  %v5217_v1 = vsel %vm547_vm12, 1.0, %v5013_v18  ;;  %vm446_vm13 = vcmp.ne.s32.totalorder %v102_v0, 0  ;;  %740 = vst.msk [vmem:[#allocation2 + $0x81] sm:$0xff] %vm725_vm0, %v5259_v17  ;;  %v5358_v63 = vld [vmem:[%s6778_s0 + $0x98] sm:$0xff] }
  0x14   :  { %v702_v60 = vmul.f32 %v5203_v58, %v662_v59  ;;  %v704_v6 = vmul.f32 %v5217_v1, %v5222_v4  ;;  %v151_v10 = vand.u32 15, %v37_v8  ;;  %742 = vst.msk [vmem:[#allocation2 + $0x91] sm:$0xff] %vm725_vm0, %v5275_v27  ;;  %v41_v35 = vadd.s32 136, %v5064_v3 }
  0x15   :  { %848 = vrot.lane.b32.xlu2 %v682_v21, %s5012_s25  ;;  %v49_v39 = vadd.s32 200, %v5064_v3  ;;  %v38_v46 = vadd.s32 112, %v5064_v3  ;;  %744 = vst.msk [vmem:[#allocation2 + $0xa1] sm:$0xff] %vm725_vm0, %v5331_v51  ;;  %v43_v56 = vadd.s32 152, %v5064_v3  ;;  %vm1247_vm9 = vcmask 1043456  }
  0x16   :  { %735 = vst.msk [vmem:[#allocation2 + $0x59] sm:$0xff] %vm725_vm0, %v702_v60  ;;  %vm549_vm14 = vcmp.ne.s32.totalorder %v151_v10, 15  ;;  %v45_v8 = vadd.s32 168, %v5064_v3  ;;  %vm688_vm10 = vcmask 90112   ;;  %vm685_vm11 = vcmask 97280  }
  0x17   :  { %737 = vst.msk [vmem:[#allocation2 + $0x69] sm:$0xff] %vm725_vm0, %v704_v6  ;;  %v5244_v12 = vsel %vm549_vm14, 1.0, %v5013_v18  ;;  %v235_v40 = vand.u32 15, %v49_v39  ;;  %v158_v53 = vand.u32 15, %v38_v46  ;;  %v5369_v6 = vld [vmem:[%s6778_s0 + $0xa0] sm:$0xff]  ;;  %v5453_v46 = vld [vmem:[%s6778_s0 + $0xb8] sm:$0xff] }
  0x18   :  { %v706_v15 = vmul.f32 %v5244_v12, %v666_v13  ;;  %746 = vst.msk [vmem:[#allocation2 + $0xb1] sm:$0xff] %vm725_vm0, %v5369_v6  ;;  %v207_v10 = vand.u32 15, %v45_v8  ;;  %v5496_v8 = vld [vmem:[%s6778_s0 + $0xf0] sm:$0xff] }
  0x19   :  { %vm561_vm4 = vcmp.ne.s32.totalorder %v235_v40, 15  ;;  %vm454_vm6 = vcmp.ne.s32.totalorder %v158_v53, 0  ;;  %689 = vst.msk [vmem:[#allocation2 + $0x10] sm:$0x1] %vm688_vm10, %v5013_v18 }
  0x1a   :  { %792 = vrot.lane.b32.xlu0 %v654_v23, %s5012_s25  ;;  %985 = vrot.lane.b32.xlu1 %v654_v23, %s5014_s14  ;;  %739 = vst.msk [vmem:[#allocation2 + $0x79] sm:$0xff] %vm725_vm0, %v706_v15  ;;  %v130_v23 = vand.u32 15, %v34_v14  ;;  %v5350_v61 = vsel %vm454_vm6, 1.0, %v5013_v18  ;;  %vm557_vm12 = vcmp.ne.s32.totalorder %v207_v10, 15 }
  0x1b   :  { %692 = vst.msk [vmem:[#allocation2 + $0x11f] sm:$0x1] %vm688_vm10, %v5013_v18  ;;  %vm2031_vm10 = vcmask 523520  }
  0x1c   :  { %vm450_vm1 = vcmp.ne.s32.totalorder %v130_v23, 0  ;;  %687 = vst.msk [vmem:[#allocation2 + $0x8] sm:$0xff] %vm685_vm11, %v5013_v18 }
  0x1d   :  { %983 = vrot.lane.b32.xlu2 %v919_v48, %s5014_s14  ;;  %v5278_v28 = vsel %vm450_vm1, 1.0, %v5013_v18  ;;  %v5316_v48 = vsel %vm561_vm4, 1.0, %v5013_v18  ;;  %686 = vst.msk [vmem:[#allocation2] sm:$0xff] %vm685_vm11, %v5013_v18 }
  0x1e   :  { %v929_v31 = vmul.f32 %v5278_v28, %v5191_v54  ;;  %690 = vst.msk [vmem:[#allocation2 + $0x10f] sm:$0xff] %vm685_vm11, %v5013_v18 }
  0x1f   :  { %691 = vst.msk [vmem:[#allocation2 + $0x117] sm:$0xff] %vm685_vm11, %v5013_v18 }
  0x20   :  { %756 = vst.msk [vmem:[#allocation2 + $0x101] sm:$0xff] %vm725_vm0, %v5496_v8 }
  0x22   :  { %987 = vrot.lane.b32.xlu0 %v921_v52, %s5014_s14  ;;  %796 = vrot.lane.b32.xlu1 %v656_v30, %s5012_s25 }
  0x25   :  { %794 = vrot.lane.b32.xlu2 %v5082_v9, %s5012_s25  ;;  %v116_v9 = vand.u32 15, %v32_v5  ;;  %v933_v5 = vmul.f32 %v5350_v61, %v5259_v17 }
  0x27   :  { %vm448_vm15 = vcmp.ne.s32.totalorder %v116_v9, 0 }
  0x28   :  { %v5262_v21 = vsel %vm448_vm15, 1.0, %v5013_v18 }
  0x29   :  { %v927_v25 = vmul.f32 %v5262_v21, %v5175_v49 }
  0x2a   :  { %798 = vrot.lane.b32.xlu0 %v5090_v11, %s5012_s25  ;;  %991 = vrot.lane.b32.xlu1 %v923_v57, %s5014_s14  ;;  %v5241_v11 = vsel %vm446_vm13, 1.0, %v5013_v18  ;;  %v40_v57 = vadd.s32 128, %v5064_v3  ;;  %vm886_vm13 = vcmask 64544  }
  0x2b   :  { %v925_v16 = vmul.f32 %v5241_v11, %v5139_v36 }
  0x2c   :  { %v172_v0 = vand.u32 15, %v40_v57  ;;  %v46_v57 = vadd.s32 176, %v5064_v3 }
  0x2d   :  { %989 = vrot.lane.b32.xlu2 %v656_v30, %s5014_s14  ;;  %v165_v30 = vand.u32 15, %v39_v26  ;;  %v42_v26 = vadd.s32 144, %v5064_v3 }
  0x2e   :  { %vm456_vm8 = vcmp.ne.s32.totalorder %v172_v0, 0 }
  0x2f   :  { %vm551_vm2 = vcmp.ne.s32.totalorder %v165_v30, 15  ;;  %v5381_v9 = vsel %vm456_vm8, 1.0, %v5013_v18  ;;  %v186_v30 = vand.u32 15, %v42_v26  ;;  %vm1830_vm8 = vcmask 785408  }
  0x30   :  { %v5287_v32 = vsel %vm551_vm2, 1.0, %v5013_v18  ;;  %v935_v14 = vmul.f32 %v5381_v9, %v5275_v27  ;;  %vm1079_vm2 = vcmask 97344   ;;  %1832 = vst.msk [vmem:[#allocation3 + $0x8] sm:$0xff] %vm1830_vm8, %v5013_v18 }
  0x31   :  { %v708_v34 = vmul.f32 %v5287_v32, %v5292_v33  ;;  %vm458_vm14 = vcmp.ne.s32.totalorder %v186_v30, 0  ;;  %1831 = vst.msk [vmem:[#allocation3] sm:$0xff] %vm1830_vm8, %v5013_v18 }
  0x32   :  { %993 = vrot.lane.b32.xlu0 %v658_v38, %s5014_s14  ;;  %802 = vrot.lane.b32.xlu1 %v5139_v36, %s5012_s25  ;;  %v36_v36 = vadd.s32 96, %v5064_v3  ;;  %v5465_v53 = vsel %vm458_vm14, 1.0, %v5013_v18  ;;  %1835 = vst.msk [vmem:[#allocation3 + $0x10f] sm:$0xff] %vm1830_vm8, %v5013_v18  ;;  %vm4551_vm14 = vcmask 130048  }
  0x33   :  { %741 = vst.msk [vmem:[#allocation2 + $0x89] sm:$0xff] %vm725_vm0, %v708_v34  ;;  %v44_v34 = vadd.s32 160, %v5064_v3 }
  0x34   :  { %v144_v41 = vand.u32 15, %v36_v36  ;;  %v5442_v36 = vld [vmem:[%s6778_s0 + $0xc0] sm:$0xff]  ;;  %1836 = vst.msk [vmem:[#allocation3 + $0x117] sm:$0xff] %vm1830_vm8, %v5013_v18 }
  0x35   :  { %800 = vrot.lane.b32.xlu2 %v658_v38, %s5012_s25  ;;  %v179_v38 = vand.u32 15, %v41_v35  ;;  %750 = vst.msk [vmem:[#allocation2 + $0xd1] sm:$0xff] %vm725_vm0, %v5442_v36  ;;  %v200_v40 = vand.u32 15, %v44_v34 }
  0x36   :  { %vm452_vm5 = vcmp.ne.s32.totalorder %v144_v41, 0 }
  0x37   :  { %vm553_vm3 = vcmp.ne.s32.totalorder %v179_v38, 15  ;;  %vm460_vm1 = vcmp.ne.s32.totalorder %v200_v40, 0 }
  0x38   :  { %v5305_v42 = vsel %vm553_vm3, 1.0, %v5013_v18 }
  0x3a   :  { %804 = vrot.lane.b32.xlu0 %v660_v45, %s5012_s25  ;;  %997 = vrot.lane.b32.xlu1 %v660_v45, %s5014_s14  ;;  %v5310_v45 = vld [vmem:[%s6778_s0 + $0x88] sm:$0xff] }
  0x3b   :  { %v710_v47 = vmul.f32 %v5305_v42, %v5310_v45 }
  0x3d   :  { %995 = vrot.lane.b32.xlu2 %v925_v16, %s5014_s14  ;;  %743 = vst.msk [vmem:[#allocation2 + $0x99] sm:$0xff] %vm725_vm0, %v710_v47  ;;  %v5398_v16 = vsel %vm557_vm12, 1.0, %v5013_v18  ;;  %vm3086_vm12 = vcmask 523264  }
  0x42   :  { %999 = vrot.lane.b32.xlu0 %v927_v25, %s5014_s14  ;;  %808 = vrot.lane.b32.xlu1 %v662_v59, %s5012_s25  ;;  %v5422_v25 = vld [vmem:[%s6778_s0 + $0xb0] sm:$0xff] }
  0x43   :  { %748 = vst.msk [vmem:[#allocation2 + $0xc1] sm:$0xff] %vm725_vm0, %v5422_v25 }
  0x45   :  { %806 = vrot.lane.b32.xlu2 %v5175_v49, %s5012_s25  ;;  %v5321_v49 = vld [vmem:[%s6778_s0 + $0xc8] sm:$0xff] }
  0x46   :  { %v718_v52 = vmul.f32 %v5316_v48, %v5321_v49 }
  0x48   :  { %751 = vst.msk [vmem:[#allocation2 + $0xd9] sm:$0xff] %vm725_vm0, %v718_v52  ;;  %v1144_v52 = vld [vmem:[%s6779_s1] sm:$0xff] }
  0x4a   :  { %810 = vrot.lane.b32.xlu0 %v5191_v54, %s5012_s25  ;;  %1003 = vrot.lane.b32.xlu1 %v929_v31, %s5014_s14  ;;  %v5341_v54 = vsel %vm452_vm5, 1.0, %v5013_v18  ;;  %v47_v31 = vadd.s32 184, %v5064_v3 }
  0x4b   :  { %v931_v60 = vmul.f32 %v5341_v54, %v5234_v7 }
  0x4c   :  { %v221_v35 = vand.u32 15, %v47_v31 }
  0x4d   :  { %1001 = vrot.lane.b32.xlu2 %v662_v59, %s5014_s14  ;;  %v193_v59 = vand.u32 15, %v43_v56 }
  0x4e   :  { %vm559_vm15 = vcmp.ne.s32.totalorder %v221_v35, 15  ;;  %v54_v35 = vadd.s32 240, %v5064_v3 }
  0x4f   :  { %vm555_vm7 = vcmp.ne.s32.totalorder %v193_v59, 15  ;;  %v5448_v41 = vsel %vm559_vm15, 1.0, %v5013_v18  ;;  %v4665_v59 = vld [vmem:[%s6779_s1 + $0x28] sm:$0xf]  ;;  %vm4558_vm15 = vcmask 122880  }
  0x50   :  { %v5353_v62 = vsel %vm555_vm7, 1.0, %v5013_v18  ;;  %v716_v47 = vmul.f32 %v5448_v41, %v5453_v46  ;;  %4666 = vmatpush.msk.msra.mxu2 %vm1247_vm9, %v4665_v59  ;;  %v270_v40 = vand.u32 15, %v54_v35 }
  0x52   :  { %1005 = vrot.lane.b32.xlu0 %v5222_v4, %s5014_s14  ;;  %814 = vrot.lane.b32.xlu1 %v5234_v7, %s5012_s25  ;;  %v4597_v7 = vld [vmem:[%s6779_s1 + $0x18] sm:$0xf]  ;;  %749 = vst.msk [vmem:[#allocation2 + $0xc9] sm:$0xff] %vm725_vm0, %v716_v47  ;;  %vm470_vm5 = vcmp.ne.s32.totalorder %v270_v40, 0 }
  0x53   :  { %4882 = vmatpush.msk.msra.mxu1 %vm1247_vm9, %v4597_v7  ;;  %4598 = vmatpush.msk.msra.mxu0 %vm1247_vm9, %v4597_v7 }
  0x54   :  { %4883 = vmatpush.msk.msra.mxu3 %vm1247_vm9, %v4597_v7 }
  0x55   :  { %812 = vrot.lane.b32.xlu2 %v5222_v4, %s5012_s25  ;;  %v712_v4 = vmul.f32 %v5353_v62, %v5358_v63 }
  0x57   :  { %745 = vst.msk [vmem:[#allocation2 + $0xa9] sm:$0xff] %vm725_vm0, %v712_v4 }
  0x5a   :  { %816 = vrot.lane.b32.xlu0 %v666_v13, %s5012_s25  ;;  %1009 = vrot.lane.b32.xlu1 %v666_v13, %s5014_s14  ;;  %v4596_v13 = vld [vmem:[%s6779_s1 + $0x10] sm:$0xff] }
  0x5b   :  { %4884 = vmatpush.msra.mxu1 %v4596_v13  ;;  %1266 = vmatpush.msra.mxu0 %v4596_v13 }
  0x5c   :  { %4885 = vmatpush.msra.mxu3 %v4596_v13 }
  0x5d   :  { %1007 = vrot.lane.b32.xlu2 %v931_v60, %s5014_s14  ;;  %v5479_v60 = vsel %vm460_vm1, 1.0, %v5013_v18 }
  0x62   :  { %1011 = vrot.lane.b32.xlu0 %v933_v5, %s5014_s14  ;;  %820 = vrot.lane.b32.xlu1 %v5292_v33, %s5012_s25  ;;  %v214_v5 = vand.u32 15, %v46_v57 }
  0x64   :  { %vm462_vm3 = vcmp.ne.s32.totalorder %v214_v5, 0 }
  0x65   :  { %818 = vrot.lane.b32.xlu2 %v5259_v17, %s5012_s25  ;;  %v5403_v17 = vld [vmem:[%s6778_s0 + $0xa8] sm:$0xff]  ;;  %v5504_v10 = vsel %vm462_vm3, 1.0, %v5013_v18 }
  0x66   :  { %v714_v23 = vmul.f32 %v5398_v16, %v5403_v17 }
  0x67   :  { %v5395_v15 = vpop.permute.xlu2 %1039 }
  0x68   :  { %747 = vst.msk [vmem:[#allocation2 + $0xb9] sm:$0xff] %vm725_vm0, %v714_v23  ;;  %v941_v23 = vmul.f32 %v5504_v10, %v5422_v25 }
  0x6a   :  { %822 = vrot.lane.b32.xlu0 %v5275_v27, %s5012_s25  ;;  %1015 = vrot.lane.b32.xlu1 %v935_v14, %s5014_s14 }
  0x6d   :  { %1013 = vrot.lane.b32.xlu2 %v5292_v33, %s5014_s14  ;;  %v1145_v33 = vld [vmem:[%s6779_s1 + $0x8] sm:$0xf] }
  0x6e   :  { %4631 = vmatpush.msk.msrb.mxu1 %vm1247_vm9, %v1145_v33  ;;  %vm1833_vm9 = vcmask 778240  }
  0x6f   :  { %v849_v27 = vpop.permute.xlu2 %848  ;;  %1834 = vst.msk [vmem:[#allocation3 + $0x10] sm:$0x1] %vm1833_vm9, %v5013_v18 }
  0x70   :  { %916 = vst.msk [vmem:[#allocation2 + $0xf8] sm:$0xff] %vm886_vm13, %v849_v27  ;;  %1388 = vmatpush.msrb.mxu1 %v1144_v52 }
  0x71   :  { %1837 = vst.msk [vmem:[#allocation3 + $0x11f] sm:$0x1] %vm1833_vm9, %v5013_v18 }
  0x72   :  { %1017 = vrot.lane.b32.xlu0 %v5310_v45, %s5014_s14  ;;  %826 = vrot.lane.b32.xlu1 %v5331_v51, %s5012_s25 }
  0x74   :  { %v847_v38 = vpop.permute.xlu1 %846  ;;  %v843_v39 = vpop.permute.xlu0 %842 }
  0x75   :  { %915 = vst.msk [vmem:[#allocation2 + $0xf0] sm:$0xff] %vm886_vm13, %v847_v38  ;;  %824 = vrot.lane.b32.xlu2 %v5310_v45, %s5012_s25  ;;  %v937_v45 = vmul.f32 %v5465_v53, %v5331_v51  ;;  %v4664_v51 = vld [vmem:[%s6779_s1 + $0x20] sm:$0xff] }
  0x76   :  { %913 = vst.msk [vmem:[#allocation2 + $0xe0] sm:$0xff] %vm886_vm13, %v843_v39  ;;  %1635 = vmatpush.msra.mxu2 %v4664_v51  ;;  %v1112_v39 = vld [vmem:[#allocation2] sm:$0xff] }
  0x77   :  { %v984_v56 = vpop.permute.xlu2 %983 }
  0x7a   :  { %828 = vrot.lane.b32.xlu0 %v5358_v63, %s5012_s25  ;;  %1021 = vrot.lane.b32.xlu1 %v5358_v63, %s5014_s14  ;;  %v939_v63 = vmul.f32 %v5479_v60, %v5369_v6 }
  0x7c   :  { %v1038_v0 = vpop.permute.xlu1 %1037  ;;  %v845_v4 = vpop.permute.xlu0 %844 }
  0x7d   :  { %914 = vst.msk [vmem:[#allocation2 + $0xe8] sm:$0xff] %vm886_vm13, %v845_v4  ;;  %1019 = vrot.lane.b32.xlu2 %v937_v45, %s5014_s14 }
  0x7e   :  { %1107 = vst.msk [vmem:[#allocation2 + $0xe7] sm:$0xff] %vm1079_vm2, %v1038_v0 }
  0x7f   :  { %1108 = vst.msk [vmem:[#allocation2 + $0xef] sm:$0xff] %vm1079_vm2, %v5395_v15  ;;  %v795_v7 = vpop.permute.xlu2 %794 }
  0x80   :  { %889 = vst.msk [vmem:[#allocation2 + $0x20] sm:$0xff] %vm886_vm13, %v795_v7 }
  0x82   :  { %1023 = vrot.lane.b32.xlu0 %v939_v63, %s5014_s14  ;;  %832 = vrot.lane.b32.xlu1 %v5403_v17, %s5012_s25 }
  0x84   :  { %v1042_v13 = vpop.permute.xlu0 %1041  ;;  %v791_v14 = vpop.permute.xlu1 %790 }
  0x85   :  { %1109 = vst.msk [vmem:[#allocation2 + $0xf7] sm:$0xff] %vm1079_vm2, %v1042_v13  ;;  %830 = vrot.lane.b32.xlu2 %v5369_v6, %s5012_s25  ;;  %v48_v6 = vadd.s32 192, %v5064_v3 }
  0x86   :  { %887 = vst.msk [vmem:[#allocation2 + $0x10] sm:$0xff] %vm886_vm13, %v791_v14  ;;  %v5510_v15 = vld [vmem:[#allocation2 + $0xe8] sm:$0xff] }
  0x87   :  { %1080 = vst.msk [vmem:[#allocation2 + $0xf] sm:$0xff] %vm1079_vm2, %v984_v56  ;;  %4626 = vmatmul.msk.f32.vlgmr.msra.gmra.mxu1 %vm685_vm11, %v5510_v15  ;;  %v990_v26 = vpop.permute.xlu2 %989 }
  0x8a   :  { %834 = vrot.lane.b32.xlu0 %v5422_v25, %s5012_s25  ;;  %1027 = vrot.lane.b32.xlu1 %v941_v23, %s5014_s14  ;;  %v228_v25 = vand.u32 15, %v48_v6 }
  0x8c   :  { %v793_v27 = vpop.permute.xlu0 %792  ;;  %v986_v30 = vpop.permute.xlu1 %985  ;;  %v5521_v31 = vld [vmem:[#allocation2 + $0xf0] sm:$0xff]  ;;  %vm464_vm4 = vcmp.ne.s32.totalorder %v228_v25, 0 }
  0x8d   :  { %888 = vst.msk [vmem:[#allocation2 + $0x18] sm:$0xff] %vm886_vm13, %v793_v27  ;;  %1025 = vrot.lane.b32.xlu2 %v5403_v17, %s5014_s14  ;;  %v50_v17 = vadd.s32 208, %v5064_v3  ;;  %v5542_v52 = vsel %vm464_vm4, 1.0, %v5013_v18 }
  0x8e   :  { %1081 = vst.msk [vmem:[#allocation2 + $0x17] sm:$0xff] %vm1079_vm2, %v986_v30  ;;  %v943_v45 = vmul.f32 %v5542_v52, %v5442_v36 }
  0x8f   :  { %4627 = vmatmul.msk.f32.gmra.mxu1 %vm685_vm11, %v5521_v31  ;;  %v801_v34 = vpop.permute.xlu2 %800  ;;  %v242_v57 = vand.u32 15, %v50_v17 }
  0x90   :  { %892 = vst.msk [vmem:[#allocation2 + $0x38] sm:$0xff] %vm886_vm13, %v801_v34 }
  0x91   :  { %vm466_vm6 = vcmp.ne.s32.totalorder %v242_v57, 0 }
  0x92   :  { %1029 = vrot.lane.b32.xlu0 %v5453_v46, %s5014_s14  ;;  %838 = vrot.lane.b32.xlu1 %v5442_v36, %s5012_s25  ;;  %v1113_v36 = vld [vmem:[#allocation2 + $0x8] sm:$0xff]  ;;  %v5562_v51 = vsel %vm466_vm6, 1.0, %v5013_v18 }
  0x93   :  { %v945_v7 = vmul.f32 %v5562_v51, %v5058_v2 }
  0x94   :  { %v988_v33 = vpop.permute.xlu0 %987  ;;  %v797_v38 = vpop.permute.xlu1 %796 }
  0x95   :  { %1082 = vst.msk [vmem:[#allocation2 + $0x1f] sm:$0xff] %vm1079_vm2, %v988_v33  ;;  %v1114_v47 = vld [vmem:[#allocation2 + $0x10] sm:$0xff]  ;;  %836 = vrot.lane.b32.xlu2 %v5453_v46, %s5012_s25  ;;  %v5553_v46 = vsel %vm470_vm5, 1.0, %v5013_v18 }
  0x96   :  { %890 = vst.msk [vmem:[#allocation2 + $0x28] sm:$0xff] %vm886_vm13, %v797_v38  ;;  %4599 = vmatmul.msk.f32.vlgmr.msra.gmra.mxu0 %vm685_vm11, %v1114_v47 }
  0x97   :  { %1083 = vst.msk [vmem:[#allocation2 + $0x27] sm:$0xff] %vm1079_vm2, %v990_v26  ;;  %4632 = vmatmul.msk.f32.vlgmr.msrb.gmra.mxu1 %vm685_vm11, %v1112_v39  ;;  %v996_v56 = vpop.permute.xlu2 %995 }
  0x9a   :  { %840 = vrot.lane.b32.xlu0 %v5321_v49, %s5012_s25  ;;  %1033 = vrot.lane.b32.xlu1 %v5321_v49, %s5014_s14  ;;  %v949_v49 = vmul.f32 %v5553_v46, %v5496_v8 }
  0x9c   :  { %v799_v59 = vpop.permute.xlu0 %798  ;;  %v992_v0 = vpop.permute.xlu1 %991  ;;  %v1115_v4 = vld [vmem:[#allocation2 + $0x18] sm:$0xff] }
  0x9d   :  { %891 = vst.msk [vmem:[#allocation2 + $0x30] sm:$0xff] %vm886_vm13, %v799_v59  ;;  %1031 = vrot.lane.b32.xlu2 %v943_v45, %s5014_s14 }
  0x9e   :  { %1084 = vst.msk [vmem:[#allocation2 + $0x2f] sm:$0xff] %vm1079_vm2, %v992_v0  ;;  %4600 = vmatmul.msk.f32.gmra.mxu0 %vm685_vm11, %v1115_v4  ;;  %v1486_v5 = vld [vmem:[#allocation2 + $0x20] sm:$0xff] }
  0x9f   :  { %4633 = vmatmul.msk.f32.gmra.mxu1 %vm685_vm11, %v1113_v36  ;;  %4667 = vmatmul.msk.f32.vlgmr.msra.gmra.mxu2 %vm685_vm11, %v1486_v5  ;;  %v807_v63 = vpop.permute.xlu2 %806 }
  0xa0   :  { %895 = vst.msk [vmem:[#allocation2 + $0x50] sm:$0xff] %vm886_vm13, %v807_v63 }
  0xa2   :  { %850 = vrot.lane.b32.xlu0 %v5496_v8, %s5012_s25  ;;  %1043 = vrot.lane.b32.xlu1 %v949_v49, %s5014_s14 }
  0xa4   :  { %v994_v13 = vpop.permute.xlu0 %993  ;;  %v803_v14 = vpop.permute.xlu1 %802 }
  0xa5   :  { %1085 = vst.msk [vmem:[#allocation2 + $0x37] sm:$0xff] %vm1079_vm2, %v994_v13  ;;  %v1487_v23 = vld [vmem:[#allocation2 + $0x28] sm:$0xff]  ;;  %1035 = vrot.lane.b32.xlu2 %v945_v7, %s5014_s14  ;;  %v55_v7 = vadd.s32 248, %v5064_v3  ;;  %v684_v13 = vld [vmem:[%s6778_s0 + $0xf8] sm:$0xff] }
  0xa6   :  { %893 = vst.msk [vmem:[#allocation2 + $0x40] sm:$0xff] %vm886_vm13, %v803_v14  ;;  %4601 = vmatmul.msk.f32.gmra.mxu0 %vm685_vm11, %v1486_v5 }
  0xa7   :  { %1086 = vst.msk [vmem:[#allocation2 + $0x3f] sm:$0xff] %vm1079_vm2, %v996_v56  ;;  %4634 = vmatmul.msk.f32.gmra.mxu1 %vm685_vm11, %v1114_v47  ;;  %4668 = vmatmul.msk.f32.gmra.mxu2 %vm685_vm11, %v1487_v23  ;;  %v1002_v2 = vpop.permute.xlu2 %1001  ;;  %v277_v14 = vand.u32 15, %v55_v7 }
  0xa9   :  { %vm567_vm7 = vcmp.ne.s32.totalorder %v277_v14, 15 }
  0xaa   :  { %1045 = vrot.lane.b32.xlu0 %v684_v13, %s5014_s14  ;;  %s5015_s14 = smov 32  }
  0xac   :  { %v805_v8 = vpop.permute.xlu0 %804  ;;  %v998_v26 = vpop.permute.xlu1 %997  ;;  %v1488_v6 = vld [vmem:[#allocation2 + $0x30] sm:$0xff] }
  0xad   :  { %894 = vst.msk [vmem:[#allocation2 + $0x48] sm:$0xff] %vm886_vm13, %v805_v8  ;;  %852 = vrot.lane.b32.xlu2 %v684_v13, %s5012_s25  ;;  %v5622_v8 = vsel %vm567_vm7, 1.0, %v5013_v18 }
  0xae   :  { %1087 = vst.msk [vmem:[#allocation2 + $0x47] sm:$0xff] %vm1079_vm2, %v998_v26  ;;  %4602 = vmatmul.msk.f32.gmra.mxu0 %vm685_vm11, %v1487_v23  ;;  %v1489_v25 = vld [vmem:[#allocation2 + $0x38] sm:$0xff]  ;;  %v724_v26 = vmul.f32 %v5622_v8, %v684_v13 }
  0xaf   :  { %4635 = vmatmul.msk.f32.gmra.mxu1 %vm685_vm11, %v1115_v4  ;;  %4669 = vmatmul.msk.f32.gmra.mxu2 %vm685_vm11, %v1488_v6  ;;  %v813_v27 = vpop.permute.xlu2 %812 }
  0xb0   :  { %898 = vst.msk [vmem:[#allocation2 + $0x68] sm:$0xff] %vm886_vm13, %v813_v27 }
  0xb1   :  { %757 = vst.msk [vmem:[#allocation2 + $0x109] sm:$0xff] %vm725_vm0, %v724_v26  ;;  %vm1870_vm0 = vcmask 261120  }
  0xb4   :  { %v1000_v30 = vpop.permute.xlu0 %999  ;;  %v809_v34 = vpop.permute.xlu1 %808 }
  0xb5   :  { %1088 = vst.msk [vmem:[#allocation2 + $0x4f] sm:$0xff] %vm1079_vm2, %v1000_v30  ;;  %v1490_v38 = vld [vmem:[#allocation2 + $0x40] sm:$0xff] }
  0xb6   :  { %896 = vst.msk [vmem:[#allocation2 + $0x58] sm:$0xff] %vm886_vm13, %v809_v34  ;;  %4603 = vmatmul.msk.f32.gmra.mxu0 %vm685_vm11, %v1488_v6 }
  0xb7   :  { %1089 = vst.msk [vmem:[#allocation2 + $0x57] sm:$0xff] %vm1079_vm2, %v1002_v2  ;;  %4636 = vmatmul.msk.f32.gmra.mxu1 %vm685_vm11, %v1486_v5  ;;  %4670 = vmatmul.msk.f32.gmra.mxu2 %vm685_vm11, %v1489_v25  ;;  %v1008_v35 = vpop.permute.xlu2 %1007 }
  0xbc   :  { %v811_v17 = vpop.permute.xlu0 %810  ;;  %v1004_v33 = vpop.permute.xlu1 %1003  ;;  %v1491_v56 = vld [vmem:[#allocation2 + $0x48] sm:$0xff] }
  0xbd   :  { %897 = vst.msk [vmem:[#allocation2 + $0x60] sm:$0xff] %vm886_vm13, %v811_v17 }
  0xbe   :  { %1090 = vst.msk [vmem:[#allocation2 + $0x5f] sm:$0xff] %vm1079_vm2, %v1004_v33  ;;  %4604 = vmatmul.msk.f32.gmra.mxu0 %vm685_vm11, %v1489_v25  ;;  %v1492_v0 = vld [vmem:[#allocation2 + $0x50] sm:$0xff] }
  0xbf   :  { %4637 = vmatmul.msk.f32.gmra.mxu1 %vm685_vm11, %v1487_v23  ;;  %4671 = vmatmul.msk.f32.gmra.mxu2 %vm685_vm11, %v1490_v38  ;;  %v819_v39 = vpop.permute.xlu2 %818 }
  0xc0   :  { %901 = vst.msk [vmem:[#allocation2 + $0x80] sm:$0xff] %vm886_vm13, %v819_v39 }
  0xc4   :  { %v1006_v40 = vpop.permute.xlu0 %1005  ;;  %v815_v47 = vpop.permute.xlu1 %814 }
  0xc5   :  { %1091 = vst.msk [vmem:[#allocation2 + $0x67] sm:$0xff] %vm1079_vm2, %v1006_v40  ;;  %v1493_v49 = vld [vmem:[#allocation2 + $0x58] sm:$0xff] }
  0xc6   :  { %899 = vst.msk [vmem:[#allocation2 + $0x70] sm:$0xff] %vm886_vm13, %v815_v47  ;;  %4605 = vmatmul.msk.f32.gmra.mxu0 %vm685_vm11, %v1490_v38 }
  0xc7   :  { %1092 = vst.msk [vmem:[#allocation2 + $0x6f] sm:$0xff] %vm1079_vm2, %v1008_v35  ;;  %4638 = vmatmul.msk.f32.gmra.mxu1 %vm685_vm11, %v1488_v6  ;;  %4672 = vmatmul.msk.f32.gmra.mxu2 %vm685_vm11, %v1491_v56  ;;  %v1014_v57 = vpop.permute.xlu2 %1013 }
  0xcc   :  { %v817_v45 = vpop.permute.xlu0 %816  ;;  %v1010_v59 = vpop.permute.xlu1 %1009  ;;  %v1494_v3 = vld [vmem:[#allocation2 + $0x60] sm:$0xff] }
  0xcd   :  { %900 = vst.msk [vmem:[#allocation2 + $0x78] sm:$0xff] %vm886_vm13, %v817_v45 }
  0xce   :  { %1093 = vst.msk [vmem:[#allocation2 + $0x77] sm:$0xff] %vm1079_vm2, %v1010_v59  ;;  %4606 = vmatmul.msk.f32.gmra.mxu0 %vm685_vm11, %v1491_v56  ;;  %v1495_v34 = vld [vmem:[#allocation2 + $0x68] sm:$0xff] }
  0xcf   :  { %4639 = vmatmul.msk.f32.gmra.mxu1 %vm685_vm11, %v1489_v25  ;;  %4673 = vmatmul.msk.f32.gmra.mxu2 %vm685_vm11, %v1492_v0  ;;  %v825_v4 = vpop.permute.xlu2 %824 }
  0xd0   :  { %904 = vst.msk [vmem:[#allocation2 + $0x98] sm:$0xff] %vm886_vm13, %v825_v4 }
  0xd4   :  { %v1012_v36 = vpop.permute.xlu0 %1011  ;;  %v821_v5 = vpop.permute.xlu1 %820 }
  0xd5   :  { %1094 = vst.msk [vmem:[#allocation2 + $0x7f] sm:$0xff] %vm1079_vm2, %v1012_v36  ;;  %v1496_v33 = vld [vmem:[#allocation2 + $0x70] sm:$0xff] }
  0xd6   :  { %902 = vst.msk [vmem:[#allocation2 + $0x88] sm:$0xff] %vm886_vm13, %v821_v5  ;;  %4607 = vmatmul.msk.f32.gmra.mxu0 %vm685_vm11, %v1492_v0 }
  0xd7   :  { %1095 = vst.msk [vmem:[#allocation2 + $0x87] sm:$0xff] %vm1079_vm2, %v1014_v57  ;;  %4640 = vmatmul.msk.f32.gmra.mxu1 %vm685_vm11, %v1490_v38  ;;  %4674 = vmatmul.msk.f32.gmra.mxu2 %vm685_vm11, %v1493_v49  ;;  %v1020_v63 = vpop.permute.xlu2 %1019 }
  0xdc   :  { %v823_v23 = vpop.permute.xlu0 %822  ;;  %v1016_v2 = vpop.permute.xlu1 %1015  ;;  %v1497_v47 = vld [vmem:[#allocation2 + $0x78] sm:$0xff] }
  0xdd   :  { %903 = vst.msk [vmem:[#allocation2 + $0x90] sm:$0xff] %vm886_vm13, %v823_v23 }
  0xde   :  { %1096 = vst.msk [vmem:[#allocation2 + $0x8f] sm:$0xff] %vm1079_vm2, %v1016_v2  ;;  %4608 = vmatmul.msk.f32.gmra.mxu0 %vm685_vm11, %v1493_v49  ;;  %v1498_v45 = vld [vmem:[#allocation2 + $0x80] sm:$0xff] }
  0xdf   :  { %4641 = vmatmul.msk.f32.gmra.mxu1 %vm685_vm11, %v1491_v56  ;;  %4675 = vmatmul.msk.f32.gmra.mxu2 %vm685_vm11, %v1494_v3  ;;  %v831_v6 = vpop.permute.xlu2 %830 }
  0xe0   :  { %907 = vst.msk [vmem:[#allocation2 + $0xb0] sm:$0xff] %vm886_vm13, %v831_v6 }
  0xe4   :  { %v1018_v27 = vpop.permute.xlu0 %1017  ;;  %v827_v30 = vpop.permute.xlu1 %826 }
  0xe5   :  { %1097 = vst.msk [vmem:[#allocation2 + $0x97] sm:$0xff] %vm1079_vm2, %v1018_v27  ;;  %v1499_v5 = vld [vmem:[#allocation2 + $0x88] sm:$0xff] }
  0xe6   :  { %905 = vst.msk [vmem:[#allocation2 + $0xa0] sm:$0xff] %vm886_vm13, %v827_v30  ;;  %4609 = vmatmul.msk.f32.gmra.mxu0 %vm685_vm11, %v1494_v3 }
  0xe7   :  { %1098 = vst.msk [vmem:[#allocation2 + $0x9f] sm:$0xff] %vm1079_vm2, %v1020_v63  ;;  %4642 = vmatmul.msk.f32.gmra.mxu1 %vm685_vm11, %v1492_v0  ;;  %4676 = vmatmul.msk.f32.gmra.mxu2 %vm685_vm11, %v1495_v34  ;;  %v1026_v25 = vpop.permute.xlu2 %1025 }
  0xec   :  { %v829_v35 = vpop.permute.xlu0 %828  ;;  %v1022_v17 = vpop.permute.xlu1 %1021  ;;  %v1500_v14 = vld [vmem:[#allocation2 + $0x90] sm:$0xff] }
  0xed   :  { %906 = vst.msk [vmem:[#allocation2 + $0xa8] sm:$0xff] %vm886_vm13, %v829_v35 }
  0xee   :  { %1099 = vst.msk [vmem:[#allocation2 + $0xa7] sm:$0xff] %vm1079_vm2, %v1022_v17  ;;  %4610 = vmatmul.msk.f32.gmra.mxu0 %vm685_vm11, %v1495_v34  ;;  %v1501_v6 = vld [vmem:[#allocation2 + $0x98] sm:$0xff]  ;;  %v5686_v17 = vld [vmem:[%s6780_s4] ss:$0 sm:$0xff] }
  0xef   :  { %4643 = vmatmul.msk.f32.gmra.mxu1 %vm685_vm11, %v1493_v49  ;;  %4677 = vmatmul.msk.f32.gmra.mxu2 %vm685_vm11, %v1496_v33  ;;  %v837_v38 = vpop.permute.xlu2 %836 }
  0xf0   :  { %910 = vst.msk [vmem:[#allocation2 + $0xc8] sm:$0xff] %vm886_vm13, %v837_v38 }
  0xf4   :  { %v1024_v39 = vpop.permute.xlu0 %1023  ;;  %v833_v40 = vpop.permute.xlu1 %832 }
  0xf5   :  { %1100 = vst.msk [vmem:[#allocation2 + $0xaf] sm:$0xff] %vm1079_vm2, %v1024_v39 }
  0xf6   :  { %908 = vst.msk [vmem:[#allocation2 + $0xb8] sm:$0xff] %vm886_vm13, %v833_v40  ;;  %4611 = vmatmul.msk.f32.gmra.mxu0 %vm685_vm11, %v1496_v33 }
  0xf7   :  { %1101 = vst.msk [vmem:[#allocation2 + $0xb7] sm:$0xff] %vm1079_vm2, %v1026_v25  ;;  %4644 = vmatmul.msk.f32.gmra.mxu1 %vm685_vm11, %v1494_v3  ;;  %4678 = vmatmul.msk.f32.gmra.mxu2 %vm685_vm11, %v1497_v47  ;;  %v1032_v59 = vpop.permute.xlu2 %1031  ;;  %v1502_v25 = vld [vmem:[#allocation2 + $0xa0] sm:$0xff] }
  0xfc   :  { %v835_v56 = vpop.permute.xlu0 %834  ;;  %v1028_v57 = vpop.permute.xlu1 %1027 }
  0xfd   :  { %909 = vst.msk [vmem:[#allocation2 + $0xc0] sm:$0xff] %vm886_vm13, %v835_v56  ;;  %v1503_v56 = vld [vmem:[#allocation2 + $0xa8] sm:$0xff] }
  0xfe   :  { %1102 = vst.msk [vmem:[#allocation2 + $0xbf] sm:$0xff] %vm1079_vm2, %v1028_v57  ;;  %4612 = vmatmul.msk.f32.gmra.mxu0 %vm685_vm11, %v1497_v47 }
  0xff   :  { %4645 = vmatmul.msk.f32.gmra.mxu1 %vm685_vm11, %v1495_v34  ;;  %4679 = vmatmul.msk.f32.gmra.mxu2 %vm685_vm11, %v1498_v45  ;;  %v1036_v49 = vpop.permute.xlu2 %1035 }
 0x104   :  { %v5655_v0 = vpop.f32.mrf.mxu1  ;;  %v1030_v4 = vpop.permute.xlu0 %1029 }
 0x105   :  { %1103 = vst.msk [vmem:[#allocation2 + $0xc7] sm:$0xff] %vm1079_vm2, %v1030_v4  ;;  %v839_v36 = vpop.permute.xlu1 %838 }
 0x106   :  { %911 = vst.msk [vmem:[#allocation2 + $0xd0] sm:$0xff] %vm886_vm13, %v839_v36  ;;  %4613 = vmatmul.msk.f32.gmra.mxu0 %vm685_vm11, %v1498_v45 }
 0x107   :  { %1104 = vst.msk [vmem:[#allocation2 + $0xcf] sm:$0xff] %vm1079_vm2, %v1032_v59  ;;  %4646 = vmatmul.msk.f32.gmra.mxu1 %vm685_vm11, %v1496_v33  ;;  %4680 = vmatmul.msk.f32.gmra.mxu2 %vm685_vm11, %v1499_v5 }
 0x10c   :  { %v5663_v63 = vpop.f32.mrf.mxu1  ;;  %v841_v7 = vpop.permute.xlu0 %840 }
 0x10d   :  { %912 = vst.msk [vmem:[#allocation2 + $0xd8] sm:$0xff] %vm886_vm13, %v841_v7  ;;  %v1034_v13 = vpop.permute.xlu1 %1033 }
 0x10e   :  { %1105 = vst.msk [vmem:[#allocation2 + $0xd7] sm:$0xff] %vm1079_vm2, %v1034_v13  ;;  %4614 = vmatmul.msk.f32.gmra.mxu0 %vm685_vm11, %v1499_v5  ;;  %v1504_v13 = vld [vmem:[#allocation2 + $0xb0] sm:$0xff] }
 0x10f   :  { %1106 = vst.msk [vmem:[#allocation2 + $0xdf] sm:$0xff] %vm1079_vm2, %v1036_v49  ;;  %4647 = vmatmul.msk.f32.gmra.mxu1 %vm685_vm11, %v1497_v47  ;;  %4681 = vmatmul.msk.f32.gmra.mxu2 %vm685_vm11, %v1500_v14 }
 0x113   :  { %v1268_v23 = vpop.f32.mrf.mxu0 }
 0x114   :  { %v1390_v2 = vpop.f32.mrf.mxu1  ;;  %v851_v26 = vpop.permute.xlu0 %850 }
 0x115   :  { %917 = vst.msk [vmem:[#allocation2 + $0x100] sm:$0xff] %vm886_vm13, %v851_v26  ;;  %v1044_v3 = vpop.permute.xlu1 %1043  ;;  %v1391_v35 = vadd.f32 %v1390_v2, %v1268_v23 }
 0x116   :  { %1110 = vst.msk [vmem:[#allocation2 + $0xff] sm:$0xff] %vm1079_vm2, %v1044_v3  ;;  %4615 = vmatmul.msk.f32.gmra.mxu0 %vm685_vm11, %v1500_v14 }
 0x117   :  { %4648 = vmatmul.msk.f32.gmra.mxu1 %vm685_vm11, %v1498_v45  ;;  %4682 = vmatmul.msk.f32.gmra.mxu2 %vm685_vm11, %v1501_v6 }
 0x11b   :  { %v1271_v27 = vpop.f32.mrf.mxu0 }
 0x11c   :  { %v1393_v30 = vpop.f32.mrf.mxu1 }
 0x11d   :  { %v5676_v34 = vld [vmem:[#allocation2 + $0xf8] sm:$0xff]  ;;  %v1394_v45 = vadd.f32 %v1393_v30, %v1271_v27 }
 0x11e   :  { %4616 = vmatmul.msk.f32.gmra.mxu0 %vm685_vm11, %v1501_v6  ;;  %4628 = vmatmul.msk.f32.vlgmr.msra.gmra.mxu3 %vm685_vm11, %v5676_v34 }
 0x11f   :  { %4649 = vmatmul.msk.f32.gmra.mxu1 %vm685_vm11, %v1499_v5  ;;  %4683 = vmatmul.msk.f32.gmra.mxu2 %vm685_vm11, %v1502_v25 }
 0x122   :  { %v1637_v33 = vpop.f32.mrf.mxu2 }
 0x123   :  { %v1733_v38 = vadd.f32 %v1637_v33, %v1391_v35  ;;  %v1274_v39 = vpop.f32.mrf.mxu0 }
 0x124   :  { %v1396_v40 = vpop.f32.mrf.mxu1 }
 0x125   :  { %v1766_v47 = vadd.f32 %v5686_v17, %v1733_v38 }
 0x126   :  { %4617 = vmatmul.msk.f32.gmra.mxu0 %vm685_vm11, %v1502_v25 }
 0x127   :  { %4650 = vmatmul.msk.f32.gmra.mxu1 %vm685_vm11, %v1500_v14  ;;  %4684 = vmatmul.msk.f32.gmra.mxu2 %vm685_vm11, %v1503_v56  ;;  %v1798_v57 = vmax.f32 %v1766_v47, 0.0 }
 0x129   :  { %1935 = vrot.lane.b32.xlu1 %v1798_v57, %s5015_s14  ;;  %v2064_v59 = vmul.f32 %v5157_v43, %v1798_v57  ;;  %1871 = vst.msk [vmem:[#allocation3 + $0x11] sm:$0xff] %vm1870_vm0, %v1798_v57  ;;  %v1397_v43 = vadd.f32 %v1396_v40, %v1274_v39 }
 0x12a   :  { %v1640_v4 = vpop.f32.mrf.mxu2 }
 0x12b   :  { %v1734_v36 = vadd.f32 %v1640_v4, %v1394_v45  ;;  %2128 = vrot.lane.b32.xlu0 %v2064_v59, %s5016_s7  ;;  %v1277_v5 = vpop.f32.mrf.mxu0 }
 0x12c   :  { %v1399_v49 = vpop.f32.mrf.mxu1 }
 0x12d   :  { %v1767_v7 = vadd.f32 %v5686_v17, %v1734_v36  ;;  %v1400_v33 = vadd.f32 %v1399_v49, %v1277_v5 }
 0x12e   :  { %4618 = vmatmul.msk.f32.gmra.mxu0 %vm685_vm11, %v1503_v56 }
 0x12f   :  { %4651 = vmatmul.msk.f32.gmra.mxu1 %vm685_vm11, %v1501_v6  ;;  %4685 = vmatmul.msk.f32.gmra.mxu2 %vm685_vm11, %v1504_v13  ;;  %v1799_v14 = vmax.f32 %v1767_v7, 0.0  ;;  %v1505_v6 = vld [vmem:[#allocation2 + $0xb8] sm:$0xff] }
 0x131   :  { %2130 = vrot.lane.b32.xlu1 %v1799_v14, %s5016_s7  ;;  %v1839_v23 = vmul.f32 %v5107_v22, %v1799_v14  ;;  %1937 = vrot.lane.b32.xlu2 %v1799_v14, %s5015_s14 }
 0x132   :  { %v1643_v2 = vpop.f32.mrf.mxu2 }
 0x133   :  { %v1735_v26 = vadd.f32 %v1643_v2, %v1397_v43  ;;  %v1280_v3 = vpop.f32.mrf.mxu0  ;;  %1872 = vst.msk [vmem:[#allocation3 + $0x19] sm:$0xff] %vm1870_vm0, %v1839_v23 }
 0x134   :  { %v1402_v27 = vpop.f32.mrf.mxu1 }
 0x135   :  { %v1768_v30 = vadd.f32 %v5686_v17, %v1735_v26  ;;  %v1403_v59 = vadd.f32 %v1402_v27, %v1280_v3  ;;  %v853_v27 = vpop.permute.xlu2 %852 }
 0x136   :  { %4619 = vmatmul.msk.f32.gmra.mxu0 %vm685_vm11, %v1504_v13  ;;  %918 = vst.msk [vmem:[#allocation2 + $0x108] sm:$0xff] %vm886_vm13, %v853_v27  ;;  %vm3152_vm13 = vcmask 253952  }
 0x137   :  { %4652 = vmatmul.msk.f32.gmra.mxu1 %vm685_vm11, %v1502_v25  ;;  %4686 = vmatmul.msk.f32.gmra.mxu2 %vm685_vm11, %v1505_v6  ;;  %v1800_v35 = vmax.f32 %v1768_v30, 0.0  ;;  %v1506_v25 = vld [vmem:[#allocation2 + $0xc0] sm:$0xff] }
 0x139   :  { %1939 = vrot.lane.b32.xlu2 %v1800_v35, %s5015_s14  ;;  %v2066_v22 = vmul.f32 %v5178_v50, %v1800_v35  ;;  %1873 = vst.msk [vmem:[#allocation3 + $0x21] sm:$0xff] %vm1870_vm0, %v1800_v35  ;;  %v1508_v35 = vld [vmem:[#allocation2 + $0xd0] sm:$0xff] }
 0x13a   :  { %v1646_v38 = vpop.f32.mrf.mxu2 }
 0x13b   :  { %v1736_v39 = vadd.f32 %v1646_v38, %v1400_v33  ;;  %2132 = vrot.lane.b32.xlu1 %v2066_v22, %s5016_s7  ;;  %v1283_v40 = vpop.f32.mrf.mxu0 }
 0x13c   :  { %v1405_v47 = vpop.f32.mrf.mxu1 }
 0x13d   :  { %v1769_v57 = vadd.f32 %v5686_v17, %v1736_v39  ;;  %v1406_v43 = vadd.f32 %v1405_v47, %v1283_v40 }
 0x13e   :  { %4620 = vmatmul.msk.f32.gmra.mxu0 %vm685_vm11, %v1505_v6 }
 0x13f   :  { %4653 = vmatmul.msk.f32.gmra.mxu1 %vm685_vm11, %v1503_v56  ;;  %4687 = vmatmul.msk.f32.gmra.mxu2 %vm685_vm11, %v1506_v25  ;;  %v1801_v45 = vmax.f32 %v1769_v57, 0.0  ;;  %v1507_v56 = vld [vmem:[#allocation2 + $0xc8] sm:$0xff] }
 0x141   :  { %1941 = vrot.lane.b32.xlu0 %v1801_v45, %s5015_s14  ;;  %v1841_v50 = vmul.f32 %v5123_v29, %v1801_v45  ;;  %2134 = vrot.lane.b32.xlu2 %v1801_v45, %s5016_s7 }
 0x142   :  { %v1649_v4 = vpop.f32.mrf.mxu2 }
 0x143   :  { %v1737_v36 = vadd.f32 %v1649_v4, %v1403_v59  ;;  %v1286_v5 = vpop.f32.mrf.mxu0  ;;  %1874 = vst.msk [vmem:[#allocation3 + $0x29] sm:$0xff] %vm1870_vm0, %v1841_v50 }
 0x144   :  { %v1408_v49 = vpop.f32.mrf.mxu1 }
 0x145   :  { %v1770_v7 = vadd.f32 %v5686_v17, %v1737_v36  ;;  %v1409_v33 = vadd.f32 %v1408_v49, %v1286_v5 }
 0x146   :  { %4621 = vmatmul.msk.f32.gmra.mxu0 %vm685_vm11, %v1506_v25 }
 0x147   :  { %4654 = vmatmul.msk.f32.gmra.mxu1 %vm685_vm11, %v1504_v13  ;;  %4688 = vmatmul.msk.f32.gmra.mxu2 %vm685_vm11, %v1507_v56  ;;  %v1802_v14 = vmax.f32 %v1770_v7, 0.0  ;;  %v1046_v13 = vpop.permute.xlu0 %1045 }
 0x148   :  { %1111 = vst.msk [vmem:[#allocation2 + $0x107] sm:$0xff] %vm1079_vm2, %v1046_v13 }
 0x149   :  { %1943 = vrot.lane.b32.xlu0 %v1802_v14, %s5015_s14  ;;  %v2068_v29 = vmul.f32 %v5194_v55, %v1802_v14  ;;  %1875 = vst.msk [vmem:[#allocation3 + $0x31] sm:$0xff] %vm1870_vm0, %v1802_v14 }
 0x14a   :  { %v1652_v23 = vpop.f32.mrf.mxu2 }
 0x14b   :  { %v1738_v2 = vadd.f32 %v1652_v23, %v1406_v43  ;;  %2136 = vrot.lane.b32.xlu1 %v2068_v29, %s5016_s7  ;;  %v1289_v26 = vpop.f32.mrf.mxu0 }
 0x14c   :  { %v1411_v3 = vpop.f32.mrf.mxu1 }
 0x14d   :  { %v1771_v30 = vadd.f32 %v5686_v17, %v1738_v2  ;;  %v1412_v59 = vadd.f32 %v1411_v3, %v1289_v26 }
 0x14e   :  { %4622 = vmatmul.msk.f32.gmra.mxu0 %vm685_vm11, %v1507_v56 }
 0x14f   :  { %4655 = vmatmul.msk.f32.gmra.mxu1 %vm685_vm11, %v1505_v6  ;;  %4689 = vmatmul.msk.f32.gmra.mxu2 %vm685_vm11, %v1508_v35  ;;  %v1803_v55 = vmax.f32 %v1771_v30, 0.0  ;;  %v5739_v45 = vld [vmem:[#allocation2 + $0x100] sm:$0xff]  ;;  %v1509_v6 = vld [vmem:[#allocation2 + $0xd8] sm:$0xff]  ;;  %v5751_v14 = vld [vmem:[#allocation2 + $0x108] sm:$0xff] }
 0x150   :  { %4629 = vmatmul.msk.f32.gmra.mxu3 %vm685_vm11, %v5739_v45  ;;  %v2299_v30 = vld [vmem:[%s6781_s2 + $0x50] sm:$0xff] }
 0x151   :  { %v1843_v22 = vmul.f32 %v5145_v37, %v1803_v55  ;;  %2138 = vrot.lane.b32.xlu0 %v1803_v55, %s5016_s7  ;;  %1945 = vrot.lane.b32.xlu2 %v1803_v55, %s5015_s14 }
 0x152   :  { %v1655_v38 = vpop.f32.mrf.mxu2 }
 0x153   :  { %v1739_v39 = vadd.f32 %v1655_v38, %v1409_v33  ;;  %v1292_v40 = vpop.f32.mrf.mxu0  ;;  %1876 = vst.msk [vmem:[#allocation3 + $0x39] sm:$0xff] %vm1870_vm0, %v1843_v22 }
 0x154   :  { %v1414_v47 = vpop.f32.mrf.mxu1 }
 0x155   :  { %v1772_v57 = vadd.f32 %v5686_v17, %v1739_v39  ;;  %v1415_v43 = vadd.f32 %v1414_v47, %v1292_v40  ;;  %v2297_v40 = vld [vmem:[%s6781_s2 + $0x40] sm:$0xff]  ;;  %v2296_v47 = vld [vmem:[%s6781_s2 + $0x38] sm:$0xff] }
 0x156   :  { %4623 = vmatmul.msk.f32.gmra.mxu0 %vm685_vm11, %v1508_v35 }
 0x157   :  { %4656 = vmatmul.msk.f32.gmra.mxu1 %vm685_vm11, %v1506_v25  ;;  %4690 = vmatmul.msk.f32.gmra.mxu2 %vm685_vm11, %v1509_v6  ;;  %v1804_v37 = vmax.f32 %v1772_v57, 0.0  ;;  %v5754_v25 = vld [vmem:[#allocation2 + $0xe0] sm:$0xff] }
 0x158   :  { %4630 = vmatmul.msk.f32.gmra.mxu3 %vm685_vm11, %v5751_v14 }
 0x159   :  { %1947 = vrot.lane.b32.xlu1 %v1804_v37, %s5015_s14  ;;  %v2070_v50 = vmul.f32 %v5241_v11, %v1804_v37  ;;  %1877 = vst.msk [vmem:[#allocation3 + $0x41] sm:$0xff] %vm1870_vm0, %v1804_v37  ;;  %v2295_v37 = vld [vmem:[%s6781_s2 + $0x30] sm:$0xff] }
 0x15a   :  { %v1658_v4 = vpop.f32.mrf.mxu2 }
 0x15b   :  { %v1740_v36 = vadd.f32 %v1658_v4, %v1412_v59  ;;  %2140 = vrot.lane.b32.xlu2 %v2070_v50, %s5016_s7  ;;  %v1295_v5 = vpop.f32.mrf.mxu0 }
 0x15c   :  { %v1417_v49 = vpop.f32.mrf.mxu1 }
 0x15d   :  { %v1773_v7 = vadd.f32 %v5686_v17, %v1740_v36  ;;  %v1418_v13 = vadd.f32 %v1417_v49, %v1295_v5 }
 0x15e   :  { %4624 = vmatmul.msk.f32.gmra.mxu0 %vm685_vm11, %v1509_v6 }
 0x15f   :  { %4657 = vmatmul.msk.f32.gmra.mxu1 %vm685_vm11, %v1507_v56  ;;  %4691 = vmatmul.msk.f32.gmra.mxu2 %vm685_vm11, %v5754_v25  ;;  %v1805_v11 = vmax.f32 %v1773_v7, 0.0  ;;  %v2300_v56 = vld [vmem:[%s6781_s2 + $0x58] sm:$0xff]  ;;  %v2293_v7 = vld [vmem:[%s6781_s2 + $0x20] sm:$0xff] }
 0x160   :  { %2535 = vmatpush.msrb.mxu0 %v2300_v56  ;;  %v4707_v56 = vld [vmem:[%s6781_s2 + $0xa0] sm:$0xff] }
 0x161   :  { %v1845_v29 = vmul.f32 %v5160_v44, %v1805_v11  ;;  %1949 = vrot.lane.b32.xlu0 %v1805_v11, %s5015_s14  ;;  %2142 = vrot.lane.b32.xlu1 %v1805_v11, %s5016_s7 }
 0x162   :  { %v1661_v23 = vpop.f32.mrf.mxu2  ;;  %2536 = vmatpush.msrb.mxu0 %v2299_v30 }
 0x163   :  { %v1741_v2 = vadd.f32 %v1661_v23, %v1415_v43  ;;  %v1298_v26 = vpop.f32.mrf.mxu0  ;;  %1878 = vst.msk [vmem:[#allocation3 + $0x49] sm:$0xff] %vm1870_vm0, %v1845_v29  ;;  %v4709_v43 = vld [vmem:[%s6781_s2 + $0xb0] sm:$0xff]  ;;  %v2292_v29 = vld [vmem:[%s6781_s2 + $0x18] sm:$0xff] }
 0x164   :  { %v1420_v3 = vpop.f32.mrf.mxu1 }
 0x165   :  { %v1774_v27 = vadd.f32 %v5686_v17, %v1741_v2  ;;  %v1421_v59 = vadd.f32 %v1420_v3, %v1298_v26  ;;  %v4708_v2 = vld [vmem:[%s6781_s2 + $0xa8] sm:$0xff]  ;;  %v2291_v26 = vld [vmem:[%s6781_s2 + $0x10] sm:$0xff] }
 0x166   :  { %4625 = vmatmul.msk.f32.gmra.mxu0 %vm685_vm11, %v5754_v25 }
 0x167   :  { %4658 = vmatmul.msk.f32.gmra.mxu1 %vm685_vm11, %v1508_v35  ;;  %4692 = vmatmul.msk.f32.gmra.mxu2 %vm685_vm11, %v5510_v15  ;;  %v1806_v44 = vmax.f32 %v1774_v27, 0.0  ;;  %v2298_v35 = vld [vmem:[%s6781_s2 + $0x48] sm:$0xff] }
 0x168   :  { %2537 = vmatpush.msrb.mxu0 %v2298_v35 }
 0x169   :  { %1951 = vrot.lane.b32.xlu2 %v1806_v44, %s5015_s14  ;;  %v2072_v55 = vmul.f32 %v5262_v21, %v1806_v44  ;;  %1879 = vst.msk [vmem:[#allocation3 + $0x51] sm:$0xff] %vm1870_vm0, %v1806_v44  ;;  %v2290_v44 = vld [vmem:[%s6781_s2 + $0x8] sm:$0xff] }
 0x16a   :  { %v1664_v33 = vpop.f32.mrf.mxu2  ;;  %2538 = vmatpush.msrb.mxu0 %v2297_v40  ;;  %v4704_v40 = vld [vmem:[%s6781_s2 + $0x88] sm:$0xff] }
 0x16b   :  { %v1742_v22 = vadd.f32 %v1664_v33, %v1418_v13  ;;  %2144 = vrot.lane.b32.xlu0 %v2072_v55, %s5016_s7  ;;  %v1301_v38 = vpop.f32.mrf.mxu0  ;;  %v4706_v55 = vld [vmem:[%s6781_s2 + $0x98] sm:$0xff]  ;;  %v2289_v33 = vld [vmem:[%s6781_s2] sm:$0xff] }
 0x16c   :  { %v1423_v39 = vpop.f32.mrf.mxu1  ;;  %2539 = vmatpush.msrb.mxu0 %v2296_v47 }
 0x16d   :  { %v1775_v21 = vadd.f32 %v5686_v17, %v1742_v22  ;;  %v2257_v22 = vld [vmem:[#allocation3] sm:$0xff] }
 0x16e   :  { %2540 = vmatpush.msrb.mxu0 %v2295_v37 }
 0x16f   :  { %4659 = vmatmul.msk.f32.gmra.mxu1 %vm685_vm11, %v1509_v6  ;;  %4693 = vmatmul.msk.f32.gmra.mxu2 %vm685_vm11, %v5521_v31  ;;  %v1807_v57 = vmax.f32 %v1775_v21, 0.0  ;;  %v2294_v6 = vld [vmem:[%s6781_s2 + $0x28] sm:$0xff] }
 0x170   :  { %2541 = vmatpush.msrb.mxu0 %v2294_v6  ;;  %v4785_v6 = vld [vmem:[%s6781_s2 + $0x110] sm:$0xff] }
 0x171   :  { %v1847_v50 = vmul.f32 %v5203_v58, %v1807_v57  ;;  %1953 = vrot.lane.b32.xlu1 %v1807_v57, %s5015_s14  ;;  %2146 = vrot.lane.b32.xlu2 %v1807_v57, %s5016_s7  ;;  %v4710_v58 = vld [vmem:[%s6781_s2 + $0xb8] sm:$0xff] }
 0x172   :  { %v1667_v4 = vpop.f32.mrf.mxu2  ;;  %2416 = vmatpush.msrb.mxu3 %v4710_v58  ;;  %2542 = vmatpush.msrb.mxu0 %v2293_v7  ;;  %v4699_v7 = vld [vmem:[%s6781_s2 + $0x60] sm:$0xff] }
 0x173   :  { %v1743_v36 = vadd.f32 %v1667_v4, %v1421_v59  ;;  %v1304_v5 = vpop.f32.mrf.mxu0  ;;  %1880 = vst.msk [vmem:[#allocation3 + $0x59] sm:$0xff] %vm1870_vm0, %v1847_v50  ;;  %v4701_v4 = vld [vmem:[%s6781_s2 + $0x70] sm:$0xff] }
 0x174   :  { %v1426_v49 = vpop.f32.mrf.mxu1  ;;  %2417 = vmatpush.msrb.mxu3 %v4709_v43  ;;  %2543 = vmatpush.msrb.mxu0 %v2292_v29 }
 0x175   :  { %v1776_v11 = vadd.f32 %v5686_v17, %v1743_v36  ;;  %v1427_v21 = vadd.f32 %v1426_v49, %v1304_v5  ;;  %v4700_v5 = vld [vmem:[%s6781_s2 + $0x68] sm:$0xff] }
 0x176   :  { %2418 = vmatpush.msrb.mxu3 %v4708_v2  ;;  %2544 = vmatpush.msrb.mxu0 %v2291_v26  ;;  %v1516_v2 = vld [vmem:[#allocation2 + $0x110] sm:$0xff] }
 0x177   :  { %4660 = vmatmul.msk.f32.gmra.mxu1 %vm685_vm11, %v5754_v25  ;;  %4694 = vmatmul.msk.f32.gmra.mxu2 %vm685_vm11, %v5676_v34  ;;  %v1808_v23 = vmax.f32 %v1776_v11, 0.0  ;;  %v1424_v25 = vadd.f32 %v1423_v39, %v1301_v38  ;;  %v4705_v38 = vld [vmem:[%s6781_s2 + $0x90] sm:$0xff]  ;;  %v4786_v39 = vld [vmem:[%s6781_s2 + $0x118] sm:$0xff] }
 0x178   :  { %2419 = vmatpush.msrb.mxu3 %v4707_v56  ;;  %2545 = vmatpush.msrb.mxu0 %v2290_v44 }
 0x179   :  { %1955 = vrot.lane.b32.xlu0 %v1808_v23, %s5015_s14  ;;  %v2074_v3 = vmul.f32 %v5278_v28, %v1808_v23  ;;  %1881 = vst.msk [vmem:[#allocation3 + $0x61] sm:$0xff] %vm1870_vm0, %v1808_v23  ;;  %2789 = vmatpush.msra.mxu1 %v4786_v39 }
 0x17a   :  { %v1670_v27 = vpop.f32.mrf.mxu2  ;;  %2420 = vmatpush.msrb.mxu3 %v4706_v55  ;;  %2546 = vmatpush.msrb.mxu0 %v2289_v33  ;;  %v4779_v33 = vld [vmem:[%s6781_s2 + $0xe0] sm:$0xff] }
 0x17b   :  { %v1744_v30 = vadd.f32 %v1670_v27, %v1424_v25  ;;  %2148 = vrot.lane.b32.xlu1 %v2074_v3, %s5016_s7  ;;  %v1307_v28 = vpop.f32.mrf.mxu0  ;;  %4743 = vmatmul.msk.f32.vlgmr.msrb.gmra.mxu0 %vm1830_vm8, %v2257_v22  ;;  %v4782_v25 = vld [vmem:[%s6781_s2 + $0xf8] sm:$0xff]  ;;  %v4781_v3 = vld [vmem:[%s6781_s2 + $0xf0] sm:$0xff] }
 0x17c   :  { %v1429_v13 = vpop.f32.mrf.mxu1  ;;  %2421 = vmatpush.msrb.mxu3 %v4705_v38  ;;  %2790 = vmatpush.msra.mxu1 %v4785_v6  ;;  %v4778_v38 = vld [vmem:[%s6781_s2 + $0xd8] sm:$0xff] }
 0x17d   :  { %v1777_v35 = vadd.f32 %v5686_v17, %v1744_v30  ;;  %v1430_v49 = vadd.f32 %v1429_v13, %v1307_v28  ;;  %v4780_v30 = vld [vmem:[%s6781_s2 + $0xe8] sm:$0xff] }
 0x17e   :  { %2422 = vmatpush.msrb.mxu3 %v4704_v40 }
 0x17f   :  { %4661 = vmatmul.msk.f32.gmra.mxu1 %vm685_vm11, %v5510_v15  ;;  %4695 = vmatmul.msk.f32.gmra.mxu2 %vm685_vm11, %v5739_v45  ;;  %v1809_v18 = vmax.f32 %v1777_v35, 0.0  ;;  %v4703_v45 = vld [vmem:[%s6781_s2 + $0x80] sm:$0xff]  ;;  %v1517_v35 = vld [vmem:[#allocation2 + $0x118] sm:$0xff] }
 0x180   :  { %2423 = vmatpush.msrb.mxu3 %v4703_v45 }
 0x181   :  { %v1849_v47 = vmul.f32 %v5217_v1, %v1809_v18  ;;  %2150 = vrot.lane.b32.xlu0 %v1809_v18, %s5016_s7  ;;  %1957 = vrot.lane.b32.xlu2 %v1809_v18, %s5015_s14  ;;  %v4702_v1 = vld [vmem:[%s6781_s2 + $0x78] sm:$0xff]  ;;  %v4777_v18 = vld [vmem:[%s6781_s2 + $0xd0] sm:$0xff] }
 0x182   :  { %v1673_v15 = vpop.f32.mrf.mxu2  ;;  %2424 = vmatpush.msrb.mxu3 %v4702_v1 }
 0x183   :  { %v1745_v57 = vadd.f32 %v1673_v15, %v1427_v21  ;;  %v1310_v37 = vpop.f32.mrf.mxu0  ;;  %1882 = vst.msk [vmem:[#allocation3 + $0x69] sm:$0xff] %vm1870_vm0, %v1849_v47  ;;  %v4776_v47 = vld [vmem:[%s6781_s2 + $0xc8] sm:$0xff] }
 0x184   :  { %v1432_v59 = vpop.f32.mrf.mxu1  ;;  %2425 = vmatpush.msrb.mxu3 %v4701_v4 }
 0x185   :  { %v1778_v50 = vadd.f32 %v5686_v17, %v1745_v57  ;;  %v1433_v56 = vadd.f32 %v1432_v59, %v1310_v37  ;;  %v4775_v37 = vld [vmem:[%s6781_s2 + $0xc0] sm:$0xff] }
 0x186   :  { %2426 = vmatpush.msrb.mxu3 %v4700_v5 }
 0x187   :  { %4662 = vmatmul.msk.f32.gmra.mxu1 %vm685_vm11, %v5521_v31  ;;  %4696 = vmatmul.msk.f32.gmra.mxu2 %vm685_vm11, %v5751_v14  ;;  %v1810_v36 = vmax.f32 %v1778_v50, 0.0  ;;  %v4784_v31 = vld [vmem:[%s6781_s2 + $0x108] sm:$0xff] }
 0x188   :  { %2791 = vmatpush.msra.mxu1 %v4784_v31  ;;  %2427 = vmatpush.msrb.mxu3 %v4699_v7 }
 0x189   :  { %1959 = vrot.lane.b32.xlu1 %v1810_v36, %s5015_s14  ;;  %v2076_v58 = vmul.f32 %v5341_v54, %v1810_v36  ;;  %1883 = vst.msk [vmem:[#allocation3 + $0x71] sm:$0xff] %vm1870_vm0, %v1810_v36  ;;  %v4783_v54 = vld [vmem:[%s6781_s2 + $0x100] sm:$0xff] }
 0x18a   :  { %v1676_v14 = vpop.f32.mrf.mxu2  ;;  %2792 = vmatpush.msra.mxu1 %v4783_v54 }
 0x18b   :  { %v1746_v11 = vadd.f32 %v1676_v14, %v1430_v49  ;;  %2152 = vrot.lane.b32.xlu2 %v2076_v58, %s5016_s7  ;;  %v1938_v43 = vpop.permute.xlu2 %1937  ;;  %v1313_v29 = vpop.f32.mrf.mxu0 }
 0x18c   :  { %2033 = vst.msk [vmem:[#allocation3 + $0x18] sm:$0xff] %vm2031_vm10, %v1938_v43  ;;  %v1435_v23 = vpop.f32.mrf.mxu1  ;;  %2793 = vmatpush.msra.mxu1 %v4782_v25 }
 0x18d   :  { %v1779_v26 = vadd.f32 %v5686_v17, %v1746_v11  ;;  %v1436_v40 = vadd.f32 %v1435_v23, %v1313_v29 }
 0x18e   :  { %2794 = vmatpush.msra.mxu1 %v4781_v3 }
 0x18f   :  { %4663 = vmatmul.msk.f32.gmra.mxu1 %vm685_vm11, %v5676_v34  ;;  %4697 = vmatmul.msk.f32.gmra.mxu2 %vm685_vm11, %v1516_v2  ;;  %v1811_v27 = vmax.f32 %v1779_v26, 0.0 }
 0x190   :  { %2795 = vmatpush.msra.mxu1 %v4780_v30 }
 0x191   :  { %v1851_v44 = vmul.f32 %v5244_v12, %v1811_v27  ;;  %1961 = vrot.lane.b32.xlu0 %v1811_v27, %s5015_s14  ;;  %2154 = vrot.lane.b32.xlu1 %v1811_v27, %s5016_s7 }
 0x192   :  { %v1679_v28 = vpop.f32.mrf.mxu2  ;;  %2796 = vmatpush.msra.mxu1 %v4779_v33 }
 0x193   :  { %1884 = vst.msk [vmem:[#allocation3 + $0x79] sm:$0xff] %vm1870_vm0, %v1851_v44  ;;  %v1747_v34 = vadd.f32 %v1679_v28, %v1433_v56  ;;  %v1940_v13 = vpop.permute.xlu2 %1939  ;;  %v1316_v55 = vpop.f32.mrf.mxu0 }
 0x194   :  { %2034 = vst.msk [vmem:[#allocation3 + $0x20] sm:$0xff] %vm2031_vm10, %v1940_v13  ;;  %v1438_v12 = vpop.f32.mrf.mxu1  ;;  %2797 = vmatpush.msra.mxu1 %v4778_v38 }
 0x195   :  { %v1780_v22 = vadd.f32 %v5686_v17, %v1747_v34  ;;  %v1439_v6 = vadd.f32 %v1438_v12, %v1316_v55 }
 0x196   :  { %2798 = vmatpush.msra.mxu1 %v4777_v18 }
 0x197   :  { %4698 = vmatmul.msk.f32.gmra.mxu2 %vm685_vm11, %v1517_v35  ;;  %v1812_v39 = vmax.f32 %v1780_v22, 0.0  ;;  %vm2224_vm11 = vcmask 785920  }
 0x198   :  { %2799 = vmatpush.msra.mxu1 %v4776_v47 }
 0x199   :  { %1963 = vrot.lane.b32.xlu2 %v1812_v39, %s5015_s14  ;;  %1885 = vst.msk [vmem:[#allocation3 + $0x81] sm:$0xff] %vm1870_vm0, %v1812_v39  ;;  %v2078_v21 = vmul.f32 %v5350_v61, %v1812_v39 }
 0x19a   :  { %v1682_v15 = vpop.f32.mrf.mxu2  ;;  %2800 = vmatpush.msra.mxu1 %v4775_v37 }
 0x19b   :  { %v1748_v45 = vadd.f32 %v1682_v15, %v1436_v40  ;;  %v1936_v57 = vpop.permute.xlu1 %1935  ;;  %2156 = vrot.lane.b32.xlu0 %v2078_v21, %s5016_s7  ;;  %v1319_v59 = vpop.f32.mrf.mxu0 }
 0x19c   :  { %2032 = vst.msk [vmem:[#allocation3 + $0x10] sm:$0xff] %vm2031_vm10, %v1936_v57  ;;  %v1441_v1 = vpop.f32.mrf.mxu1  ;;  %v2135_v49 = vpop.permute.xlu2 %2134 }
 0x19d   :  { %v1781_v61 = vadd.f32 %v5686_v17, %v1748_v45  ;;  %v2129_v50 = vpop.permute.xlu0 %2128  ;;  %v1442_v29 = vadd.f32 %v1441_v1, %v1319_v59 }
 0x19e   :  { %2225 = vst.msk [vmem:[#allocation3 + $0xf] sm:$0xff] %vm2224_vm11, %v2129_v50 }
 0x19f   :  { %v1813_v4 = vmax.f32 %v1781_v61, 0.0 }
 0x1a1   :  { %v1853_v36 = vmul.f32 %v5287_v32, %v1813_v4  ;;  %1965 = vrot.lane.b32.xlu1 %v1813_v4, %s5015_s14  ;;  %2158 = vrot.lane.b32.xlu2 %v1813_v4, %s5016_s7 }
 0x1a2   :  { %v1685_v5 = vpop.f32.mrf.mxu2 }
 0x1a3   :  { %1886 = vst.msk [vmem:[#allocation3 + $0x89] sm:$0xff] %vm1870_vm0, %v1853_v36  ;;  %v1749_v58 = vadd.f32 %v1685_v5, %v1439_v6  ;;  %v2131_v31 = vpop.permute.xlu1 %2130  ;;  %v1322_v14 = vpop.f32.mrf.mxu0 }
 0x1a4   :  { %2226 = vst.msk [vmem:[#allocation3 + $0x17] sm:$0xff] %vm2224_vm11, %v2131_v31  ;;  %v1444_v7 = vpop.f32.mrf.mxu1 }
 0x1a5   :  { %v1782_v11 = vadd.f32 %v5686_v17, %v1749_v58  ;;  %v2258_v43 = vld [vmem:[#allocation3 + $0x8] sm:$0xff]  ;;  %v1445_v30 = vadd.f32 %v1444_v7, %v1322_v14 }
 0x1a6   :  { %4744 = vmatmul.msk.f32.gmra.mxu0 %vm1830_vm8, %v2258_v43 }
 0x1a7   :  { %v1814_v32 = vmax.f32 %v1782_v11, 0.0 }
 0x1a9   :  { %1967 = vrot.lane.b32.xlu0 %v1814_v32, %s5015_s14  ;;  %1887 = vst.msk [vmem:[#allocation3 + $0x91] sm:$0xff] %vm1870_vm0, %v1814_v32  ;;  %v2080_v54 = vmul.f32 %v5381_v9, %v1814_v32 }
 0x1aa   :  { %v1688_v23 = vpop.f32.mrf.mxu2 }
 0x1ab   :  { %v1750_v2 = vadd.f32 %v1688_v23, %v1442_v29  ;;  %2160 = vrot.lane.b32.xlu1 %v2080_v54, %s5016_s7  ;;  %v1946_v26 = vpop.permute.xlu2 %1945  ;;  %v2259_v25 = vld [vmem:[#allocation3 + $0x10] sm:$0xff]  ;;  %v1325_v3 = vpop.f32.mrf.mxu0 }
 0x1ac   :  { %2037 = vst.msk [vmem:[#allocation3 + $0x38] sm:$0xff] %vm2031_vm10, %v1946_v26  ;;  %v1447_v27 = vpop.f32.mrf.mxu1  ;;  %4711 = vmatmul.msk.f32.vlgmr.msrb.gmra.mxu3 %vm1830_vm8, %v2259_v25 }
 0x1ad   :  { %v1783_v56 = vadd.f32 %v5686_v17, %v1750_v2  ;;  %v2133_v44 = vpop.permute.xlu1 %2132  ;;  %v1448_v38 = vadd.f32 %v1447_v27, %v1325_v3 }
 0x1ae   :  { %2227 = vst.msk [vmem:[#allocation3 + $0x1f] sm:$0xff] %vm2224_vm11, %v2133_v44  ;;  %4745 = vmatmul.msk.f32.gmra.mxu0 %vm1830_vm8, %v2259_v25 }
 0x1af   :  { %v1815_v9 = vmax.f32 %v1783_v56, 0.0 }
 0x1b1   :  { %v1855_v28 = vmul.f32 %v5305_v42, %v1815_v9  ;;  %2162 = vrot.lane.b32.xlu0 %v1815_v9, %s5016_s7  ;;  %1969 = vrot.lane.b32.xlu2 %v1815_v9, %s5015_s14 }
 0x1b2   :  { %v1691_v34 = vpop.f32.mrf.mxu2 }
 0x1b3   :  { %1888 = vst.msk [vmem:[#allocation3 + $0x99] sm:$0xff] %vm1870_vm0, %v1855_v28  ;;  %v1751_v13 = vadd.f32 %v1691_v34, %v1445_v30  ;;  %v1942_v55 = vpop.permute.xlu0 %1941  ;;  %v1328_v33 = vpop.f32.mrf.mxu0 }
 0x1b4   :  { %2035 = vst.msk [vmem:[#allocation3 + $0x28] sm:$0xff] %vm2031_vm10, %v1942_v55  ;;  %v1450_v12 = vpop.f32.mrf.mxu1 }
 0x1b5   :  { %v1784_v35 = vadd.f32 %v5686_v17, %v1751_v13  ;;  %2228 = vst.msk [vmem:[#allocation3 + $0x27] sm:$0xff] %vm2224_vm11, %v2135_v49  ;;  %v2260_v22 = vld [vmem:[#allocation3 + $0x18] sm:$0xff]  ;;  %v2141_v40 = vpop.permute.xlu2 %2140  ;;  %v1451_v1 = vadd.f32 %v1450_v12, %v1328_v33 }
 0x1b6   :  { %4712 = vmatmul.msk.f32.gmra.mxu3 %vm1830_vm8, %v2260_v22  ;;  %4746 = vmatmul.msk.f32.gmra.mxu0 %vm1830_vm8, %v2260_v22 }
 0x1b7   :  { %v1816_v42 = vmax.f32 %v1784_v35, 0.0 }
 0x1b9   :  { %1971 = vrot.lane.b32.xlu1 %v1816_v42, %s5015_s14  ;;  %1889 = vst.msk [vmem:[#allocation3 + $0xa1] sm:$0xff] %vm1870_vm0, %v1816_v42  ;;  %v2082_v18 = vmul.f32 %v5465_v53, %v1816_v42 }
 0x1ba   :  { %v1694_v39 = vpop.f32.mrf.mxu2 }
 0x1bb   :  { %v1752_v21 = vadd.f32 %v1694_v39, %v1448_v38  ;;  %v1944_v47 = vpop.permute.xlu0 %1943  ;;  %2164 = vrot.lane.b32.xlu2 %v2082_v18, %s5016_s7  ;;  %v1331_v15 = vpop.f32.mrf.mxu0 }
 0x1bc   :  { %2036 = vst.msk [vmem:[#allocation3 + $0x30] sm:$0xff] %vm2031_vm10, %v1944_v47  ;;  %v1453_v45 = vpop.f32.mrf.mxu1  ;;  %v2644_v57 = vld [vmem:[#allocation3 + $0x20] sm:$0xff] }
 0x1bd   :  { %v1785_v37 = vadd.f32 %v5686_v17, %v1752_v21  ;;  %v2137_v59 = vpop.permute.xlu1 %2136  ;;  %4787 = vmatmul.msk.f32.vlgmr.msra.gmra.mxu1 %vm1830_vm8, %v2644_v57  ;;  %v1454_v14 = vadd.f32 %v1453_v45, %v1331_v15 }
 0x1be   :  { %2229 = vst.msk [vmem:[#allocation3 + $0x2f] sm:$0xff] %vm2224_vm11, %v2137_v59  ;;  %4713 = vmatmul.msk.f32.gmra.mxu3 %vm1830_vm8, %v2644_v57  ;;  %4747 = vmatmul.msk.f32.gmra.mxu0 %vm1830_vm8, %v2644_v57 }
 0x1bf   :  { %v1817_v53 = vmax.f32 %v1785_v37, 0.0 }
 0x1c1   :  { %v1857_v61 = vmul.f32 %v5353_v62, %v1817_v53  ;;  %1973 = vrot.lane.b32.xlu0 %v1817_v53, %s5015_s14  ;;  %2166 = vrot.lane.b32.xlu1 %v1817_v53, %s5016_s7 }
 0x1c2   :  { %v1697_v50 = vpop.f32.mrf.mxu2 }
 0x1c3   :  { %1890 = vst.msk [vmem:[#allocation3 + $0xa9] sm:$0xff] %vm1870_vm0, %v1857_v61  ;;  %v1753_v4 = vadd.f32 %v1697_v50, %v1451_v1  ;;  %v2139_v6 = vpop.permute.xlu0 %2138  ;;  %v1952_v36 = vpop.permute.xlu2 %1951 }
 0x1c4   :  { %2230 = vst.msk [vmem:[#allocation3 + $0x37] sm:$0xff] %vm2224_vm11, %v2139_v6  ;;  %v1456_v5 = vpop.f32.mrf.mxu1  ;;  %v1334_v31 = vpop.f32.mrf.mxu0 }
 0x1c5   :  { %v1786_v49 = vadd.f32 %v5686_v17, %v1753_v4  ;;  %2040 = vst.msk [vmem:[#allocation3 + $0x50] sm:$0xff] %vm2031_vm10, %v1952_v36  ;;  %v2262_v58 = vld [vmem:[#allocation3 + $0x28] sm:$0xff]  ;;  %v1457_v26 = vadd.f32 %v1456_v5, %v1334_v31 }
 0x1c6   :  { %4714 = vmatmul.msk.f32.gmra.mxu3 %vm1830_vm8, %v2262_v58  ;;  %4748 = vmatmul.msk.f32.gmra.mxu0 %vm1830_vm8, %v2262_v58 }
 0x1c7   :  { %4788 = vmatmul.msk.f32.gmra.mxu1 %vm1830_vm8, %v2262_v58  ;;  %v1818_v62 = vmax.f32 %v1786_v49, 0.0 }
 0x1c9   :  { %1975 = vrot.lane.b32.xlu2 %v1818_v62, %s5015_s14  ;;  %1891 = vst.msk [vmem:[#allocation3 + $0xb1] sm:$0xff] %vm1870_vm0, %v1818_v62  ;;  %v2084_v7 = vmul.f32 %v5479_v60, %v1818_v62 }
 0x1ca   :  { %v1700_v11 = vpop.f32.mrf.mxu2 }
 0x1cb   :  { %v1754_v43 = vadd.f32 %v1700_v11, %v1454_v14  ;;  %2168 = vrot.lane.b32.xlu0 %v2084_v7, %s5016_s7  ;;  %v1948_v32 = vpop.permute.xlu1 %1947  ;;  %v2263_v23 = vld [vmem:[#allocation3 + $0x30] sm:$0xff]  ;;  %v2147_v3 = vpop.permute.xlu2 %2146 }
 0x1cc   :  { %2038 = vst.msk [vmem:[#allocation3 + $0x40] sm:$0xff] %vm2031_vm10, %v1948_v32  ;;  %v1459_v29 = vpop.f32.mrf.mxu1  ;;  %v1337_v2 = vpop.f32.mrf.mxu0 }
 0x1cd   :  { %v1787_v54 = vadd.f32 %v5686_v17, %v1754_v43  ;;  %2231 = vst.msk [vmem:[#allocation3 + $0x3f] sm:$0xff] %vm2224_vm11, %v2141_v40  ;;  %v1460_v13 = vadd.f32 %v1459_v29, %v1337_v2  ;;  %v6051_v29 = vld [vmem:[%s6780_s4] ss:$0 sm:$0xff] }
 0x1ce   :  { %4715 = vmatmul.msk.f32.gmra.mxu3 %vm1830_vm8, %v2263_v23  ;;  %4749 = vmatmul.msk.f32.gmra.mxu0 %vm1830_vm8, %v2263_v23 }
 0x1cf   :  { %4789 = vmatmul.msk.f32.gmra.mxu1 %vm1830_vm8, %v2263_v23  ;;  %v1819_v60 = vmax.f32 %v1787_v54, 0.0 }
 0x1d1   :  { %v1859_v25 = vmul.f32 %v5398_v16, %v1819_v60  ;;  %1977 = vrot.lane.b32.xlu1 %v1819_v60, %s5015_s14  ;;  %2170 = vrot.lane.b32.xlu2 %v1819_v60, %s5016_s7 }
 0x1d2   :  { %v1703_v27 = vpop.f32.mrf.mxu2 }
 0x1d3   :  { %1892 = vst.msk [vmem:[#allocation3 + $0xb9] sm:$0xff] %vm1870_vm0, %v1859_v25  ;;  %v1755_v56 = vadd.f32 %v1703_v27, %v1457_v26  ;;  %v1950_v44 = vpop.permute.xlu0 %1949  ;;  %v2143_v9 = vpop.permute.xlu1 %2142 }
 0x1d4   :  { %2039 = vst.msk [vmem:[#allocation3 + $0x48] sm:$0xff] %vm2031_vm10, %v1950_v44  ;;  %v1462_v30 = vpop.f32.mrf.mxu1  ;;  %v2264_v28 = vld [vmem:[#allocation3 + $0x38] sm:$0xff]  ;;  %v1340_v33 = vpop.f32.mrf.mxu0 }
 0x1d5   :  { %v1788_v34 = vadd.f32 %v5686_v17, %v1755_v56  ;;  %2232 = vst.msk [vmem:[#allocation3 + $0x47] sm:$0xff] %vm2224_vm11, %v2143_v9  ;;  %v1463_v40 = vadd.f32 %v1462_v30, %v1340_v33 }
 0x1d6   :  { %4716 = vmatmul.msk.f32.gmra.mxu3 %vm1830_vm8, %v2264_v28  ;;  %4750 = vmatmul.msk.f32.gmra.mxu0 %vm1830_vm8, %v2264_v28 }
 0x1d7   :  { %4790 = vmatmul.msk.f32.gmra.mxu1 %vm1830_vm8, %v2264_v28  ;;  %v1820_v16 = vmax.f32 %v1788_v34, 0.0 }
 0x1d9   :  { %1979 = vrot.lane.b32.xlu0 %v1820_v16, %s5015_s14  ;;  %1893 = vst.msk [vmem:[#allocation3 + $0xc1] sm:$0xff] %vm1870_vm0, %v1820_v16  ;;  %v2086_v55 = vmul.f32 %v5504_v10, %v1820_v16 }
 0x1da   :  { %v1706_v12 = vpop.f32.mrf.mxu2 }
 0x1db   :  { %v1756_v35 = vadd.f32 %v1706_v12, %v1460_v13  ;;  %2172 = vrot.lane.b32.xlu1 %v2086_v55, %s5016_s7  ;;  %v1958_v22 = vpop.permute.xlu2 %1957 }
 0x1dc   :  { %2043 = vst.msk [vmem:[#allocation3 + $0x68] sm:$0xff] %vm2031_vm10, %v1958_v22  ;;  %v1465_v42 = vpop.f32.mrf.mxu1  ;;  %v2265_v38 = vld [vmem:[#allocation3 + $0x40] sm:$0xff]  ;;  %v1343_v57 = vpop.f32.mrf.mxu0 }
 0x1dd   :  { %v1789_v18 = vadd.f32 %v5686_v17, %v1756_v35  ;;  %v2145_v39 = vpop.permute.xlu0 %2144  ;;  %v1466_v1 = vadd.f32 %v1465_v42, %v1343_v57 }
 0x1de   :  { %2233 = vst.msk [vmem:[#allocation3 + $0x4f] sm:$0xff] %vm2224_vm11, %v2145_v39  ;;  %4717 = vmatmul.msk.f32.gmra.mxu3 %vm1830_vm8, %v2265_v38  ;;  %4751 = vmatmul.msk.f32.gmra.mxu0 %vm1830_vm8, %v2265_v38 }
 0x1df   :  { %4791 = vmatmul.msk.f32.gmra.mxu1 %vm1830_vm8, %v2265_v38  ;;  %v1821_v10 = vmax.f32 %v1789_v18, 0.0 }
 0x1e1   :  { %v1861_v21 = vmul.f32 %v5448_v41, %v1821_v10  ;;  %2174 = vrot.lane.b32.xlu0 %v1821_v10, %s5016_s7  ;;  %1981 = vrot.lane.b32.xlu2 %v1821_v10, %s5015_s14 }
 0x1e2   :  { %v1709_v47 = vpop.f32.mrf.mxu2 }
 0x1e3   :  { %1894 = vst.msk [vmem:[#allocation3 + $0xc9] sm:$0xff] %vm1870_vm0, %v1861_v21  ;;  %v1757_v15 = vadd.f32 %v1709_v47, %v1463_v40  ;;  %v1954_v45 = vpop.permute.xlu1 %1953 }
 0x1e4   :  { %2041 = vst.msk [vmem:[#allocation3 + $0x58] sm:$0xff] %vm2031_vm10, %v1954_v45  ;;  %v1468_v37 = vpop.f32.mrf.mxu1  ;;  %v1346_v31 = vpop.f32.mrf.mxu0 }
 0x1e5   :  { %v1790_v59 = vadd.f32 %v5686_v17, %v1757_v15  ;;  %2234 = vst.msk [vmem:[#allocation3 + $0x57] sm:$0xff] %vm2224_vm11, %v2147_v3  ;;  %v2266_v53 = vld [vmem:[#allocation3 + $0x48] sm:$0xff]  ;;  %v2153_v4 = vpop.permute.xlu2 %2152  ;;  %v1469_v14 = vadd.f32 %v1468_v37, %v1346_v31 }
 0x1e6   :  { %4718 = vmatmul.msk.f32.gmra.mxu3 %vm1830_vm8, %v2266_v53  ;;  %4752 = vmatmul.msk.f32.gmra.mxu0 %vm1830_vm8, %v2266_v53 }
 0x1e7   :  { %4792 = vmatmul.msk.f32.gmra.mxu1 %vm1830_vm8, %v2266_v53  ;;  %v1822_v41 = vmax.f32 %v1790_v59, 0.0 }
 0x1e9   :  { %1983 = vrot.lane.b32.xlu1 %v1822_v41, %s5015_s14  ;;  %1895 = vst.msk [vmem:[#allocation3 + $0xd1] sm:$0xff] %vm1870_vm0, %v1822_v41  ;;  %v2088_v61 = vmul.f32 %v5542_v52, %v1822_v41 }
 0x1ea   :  { %v1712_v50 = vpop.f32.mrf.mxu2 }
 0x1eb   :  { %v1758_v6 = vadd.f32 %v1712_v50, %v1466_v1  ;;  %v1956_v36 = vpop.permute.xlu0 %1955  ;;  %2176 = vrot.lane.b32.xlu2 %v2088_v61, %s5016_s7 }
 0x1ec   :  { %2042 = vst.msk [vmem:[#allocation3 + $0x60] sm:$0xff] %vm2031_vm10, %v1956_v36  ;;  %v2267_v5 = vld [vmem:[#allocation3 + $0x50] sm:$0xff]  ;;  %v1471_v62 = vpop.f32.mrf.mxu1 }
 0x1ed   :  { %v1791_v49 = vadd.f32 %v5686_v17, %v1758_v6  ;;  %v2149_v58 = vpop.permute.xlu1 %2148  ;;  %v1472_v2 = vadd.f32 %v1471_v62, %v5655_v0 }
 0x1ee   :  { %2235 = vst.msk [vmem:[#allocation3 + $0x5f] sm:$0xff] %vm2224_vm11, %v2149_v58  ;;  %4719 = vmatmul.msk.f32.gmra.mxu3 %vm1830_vm8, %v2267_v5  ;;  %4753 = vmatmul.msk.f32.gmra.mxu0 %vm1830_vm8, %v2267_v5 }
 0x1ef   :  { %4793 = vmatmul.msk.f32.gmra.mxu1 %vm1830_vm8, %v2267_v5  ;;  %v1823_v52 = vmax.f32 %v1791_v49, 0.0 }
 0x1f1   :  { %v1863_v7 = vmul.f32 %v5316_v48, %v1823_v52  ;;  %1985 = vrot.lane.b32.xlu0 %v1823_v52, %s5015_s14  ;;  %2178 = vrot.lane.b32.xlu1 %v1823_v52, %s5016_s7 }
 0x1f2   :  { %v1715_v17 = vpop.f32.mrf.mxu2 }
 0x1f3   :  { %1896 = vst.msk [vmem:[#allocation3 + $0xd9] sm:$0xff] %vm1870_vm0, %v1863_v7  ;;  %v1759_v11 = vadd.f32 %v1715_v17, %v1469_v14  ;;  %v2151_v43 = vpop.permute.xlu0 %2150  ;;  %v1964_v32 = vpop.permute.xlu2 %1963 }
 0x1f4   :  { %2236 = vst.msk [vmem:[#allocation3 + $0x67] sm:$0xff] %vm2224_vm11, %v2151_v43  ;;  %v1474_v60 = vpop.f32.mrf.mxu1 }
 0x1f5   :  { %v1792_v54 = vadd.f32 %v6051_v29, %v1759_v11  ;;  %2046 = vst.msk [vmem:[#allocation3 + $0x80] sm:$0xff] %vm2031_vm10, %v1964_v32  ;;  %v2268_v48 = vld [vmem:[#allocation3 + $0x58] sm:$0xff] }
 0x1f6   :  { %4720 = vmatmul.msk.f32.gmra.mxu3 %vm1830_vm8, %v2268_v48  ;;  %4754 = vmatmul.msk.f32.gmra.mxu0 %vm1830_vm8, %v2268_v48 }
 0x1f7   :  { %4794 = vmatmul.msk.f32.gmra.mxu1 %vm1830_vm8, %v2268_v48  ;;  %v1824_v23 = vmax.f32 %v1792_v54, 0.0 }
 0x1f9   :  { %1987 = vrot.lane.b32.xlu2 %v1824_v23, %s5015_s14  ;;  %1897 = vst.msk [vmem:[#allocation3 + $0xe1] sm:$0xff] %vm1870_vm0, %v1824_v23  ;;  %v2090_v26 = vmul.f32 %v5562_v51, %v1824_v23  ;;  %v1475_v51 = vadd.f32 %v1474_v60, %v5663_v63  ;;  %v1355_v63 = vpop.f32.mrf.mxu3 }
 0x1fa   :  { %v1718_v25 = vpop.f32.mrf.mxu2 }
 0x1fb   :  { %v1760_v3 = vadd.f32 %v1718_v25, %v1472_v2  ;;  %2180 = vrot.lane.b32.xlu0 %v2090_v26, %s5016_s7  ;;  %v1960_v27 = vpop.permute.xlu1 %1959  ;;  %v2269_v44 = vld [vmem:[#allocation3 + $0x60] sm:$0xff]  ;;  %v2159_v9 = vpop.permute.xlu2 %2158 }
 0x1fc   :  { %2044 = vst.msk [vmem:[#allocation3 + $0x70] sm:$0xff] %vm2031_vm10, %v1960_v27  ;;  %v1477_v28 = vpop.f32.mrf.mxu1 }
 0x1fd   :  { %v1793_v56 = vadd.f32 %v6051_v29, %v1760_v3  ;;  %2237 = vst.msk [vmem:[#allocation3 + $0x6f] sm:$0xff] %vm2224_vm11, %v2153_v4  ;;  %v1478_v35 = vadd.f32 %v1477_v28, %v1355_v63  ;;  %v2548_v4 = vpop.f32.mrf.mxu0 }
 0x1fe   :  { %4721 = vmatmul.msk.f32.gmra.mxu3 %vm1830_vm8, %v2269_v44  ;;  %4755 = vmatmul.msk.f32.gmra.mxu0 %vm1830_vm8, %v2269_v44 }
 0x1ff   :  { %4795 = vmatmul.msk.f32.gmra.mxu1 %vm1830_vm8, %v2269_v44  ;;  %v1825_v0 = vmax.f32 %v1793_v56, 0.0 }
 0x201   :  { %v1865_v30 = vmul.f32 %v5098_v19, %v1825_v0  ;;  %1989 = vrot.lane.b32.xlu1 %v1825_v0, %s5015_s14  ;;  %2182 = vrot.lane.b32.xlu2 %v1825_v0, %s5016_s7  ;;  %v1358_v47 = vpop.f32.mrf.mxu3 }
 0x202   :  { %v1721_v34 = vpop.f32.mrf.mxu2 }
 0x203   :  { %1898 = vst.msk [vmem:[#allocation3 + $0xe9] sm:$0xff] %vm1870_vm0, %v1865_v30  ;;  %v1761_v16 = vadd.f32 %v1721_v34, %v1475_v51  ;;  %v1962_v13 = vpop.permute.xlu0 %1961  ;;  %v2155_v55 = vpop.permute.xlu1 %2154 }
 0x204   :  { %2045 = vst.msk [vmem:[#allocation3 + $0x78] sm:$0xff] %vm2031_vm10, %v1962_v13  ;;  %v2270_v33 = vld [vmem:[#allocation3 + $0x68] sm:$0xff]  ;;  %v1480_v39 = vpop.f32.mrf.mxu1 }
 0x205   :  { %v1794_v12 = vadd.f32 %v6051_v29, %v1761_v16  ;;  %2238 = vst.msk [vmem:[#allocation3 + $0x77] sm:$0xff] %vm2224_vm11, %v2155_v55  ;;  %v1481_v15 = vadd.f32 %v1480_v39, %v1358_v47 }
 0x206   :  { %4722 = vmatmul.msk.f32.gmra.mxu3 %vm1830_vm8, %v2270_v33  ;;  %4756 = vmatmul.msk.f32.gmra.mxu0 %vm1830_vm8, %v2270_v33 }
 0x207   :  { %4796 = vmatmul.msk.f32.gmra.mxu1 %vm1830_vm8, %v2270_v33  ;;  %v1826_v19 = vmax.f32 %v1794_v12, 0.0 }
 0x209   :  { %1991 = vrot.lane.b32.xlu0 %v1826_v19, %s5015_s14  ;;  %1899 = vst.msk [vmem:[#allocation3 + $0xf1] sm:$0xff] %vm1870_vm0, %v1826_v19  ;;  %v2092_v22 = vmul.f32 %v5113_v24, %v1826_v19  ;;  %v1361_v61 = vpop.f32.mrf.mxu3 }
 0x20a   :  { %v1724_v42 = vpop.f32.mrf.mxu2 }
 0x20b   :  { %v1762_v38 = vadd.f32 %v1724_v42, %v1478_v35  ;;  %2184 = vrot.lane.b32.xlu1 %v2092_v22, %s5016_s7  ;;  %v1970_v18 = vpop.permute.xlu2 %1969 }
 0x20c   :  { %2049 = vst.msk [vmem:[#allocation3 + $0x98] sm:$0xff] %vm2031_vm10, %v1970_v18  ;;  %v2271_v10 = vld [vmem:[#allocation3 + $0x70] sm:$0xff]  ;;  %v1483_v1 = vpop.f32.mrf.mxu1 }
 0x20d   :  { %v1795_v40 = vadd.f32 %v6051_v29, %v1762_v38  ;;  %v2157_v21 = vpop.permute.xlu0 %2156  ;;  %v1484_v50 = vadd.f32 %v1483_v1, %v1361_v61 }
 0x20e   :  { %2239 = vst.msk [vmem:[#allocation3 + $0x7f] sm:$0xff] %vm2224_vm11, %v2157_v21  ;;  %4723 = vmatmul.msk.f32.gmra.mxu3 %vm1830_vm8, %v2271_v10  ;;  %4757 = vmatmul.msk.f32.gmra.mxu0 %vm1830_vm8, %v2271_v10 }
 0x20f   :  { %4797 = vmatmul.msk.f32.gmra.mxu1 %vm1830_vm8, %v2271_v10  ;;  %v1827_v24 = vmax.f32 %v1795_v40, 0.0 }
 0x211   :  { %v1867_v45 = vmul.f32 %v5101_v20, %v1827_v24  ;;  %2186 = vrot.lane.b32.xlu0 %v1827_v24, %s5016_s7  ;;  %1993 = vrot.lane.b32.xlu2 %v1827_v24, %s5015_s14 }
 0x212   :  { %v1727_v57 = vpop.f32.mrf.mxu2 }
 0x213   :  { %1900 = vst.msk [vmem:[#allocation3 + $0xf9] sm:$0xff] %vm1870_vm0, %v1867_v45  ;;  %v1763_v37 = vadd.f32 %v1727_v57, %v1481_v15  ;;  %v1966_v59 = vpop.permute.xlu1 %1965 }
 0x214   :  { %2047 = vst.msk [vmem:[#allocation3 + $0x88] sm:$0xff] %vm2031_vm10, %v1966_v59 }
 0x215   :  { %v1796_v53 = vadd.f32 %v6051_v29, %v1763_v37  ;;  %2240 = vst.msk [vmem:[#allocation3 + $0x87] sm:$0xff] %vm2224_vm11, %v2159_v9  ;;  %v2272_v41 = vld [vmem:[#allocation3 + $0x78] sm:$0xff]  ;;  %v2165_v58 = vpop.permute.xlu2 %2164 }
 0x216   :  { %4724 = vmatmul.msk.f32.gmra.mxu3 %vm1830_vm8, %v2272_v41  ;;  %4758 = vmatmul.msk.f32.gmra.mxu0 %vm1830_vm8, %v2272_v41 }
 0x217   :  { %4798 = vmatmul.msk.f32.gmra.mxu1 %vm1830_vm8, %v2272_v41  ;;  %v1828_v20 = vmax.f32 %v1796_v53, 0.0 }
 0x219   :  { %1995 = vrot.lane.b32.xlu1 %v1828_v20, %s5015_s14  ;;  %1901 = vst.msk [vmem:[#allocation3 + $0x101] sm:$0xff] %vm1870_vm0, %v1828_v20  ;;  %v2094_v6 = vmul.f32 %v5553_v46, %v1828_v20 }
 0x21a   :  { %v1730_v36 = vpop.f32.mrf.mxu2 }
 0x21b   :  { %v1764_v5 = vadd.f32 %v1730_v36, %v1484_v50  ;;  %v1968_v49 = vpop.permute.xlu0 %1967  ;;  %2188 = vrot.lane.b32.xlu2 %v2094_v6, %s5016_s7 }
 0x21c   :  { %2048 = vst.msk [vmem:[#allocation3 + $0x90] sm:$0xff] %vm2031_vm10, %v1968_v49  ;;  %v2273_v31 = vld [vmem:[#allocation3 + $0x80] sm:$0xff] }
 0x21d   :  { %v1797_v62 = vadd.f32 %v6051_v29, %v1764_v5  ;;  %v2161_v52 = vpop.permute.xlu1 %2160 }
 0x21e   :  { %2241 = vst.msk [vmem:[#allocation3 + $0x8f] sm:$0xff] %vm2224_vm11, %v2161_v52  ;;  %4725 = vmatmul.msk.f32.gmra.mxu3 %vm1830_vm8, %v2273_v31  ;;  %4759 = vmatmul.msk.f32.gmra.mxu0 %vm1830_vm8, %v2273_v31 }
 0x21f   :  { %4799 = vmatmul.msk.f32.gmra.mxu1 %vm1830_vm8, %v2273_v31  ;;  %v1829_v46 = vmax.f32 %v1797_v62, 0.0 }
 0x221   :  { %v1869_v14 = vmul.f32 %v5622_v8, %v1829_v46  ;;  %1997 = vrot.lane.b32.xlu0 %v1829_v46, %s5015_s14  ;;  %2190 = vrot.lane.b32.xlu1 %v1829_v46, %s5016_s7 }
 0x223   :  { %1902 = vst.msk [vmem:[#allocation3 + $0x109] sm:$0xff] %vm1870_vm0, %v1869_v14  ;;  %v2551_v7 = vpop.f32.mrf.mxu0  ;;  %v2163_v17 = vpop.permute.xlu0 %2162 }
 0x224   :  { %2242 = vst.msk [vmem:[#allocation3 + $0x97] sm:$0xff] %vm2224_vm11, %v2163_v17  ;;  %v1976_v11 = vpop.permute.xlu2 %1975 }
 0x225   :  { %2052 = vst.msk [vmem:[#allocation3 + $0xb0] sm:$0xff] %vm2031_vm10, %v1976_v11  ;;  %v2274_v43 = vld [vmem:[#allocation3 + $0x88] sm:$0xff] }
 0x226   :  { %4726 = vmatmul.msk.f32.gmra.mxu3 %vm1830_vm8, %v2274_v43  ;;  %4760 = vmatmul.msk.f32.gmra.mxu0 %vm1830_vm8, %v2274_v43 }
 0x227   :  { %4800 = vmatmul.msk.f32.gmra.mxu1 %vm1830_vm8, %v2274_v43 }
 0x22b   :  { %v1972_v8 = vpop.permute.xlu1 %1971  ;;  %v2554_v32 = vpop.f32.mrf.mxu0  ;;  %v2275_v29 = vld [vmem:[#allocation3 + $0x90] sm:$0xff] }
 0x22c   :  { %2050 = vst.msk [vmem:[#allocation3 + $0xa0] sm:$0xff] %vm2031_vm10, %v1972_v8  ;;  %v2171_v23 = vpop.permute.xlu2 %2170 }
 0x22d   :  { %2243 = vst.msk [vmem:[#allocation3 + $0x9f] sm:$0xff] %vm2224_vm11, %v2165_v58 }
 0x22e   :  { %4727 = vmatmul.msk.f32.gmra.mxu3 %vm1830_vm8, %v2275_v29  ;;  %4761 = vmatmul.msk.f32.gmra.mxu0 %vm1830_vm8, %v2275_v29 }
 0x22f   :  { %4801 = vmatmul.msk.f32.gmra.mxu1 %vm1830_vm8, %v2275_v29  ;;  %v2429_v54 = vpop.f32.mrf.mxu3 }
 0x230   :  { %v6124_v48 = vadd.f32 %v2548_v4, %v2429_v54 }
 0x233   :  { %v1974_v60 = vpop.permute.xlu0 %1973  ;;  %v2167_v2 = vpop.permute.xlu1 %2166 }
 0x234   :  { %2051 = vst.msk [vmem:[#allocation3 + $0xa8] sm:$0xff] %vm2031_vm10, %v1974_v60  ;;  %v2557_v26 = vpop.f32.mrf.mxu0  ;;  %v2276_v25 = vld [vmem:[#allocation3 + $0x98] sm:$0xff] }
 0x235   :  { %2244 = vst.msk [vmem:[#allocation3 + $0xa7] sm:$0xff] %vm2224_vm11, %v2167_v2 }
 0x236   :  { %4728 = vmatmul.msk.f32.gmra.mxu3 %vm1830_vm8, %v2276_v25  ;;  %4762 = vmatmul.msk.f32.gmra.mxu0 %vm1830_vm8, %v2276_v25 }
 0x237   :  { %4802 = vmatmul.msk.f32.gmra.mxu1 %vm1830_vm8, %v2276_v25 }
 0x239   :  { %v2432_v3 = vpop.f32.mrf.mxu3 }
 0x23a   :  { %v6131_v27 = vadd.f32 %v2551_v7, %v2432_v3  ;;  %v6133_v56 = vpop.f32.mrf.mxu1 }
 0x23b   :  { %v1982_v44 = vpop.permute.xlu2 %1981 }
 0x23c   :  { %2055 = vst.msk [vmem:[#allocation3 + $0xc8] sm:$0xff] %vm2031_vm10, %v1982_v44  ;;  %v2560_v0 = vpop.f32.mrf.mxu0  ;;  %v2277_v51 = vld [vmem:[#allocation3 + $0xa0] sm:$0xff] }
 0x23d   :  { %v2169_v9 = vpop.permute.xlu0 %2168 }
 0x23e   :  { %2245 = vst.msk [vmem:[#allocation3 + $0xaf] sm:$0xff] %vm2224_vm11, %v2169_v9  ;;  %4729 = vmatmul.msk.f32.gmra.mxu3 %vm1830_vm8, %v2277_v51  ;;  %4763 = vmatmul.msk.f32.gmra.mxu0 %vm1830_vm8, %v2277_v51 }
 0x23f   :  { %4803 = vmatmul.msk.f32.gmra.mxu1 %vm1830_vm8, %v2277_v51 }
 0x241   :  { %v2435_v30 = vpop.f32.mrf.mxu3 }
 0x242   :  { %v6140_v28 = vadd.f32 %v2554_v32, %v2435_v30 }
 0x243   :  { %v1978_v34 = vpop.permute.xlu1 %1977 }
 0x244   :  { %2053 = vst.msk [vmem:[#allocation3 + $0xb8] sm:$0xff] %vm2031_vm10, %v1978_v34  ;;  %v2563_v16 = vpop.f32.mrf.mxu0  ;;  %v6143_v13 = vpop.f32.mrf.mxu1 }
 0x245   :  { %2246 = vst.msk [vmem:[#allocation3 + $0xb7] sm:$0xff] %vm2224_vm11, %v2171_v23  ;;  %v2278_v55 = vld [vmem:[#allocation3 + $0xa8] sm:$0xff]  ;;  %v2177_v63 = vpop.permute.xlu2 %2176 }
 0x246   :  { %4730 = vmatmul.msk.f32.gmra.mxu3 %vm1830_vm8, %v2278_v55  ;;  %4764 = vmatmul.msk.f32.gmra.mxu0 %vm1830_vm8, %v2278_v55 }
 0x247   :  { %4804 = vmatmul.msk.f32.gmra.mxu1 %vm1830_vm8, %v2278_v55 }
 0x249   :  { %v2438_v33 = vpop.f32.mrf.mxu3 }
 0x24a   :  { %v6149_v12 = vadd.f32 %v2557_v26, %v2438_v33 }
 0x24b   :  { %v1980_v19 = vpop.permute.xlu0 %1979 }
 0x24c   :  { %2054 = vst.msk [vmem:[#allocation3 + $0xc0] sm:$0xff] %vm2031_vm10, %v1980_v19  ;;  %v2566_v35 = vpop.f32.mrf.mxu0  ;;  %v6152_v22 = vpop.f32.mrf.mxu1  ;;  %v2279_v42 = vld [vmem:[#allocation3 + $0xb0] sm:$0xff] }
 0x24d   :  { %v2173_v38 = vpop.permute.xlu1 %2172 }
 0x24e   :  { %2247 = vst.msk [vmem:[#allocation3 + $0xbf] sm:$0xff] %vm2224_vm11, %v2173_v38  ;;  %4731 = vmatmul.msk.f32.gmra.mxu3 %vm1830_vm8, %v2279_v42  ;;  %4765 = vmatmul.msk.f32.gmra.mxu0 %vm1830_vm8, %v2279_v42 }
 0x24f   :  { %4805 = vmatmul.msk.f32.gmra.mxu1 %vm1830_vm8, %v2279_v42 }
 0x251   :  { %v2441_v18 = vpop.f32.mrf.mxu3 }
 0x252   :  { %v6158_v39 = vadd.f32 %v2560_v0, %v2441_v18 }
 0x253   :  { %v2175_v10 = vpop.permute.xlu0 %2174  ;;  %v1988_v40 = vpop.permute.xlu2 %1987 }
 0x254   :  { %2248 = vst.msk [vmem:[#allocation3 + $0xc7] sm:$0xff] %vm2224_vm11, %v2175_v10  ;;  %v2569_v21 = vpop.f32.mrf.mxu0  ;;  %v6161_v47 = vpop.f32.mrf.mxu1 }
 0x255   :  { %2058 = vst.msk [vmem:[#allocation3 + $0xe0] sm:$0xff] %vm2031_vm10, %v1988_v40  ;;  %v2280_v24 = vld [vmem:[#allocation3 + $0xb8] sm:$0xff] }
 0x256   :  { %4732 = vmatmul.msk.f32.gmra.mxu3 %vm1830_vm8, %v2280_v24  ;;  %4766 = vmatmul.msk.f32.gmra.mxu0 %vm1830_vm8, %v2280_v24 }
 0x257   :  { %4806 = vmatmul.msk.f32.gmra.mxu1 %vm1830_vm8, %v2280_v24 }
 0x259   :  { %v2444_v15 = vpop.f32.mrf.mxu3 }
 0x25a   :  { %v6167_v45 = vadd.f32 %v2563_v16, %v2444_v15 }
 0x25b   :  { %v1984_v57 = vpop.permute.xlu1 %1983  ;;  %v2281_v53 = vld [vmem:[#allocation3 + $0xc0] sm:$0xff]  ;;  %v2183_v1 = vpop.permute.xlu2 %2182 }
 0x25c   :  { %2056 = vst.msk [vmem:[#allocation3 + $0xd0] sm:$0xff] %vm2031_vm10, %v1984_v57  ;;  %v6170_v37 = vpop.f32.mrf.mxu0  ;;  %v6172_v59 = vpop.f32.mrf.mxu1 }
 0x25d   :  { %2249 = vst.msk [vmem:[#allocation3 + $0xcf] sm:$0xff] %vm2224_vm11, %v2177_v63 }
 0x25e   :  { %4733 = vmatmul.msk.f32.gmra.mxu3 %vm1830_vm8, %v2281_v53  ;;  %4767 = vmatmul.msk.f32.gmra.mxu0 %vm1830_vm8, %v2281_v53 }
 0x25f   :  { %4807 = vmatmul.msk.f32.gmra.mxu1 %vm1830_vm8, %v2281_v53 }
 0x261   :  { %v2447_v41 = vpop.f32.mrf.mxu3 }
 0x262   :  { %v6178_v20 = vadd.f32 %v2566_v35, %v2447_v41 }
 0x263   :  { %v1986_v61 = vpop.permute.xlu0 %1985  ;;  %v2179_v50 = vpop.permute.xlu1 %2178 }
 0x264   :  { %2057 = vst.msk [vmem:[#allocation3 + $0xd8] sm:$0xff] %vm2031_vm10, %v1986_v61  ;;  %v6181_v4 = vpop.f32.mrf.mxu0  ;;  %v6183_v6 = vpop.f32.mrf.mxu1  ;;  %v2282_v36 = vld [vmem:[#allocation3 + $0xc8] sm:$0xff] }
 0x265   :  { %2250 = vst.msk [vmem:[#allocation3 + $0xd7] sm:$0xff] %vm2224_vm11, %v2179_v50 }
 0x266   :  { %4734 = vmatmul.msk.f32.gmra.mxu3 %vm1830_vm8, %v2282_v36  ;;  %4768 = vmatmul.msk.f32.gmra.mxu0 %vm1830_vm8, %v2282_v36 }
 0x267   :  { %4808 = vmatmul.msk.f32.gmra.mxu1 %vm1830_vm8, %v2282_v36 }
 0x269   :  { %v2450_v5 = vpop.f32.mrf.mxu3 }
 0x26a   :  { %v6189_v49 = vadd.f32 %v2569_v21, %v2450_v5 }
 0x26b   :  { %v1994_v58 = vpop.permute.xlu2 %1993 }
 0x26c   :  { %2061 = vst.msk [vmem:[#allocation3 + $0xf8] sm:$0xff] %vm2031_vm10, %v1994_v58  ;;  %v6192_v31 = vpop.f32.mrf.mxu0  ;;  %v6194_v62 = vpop.f32.mrf.mxu1  ;;  %v2283_v52 = vld [vmem:[#allocation3 + $0xd0] sm:$0xff] }
 0x26d   :  { %v2181_v46 = vpop.permute.xlu0 %2180 }
 0x26e   :  { %2251 = vst.msk [vmem:[#allocation3 + $0xdf] sm:$0xff] %vm2224_vm11, %v2181_v46  ;;  %4735 = vmatmul.msk.f32.gmra.mxu3 %vm1830_vm8, %v2283_v52  ;;  %4769 = vmatmul.msk.f32.gmra.mxu0 %vm1830_vm8, %v2283_v52 }
 0x26f   :  { %4809 = vmatmul.msk.f32.gmra.mxu1 %vm1830_vm8, %v2283_v52 }
 0x271   :  { %v6200_v14 = vpop.f32.mrf.mxu3 }
 0x273   :  { %v1990_v7 = vpop.permute.xlu1 %1989 }
 0x274   :  { %2059 = vst.msk [vmem:[#allocation3 + $0xe8] sm:$0xff] %vm2031_vm10, %v1990_v7  ;;  %v6203_v17 = vpop.f32.mrf.mxu0  ;;  %v6205_v11 = vpop.f32.mrf.mxu1  ;;  %v2675_v7 = vld [vmem:[#allocation3 + $0x118] sm:$0xff] }
 0x275   :  { %2252 = vst.msk [vmem:[#allocation3 + $0xe7] sm:$0xff] %vm2224_vm11, %v2183_v1  ;;  %v2284_v43 = vld [vmem:[#allocation3 + $0xd8] sm:$0xff]  ;;  %v2189_v51 = vpop.permute.xlu2 %2188  ;;  %v2674_v1 = vld [vmem:[#allocation3 + $0x110] sm:$0xff] }
 0x276   :  { %4736 = vmatmul.msk.f32.gmra.mxu3 %vm1830_vm8, %v2284_v43  ;;  %4770 = vmatmul.msk.f32.gmra.mxu0 %vm1830_vm8, %v2284_v43 }
 0x277   :  { %4810 = vmatmul.msk.f32.gmra.mxu1 %vm1830_vm8, %v2284_v43 }
 0x279   :  { %v6211_v8 = vpop.f32.mrf.mxu3 }
 0x27b   :  { %v1992_v32 = vpop.permute.xlu0 %1991 }
 0x27c   :  { %2060 = vst.msk [vmem:[#allocation3 + $0xf0] sm:$0xff] %vm2031_vm10, %v1992_v32  ;;  %v6214_v29 = vpop.f32.mrf.mxu0  ;;  %v6216_v54 = vpop.f32.mrf.mxu1  ;;  %v2285_v23 = vld [vmem:[#allocation3 + $0xe0] sm:$0xff] }
 0x27d   :  { %v2185_v60 = vpop.permute.xlu1 %2184 }
 0x27e   :  { %2253 = vst.msk [vmem:[#allocation3 + $0xef] sm:$0xff] %vm2224_vm11, %v2185_v60  ;;  %4737 = vmatmul.msk.f32.gmra.mxu3 %vm1830_vm8, %v2285_v23  ;;  %4771 = vmatmul.msk.f32.gmra.mxu0 %vm1830_vm8, %v2285_v23  ;;  %v6251_v60 = vld [vmem:[%s6780_s4 + $0x1] ss:$0 sm:$0xff] }
 0x27f   :  { %4811 = vmatmul.msk.f32.gmra.mxu1 %vm1830_vm8, %v2285_v23 }
 0x281   :  { %v6222_v2 = vpop.f32.mrf.mxu3 }
 0x283   :  { %v2187_v26 = vpop.permute.xlu0 %2186 }
 0x284   :  { %2254 = vst.msk [vmem:[#allocation3 + $0xf7] sm:$0xff] %vm2224_vm11, %v2187_v26  ;;  %v2587_v25 = vpop.f32.mrf.mxu0  ;;  %v6225_v3 = vpop.f32.mrf.mxu1 }
 0x285   :  { %v2286_v44 = vld [vmem:[#allocation3 + $0xe8] sm:$0xff] }
 0x286   :  { %4738 = vmatmul.msk.f32.gmra.mxu3 %vm1830_vm8, %v2286_v44  ;;  %4772 = vmatmul.msk.f32.gmra.mxu0 %vm1830_vm8, %v2286_v44 }
 0x287   :  { %4812 = vmatmul.msk.f32.gmra.mxu1 %vm1830_vm8, %v2286_v44 }
 0x289   :  { %v2462_v0 = vpop.f32.mrf.mxu3 }
 0x28a   :  { %v2582_v26 = vadd.f32 %v6203_v17, %v2462_v0 }
 0x28b   :  { %v1996_v9 = vpop.permute.xlu1 %1995  ;;  %v2287_v16 = vld [vmem:[#allocation3 + $0xf0] sm:$0xff] }
 0x28c   :  { %2062 = vst.msk [vmem:[#allocation3 + $0x100] sm:$0xff] %vm2031_vm10, %v1996_v9  ;;  %v2590_v30 = vpop.f32.mrf.mxu0  ;;  %v2832_v34 = vpop.f32.mrf.mxu1  ;;  %v2579_v9 = vadd.f32 %v6192_v31, %v6222_v2 }
 0x28d   :  { %2255 = vst.msk [vmem:[#allocation3 + $0xff] sm:$0xff] %vm2224_vm11, %v2189_v51 }
 0x28e   :  { %4739 = vmatmul.msk.f32.gmra.mxu3 %vm1830_vm8, %v2287_v16  ;;  %4773 = vmatmul.msk.f32.gmra.mxu0 %vm1830_vm8, %v2287_v16  ;;  %v2908_v17 = vadd.f32 %v2832_v34, %v2579_v9 }
 0x28f   :  { %4813 = vmatmul.msk.f32.gmra.mxu1 %vm1830_vm8, %v2287_v16 }
 0x291   :  { %v2465_v55 = vpop.f32.mrf.mxu3 }
 0x292   :  { %v2585_v43 = vadd.f32 %v6214_v29, %v2465_v55 }
 0x293   :  { %v1998_v33 = vpop.permute.xlu0 %1997  ;;  %v2191_v63 = vpop.permute.xlu1 %2190 }
 0x294   :  { %2063 = vst.msk [vmem:[#allocation3 + $0x108] sm:$0xff] %vm2031_vm10, %v1998_v33  ;;  %v2593_v19 = vpop.f32.mrf.mxu0  ;;  %v2835_v35 = vpop.f32.mrf.mxu1  ;;  %v2288_v42 = vld [vmem:[#allocation3 + $0xf8] sm:$0xff]  ;;  %v2576_v33 = vadd.f32 %v6181_v4, %v6211_v8 }
 0x295   :  { %2256 = vst.msk [vmem:[#allocation3 + $0x107] sm:$0xff] %vm2224_vm11, %v2191_v63  ;;  %v2909_v29 = vadd.f32 %v2835_v35, %v2582_v26 }
 0x296   :  { %4740 = vmatmul.msk.f32.gmra.mxu3 %vm1830_vm8, %v2288_v42  ;;  %4774 = vmatmul.msk.f32.gmra.mxu0 %vm1830_vm8, %v2288_v42  ;;  %v2907_v2 = vadd.f32 %v6225_v3, %v2576_v33 }
 0x297   :  { %4814 = vmatmul.msk.f32.gmra.mxu1 %vm1830_vm8, %v2288_v42  ;;  %v2942_v4 = vadd.f32 %v6251_v60, %v2909_v29 }
 0x298   :  { %v2940_v3 = vadd.f32 %v6251_v60, %v2907_v2 }
 0x299   :  { %v2468_v38 = vpop.f32.mrf.mxu3 }
 0x29a   :  { %v2588_v5 = vadd.f32 %v2587_v25, %v2468_v38  ;;  %v2573_v38 = vadd.f32 %v6170_v37, %v6200_v14  ;;  %v2974_v14 = vmax.f32 %v2942_v4, 0.0 }
 0x29c   :  { %v2596_v18 = vpop.f32.mrf.mxu0  ;;  %v2838_v10 = vpop.f32.mrf.mxu1  ;;  %v2301_v40 = vld [vmem:[#allocation3 + $0x100] sm:$0xff]  ;;  %v2302_v15 = vld [vmem:[#allocation3 + $0x108] sm:$0xff]  ;;  %v2906_v8 = vadd.f32 %v6216_v54, %v2573_v38 }
 0x29d   :  { %v2910_v44 = vadd.f32 %v2838_v10, %v2585_v43 }
 0x29e   :  { %4741 = vmatmul.msk.f32.gmra.mxu3 %vm1830_vm8, %v2301_v40  ;;  %v2939_v54 = vadd.f32 %v6251_v60, %v2906_v8 }
 0x29f   :  { %4815 = vmatmul.msk.f32.gmra.mxu1 %vm1830_vm8, %v2301_v40  ;;  %v2943_v42 = vadd.f32 %v6251_v60, %v2910_v44  ;;  %v2905_v40 = vadd.f32 %v6205_v11, %v6189_v49  ;;  %v2972_v49 = vmax.f32 %v2940_v3, 0.0 }
 0x2a1   :  { %v2471_v21 = vpop.f32.mrf.mxu3  ;;  %v2975_v34 = vmax.f32 %v2943_v42, 0.0  ;;  %v2938_v11 = vadd.f32 %v6251_v60, %v2905_v40 }
 0x2a2   :  { %v2591_v50 = vadd.f32 %v2590_v30, %v2471_v21  ;;  %v2904_v21 = vadd.f32 %v6194_v62, %v6178_v20  ;;  %v2971_v20 = vmax.f32 %v2939_v54, 0.0 }
 0x2a4   :  { %v2841_v24 = vpop.f32.mrf.mxu1  ;;  %v2599_v57 = vpop.f32.mrf.mxu0  ;;  %v2937_v62 = vadd.f32 %v6251_v60, %v2904_v21 }
 0x2a5   :  { %v2911_v32 = vadd.f32 %v2841_v24, %v2588_v5 }
 0x2a6   :  { %4742 = vmatmul.msk.f32.gmra.mxu3 %vm1830_vm8, %v2302_v15 }
 0x2a7   :  { %4816 = vmatmul.msk.f32.gmra.mxu1 %vm1830_vm8, %v2302_v15  ;;  %v2944_v55 = vadd.f32 %v6251_v60, %v2911_v32 }
 0x2a9   :  { %v2474_v53 = vpop.f32.mrf.mxu3  ;;  %v2976_v10 = vmax.f32 %v2944_v55, 0.0 }
 0x2aa   :  { %v2594_v58 = vadd.f32 %v2593_v19, %v2474_v53 }
 0x2ac   :  { %v2844_v41 = vpop.f32.mrf.mxu1  ;;  %v6245_v61 = vpop.f32.mrf.mxu0 }
 0x2ad   :  { %v2912_v52 = vadd.f32 %v2844_v41, %v2591_v50 }
 0x2af   :  { %4817 = vmatmul.msk.f32.gmra.mxu1 %vm1830_vm8, %v2674_v1  ;;  %v2945_v51 = vadd.f32 %v6251_v60, %v2912_v52  ;;  %v2903_v1 = vadd.f32 %v6183_v6, %v6167_v45  ;;  %v2900_v6 = vadd.f32 %v6152_v22, %v6140_v28  ;;  %v2898_v28 = vadd.f32 %v6133_v56, %v6124_v48 }
 0x2b1   :  { %v2477_v36 = vpop.f32.mrf.mxu3  ;;  %v2977_v19 = vmax.f32 %v2945_v51, 0.0  ;;  %v2936_v45 = vadd.f32 %v6251_v60, %v2903_v1 }
 0x2b2   :  { %v2597_v0 = vadd.f32 %v2596_v18, %v2477_v36  ;;  %v2941_v18 = vadd.f32 %v6251_v60, %v2908_v17  ;;  %v2902_v36 = vadd.f32 %v6172_v59, %v6158_v39 }
 0x2b4   :  { %v2847_v46 = vpop.f32.mrf.mxu1  ;;  %v6262_v63 = vpop.f32.mrf.mxu0  ;;  %v2973_v15 = vmax.f32 %v2941_v18, 0.0  ;;  %v2935_v39 = vadd.f32 %v6251_v60, %v2902_v36 }
 0x2b5   :  { %v2913_v23 = vadd.f32 %v2847_v46, %v2594_v58  ;;  %v2970_v58 = vmax.f32 %v2938_v11, 0.0  ;;  %v2969_v46 = vmax.f32 %v2937_v62, 0.0 }
 0x2b6   :  { %v2967_v22 = vmax.f32 %v2935_v39, 0.0 }
 0x2b7   :  { %4818 = vmatmul.msk.f32.gmra.mxu1 %vm1830_vm8, %v2675_v7  ;;  %v2946_v25 = vadd.f32 %v6251_v60, %v2913_v23  ;;  %v2899_v7 = vadd.f32 %v6143_v13, %v6131_v27 }
 0x2b9   :  { %v2480_v30 = vpop.f32.mrf.mxu3  ;;  %v2978_v16 = vmax.f32 %v2946_v25, 0.0  ;;  %v2932_v44 = vadd.f32 %v6251_v60, %v2899_v7  ;;  %v2931_v25 = vadd.f32 %v6251_v60, %v2898_v28 }
 0x2ba   :  { %v2600_v24 = vadd.f32 %v2599_v57, %v2480_v30  ;;  %v2901_v57 = vadd.f32 %v6161_v47, %v6149_v12  ;;  %v2968_v12 = vmax.f32 %v2936_v45, 0.0 }
 0x2bb   :  { %3009 = vmatpush.msrb.mxu2 %v2978_v16  ;;  %v2964_v48 = vmax.f32 %v2932_v44, 0.0  ;;  %v2963_v56 = vmax.f32 %v2931_v25, 0.0 }
 0x2bc   :  { %v2850_v31 = vpop.f32.mrf.mxu1  ;;  %v2608_v53 = vpop.f32.mrf.mxu0  ;;  %v2934_v47 = vadd.f32 %v6251_v60, %v2901_v57 }
 0x2bd   :  { %v6268_v35 = vadd.f32 %v2850_v31, %v2597_v0  ;;  %3010 = vmatpush.msrb.mxu2 %v2977_v19 }
 0x2be   :  { %v2966_v26 = vmax.f32 %v2934_v47, 0.0 }
 0x2bf   :  { %3011 = vmatpush.msrb.mxu2 %v2976_v10 }
 0x2c1   :  { %3012 = vmatpush.msrb.mxu2 %v2975_v34  ;;  %v2483_v37 = vpop.f32.mrf.mxu3 }
 0x2c2   :  { %v2603_v52 = vadd.f32 %v6245_v61, %v2483_v37  ;;  %v2933_v61 = vadd.f32 %v6251_v60, %v2900_v6 }
 0x2c3   :  { %3013 = vmatpush.msrb.mxu2 %v2974_v14 }
 0x2c4   :  { %v2853_v41 = vpop.f32.mrf.mxu1  ;;  %v2611_v32 = vpop.f32.mrf.mxu0  ;;  %v2965_v13 = vmax.f32 %v2933_v61, 0.0 }
 0x2c5   :  { %v6281_v50 = vadd.f32 %v2853_v41, %v2600_v24  ;;  %3014 = vmatpush.msrb.mxu2 %v2973_v15 }
 0x2c7   :  { %3015 = vmatpush.msrb.mxu2 %v2972_v49 }
 0x2c9   :  { %3016 = vmatpush.msrb.mxu2 %v2971_v20  ;;  %v2486_v5 = vpop.f32.mrf.mxu3 }
 0x2ca   :  { %v2606_v27 = vadd.f32 %v6262_v63, %v2486_v5 }
 0x2cb   :  { %3017 = vmatpush.msrb.mxu2 %v2970_v58 }
 0x2cc   :  { %v2856_v59 = vpop.f32.mrf.mxu1  ;;  %v2614_v29 = vpop.f32.mrf.mxu0 }
 0x2cd   :  { %v6296_v43 = vadd.f32 %v2856_v59, %v2603_v52  ;;  %3018 = vmatpush.msrb.mxu2 %v2969_v46 }
 0x2cf   :  { %3019 = vmatpush.msrb.mxu2 %v2968_v12 }
 0x2d1   :  { %3020 = vmatpush.msrb.mxu2 %v2967_v22  ;;  %v2489_v23 = vpop.f32.mrf.mxu3 }
 0x2d2   :  { %v2609_v16 = vadd.f32 %v2608_v53, %v2489_v23 }
 0x2d3   :  { %3021 = vmatpush.msrb.mxu2 %v2966_v26 }
 0x2d4   :  { %v2859_v51 = vpop.f32.mrf.mxu1  ;;  %v2617_v63 = vpop.f32.mrf.mxu0 }
 0x2d5   :  { %v6305_v9 = vadd.f32 %v2859_v51, %v2606_v27  ;;  %3022 = vmatpush.msrb.mxu2 %v2965_v13 }
 0x2d7   :  { %3023 = vmatpush.msrb.mxu2 %v2964_v48 }
 0x2d9   :  { %3024 = vmatpush.msrb.mxu2 %v2963_v56  ;;  %v2492_v30 = vpop.f32.mrf.mxu3  ;;  %v2995_v56 = vld [vmem:[%s6782_s3] sm:$0xff] }
 0x2da   :  { %v2612_v0 = vadd.f32 %v2611_v32, %v2492_v30  ;;  %3025 = vmatmul.f32.vlgmr.msrb.gmra.mxu2 %v2995_v56 }
 0x2dc   :  { %v2862_v55 = vpop.f32.mrf.mxu1  ;;  %v2620_v2 = vpop.f32.mrf.mxu0 }
 0x2dd   :  { %v6307_v33 = vadd.f32 %v2862_v55, %v2609_v16 }
 0x2e1   :  { %v2495_v17 = vpop.f32.mrf.mxu3 }
 0x2e2   :  { %v2615_v31 = vadd.f32 %v2614_v29, %v2495_v17 }
 0x2e4   :  { %v2865_v19 = vpop.f32.mrf.mxu1  ;;  %v2623_v37 = vpop.f32.mrf.mxu0 }
 0x2e5   :  { %v6309_v42 = vadd.f32 %v2865_v19, %v2612_v0 }
 0x2e9   :  { %v2498_v38 = vpop.f32.mrf.mxu3 }
 0x2ea   :  { %v2618_v34 = vadd.f32 %v2617_v63, %v2498_v38 }
 0x2ec   :  { %v2868_v10 = vpop.f32.mrf.mxu1  ;;  %v2626_v15 = vpop.f32.mrf.mxu0 }
 0x2ed   :  { %v6311_v4 = vadd.f32 %v2868_v10, %v2615_v31  ;;  %v2997_v31 = vld [vmem:[%s6782_s3 + $0x10] sm:$0xff] }
 0x2ee   :  { %3028 = vmatmul.f32.gmra.mxu2 %v2997_v31 }
 0x2f1   :  { %v2501_v8 = vpop.f32.mrf.mxu3 }
 0x2f2   :  { %v2621_v3 = vadd.f32 %v2620_v2, %v2501_v8 }
 0x2f4   :  { %v2871_v18 = vpop.f32.mrf.mxu1  ;;  %v2629_v1 = vpop.f32.mrf.mxu0 }
 0x2f5   :  { %v6313_v40 = vadd.f32 %v2871_v18, %v2618_v34 }
 0x2f7   :  { %v2954_v18 = vadd.f32 %v6251_v60, %v6313_v40  ;;  %v2951_v40 = vadd.f32 %v6251_v60, %v6307_v33 }
 0x2f9   :  { %v2504_v14 = vpop.f32.mrf.mxu3 }
 0x2fa   :  { %v2624_v29 = vadd.f32 %v2623_v37, %v2504_v14  ;;  %v2953_v14 = vadd.f32 %v6251_v60, %v6311_v4  ;;  %v2950_v4 = vadd.f32 %v6251_v60, %v6305_v9  ;;  %v644_v9 = vld [vmem:[%s6783_s5 + $0x38] sm:$0xff] }
 0x2fb   :  { %3116 = vmatpush.msra.mxu2 %v644_v9 }
 0x2fc   :  { %v2874_v21 = vpop.f32.mrf.mxu1  ;;  %v2632_v36 = vpop.f32.mrf.mxu0  ;;  %v2982_v33 = vmax.f32 %v2950_v4, 0.0 }
 0x2fd   :  { %v2922_v24 = vadd.f32 %v2874_v21, %v2621_v3  ;;  %v2999_v21 = vld [vmem:[%s6782_s3 + $0x20] sm:$0xff] }
 0x2fe   :  { %3031 = vmatmul.f32.gmra.mxu2 %v2999_v21 }
 0x2ff   :  { %v2955_v8 = vadd.f32 %v6251_v60, %v2922_v24  ;;  %v2986_v24 = vmax.f32 %v2954_v18, 0.0  ;;  %v4893_v18 = vld [vmem:[%s6780_s4 + $0x2] ss:$0 sm:$0xff] }
 0x301   :  { %v2507_v54 = vpop.f32.mrf.mxu3  ;;  %v2987_v3 = vmax.f32 %v2955_v8, 0.0 }
 0x302   :  { %v2627_v13 = vadd.f32 %v2626_v15, %v2507_v54  ;;  %v2952_v15 = vadd.f32 %v6251_v60, %v6309_v42  ;;  %v2985_v54 = vmax.f32 %v2953_v14, 0.0  ;;  %v3001_v42 = vld [vmem:[%s6782_s3 + $0x30] sm:$0xff] }
 0x304   :  { %v2877_v53 = vpop.f32.mrf.mxu1  ;;  %v2635_v5 = vpop.f32.mrf.mxu0 }
 0x305   :  { %v2923_v17 = vadd.f32 %v2877_v53, %v2624_v29  ;;  %v2984_v53 = vmax.f32 %v2952_v15, 0.0 }
 0x306   :  { %3034 = vmatmul.f32.gmra.mxu2 %v3001_v42 }
 0x307   :  { %v2956_v2 = vadd.f32 %v6251_v60, %v2923_v17 }
 0x309   :  { %v2510_v41 = vpop.f32.mrf.mxu3  ;;  %v2988_v37 = vmax.f32 %v2956_v2, 0.0 }
 0x30a   :  { %v2630_v23 = vadd.f32 %v2629_v1, %v2510_v41  ;;  %v2949_v41 = vadd.f32 %v6251_v60, %v6296_v43  ;;  %v2983_v1 = vmax.f32 %v2951_v40, 0.0 }
 0x30c   :  { %v2880_v49 = vpop.f32.mrf.mxu1  ;;  %v2638_v6 = vpop.f32.mrf.mxu0  ;;  %v2981_v43 = vmax.f32 %v2949_v41, 0.0 }
 0x30d   :  { %v2924_v30 = vadd.f32 %v2880_v49, %v2627_v13  ;;  %v2948_v49 = vadd.f32 %v6251_v60, %v6281_v50 }
 0x30f   :  { %v2957_v19 = vadd.f32 %v6251_v60, %v2924_v30  ;;  %v2980_v50 = vmax.f32 %v2948_v49, 0.0 }
 0x311   :  { %v2513_v11 = vpop.f32.mrf.mxu3  ;;  %v2989_v34 = vmax.f32 %v2957_v19, 0.0 }
 0x312   :  { %v2633_v28 = vadd.f32 %v2632_v36, %v2513_v11  ;;  %v2947_v11 = vadd.f32 %v6251_v60, %v6268_v35  ;;  %v6357_v36 = vld [vmem:[%s6783_s5 + $0x58] sm:$0xff]  ;;  %v2996_v35 = vld [vmem:[%s6782_s3 + $0x8] sm:$0xff] }
 0x313   :  { %4304 = vmatpush.msrb.mxu1 %v6357_v36  ;;  %4385 = vmatpush.msra.mxu0 %v6357_v36 }
 0x314   :  { %v2883_v20 = vpop.f32.mrf.mxu1  ;;  %v2641_v59 = vpop.f32.mrf.mxu0 }
 0x315   :  { %v2925_v25 = vadd.f32 %v2883_v20, %v2630_v23  ;;  %v6364_v20 = vld [vmem:[%s6783_s5 + $0x50] sm:$0xff]  ;;  %v637_v23 = vld [vmem:[%s6783_s5] sm:$0xff] }
 0x316   :  { %4305 = vmatpush.msrb.mxu1 %v6364_v20  ;;  %4386 = vmatpush.msra.mxu0 %v6364_v20 }
 0x317   :  { %v2958_v63 = vadd.f32 %v6251_v60, %v2925_v25 }
 0x319   :  { %v2516_v62 = vpop.f32.mrf.mxu3  ;;  %v2990_v10 = vmax.f32 %v2958_v63, 0.0 }
 0x31a   :  { %v2636_v7 = vadd.f32 %v2635_v5, %v2516_v62  ;;  %v3003_v62 = vld [vmem:[%s6782_s3 + $0x40] sm:$0xff]  ;;  %v643_v5 = vld [vmem:[%s6783_s5 + $0x30] sm:$0xff] }
 0x31b   :  { %3037 = vmatmul.f32.gmra.mxu2 %v3003_v62 }
 0x31c   :  { %v2886_v57 = vpop.f32.mrf.mxu1  ;;  %3117 = vmatpush.msra.mxu2 %v643_v5 }
 0x31d   :  { %v2926_v26 = vadd.f32 %v2886_v57, %v2633_v28  ;;  %v6377_v57 = vld [vmem:[%s6783_s5 + $0x48] sm:$0xff]  ;;  %v3006_v28 = vld [vmem:[%s6782_s3 + $0x58] sm:$0xff] }
 0x31e   :  { %4306 = vmatpush.msrb.mxu1 %v6377_v57  ;;  %4387 = vmatpush.msra.mxu0 %v6377_v57 }
 0x31f   :  { %v2959_v16 = vadd.f32 %v6251_v60, %v2926_v26  ;;  %v635_v26 = vld [vmem:[%s6780_s4 + $0x3] sm:$0x1] }
 0x321   :  { %v2519_v45 = vpop.f32.mrf.mxu3  ;;  %v2991_v38 = vmax.f32 %v2959_v16, 0.0 }
 0x322   :  { %v2639_v39 = vadd.f32 %v2638_v6, %v2519_v45  ;;  %v6390_v45 = vld [vmem:[%s6783_s5 + $0x40] sm:$0xff] }
 0x323   :  { %v641_v6 = vld [vmem:[%s6783_s5 + $0x20] sm:$0xff]  ;;  %4307 = vmatpush.msrb.mxu1 %v6390_v45  ;;  %4388 = vmatpush.msra.mxu0 %v6390_v45 }
 0x324   :  { %v2889_v58 = vpop.f32.mrf.mxu1 }
 0x325   :  { %v2927_v22 = vadd.f32 %v2889_v58, %v2636_v7  ;;  %v642_v58 = vld [vmem:[%s6783_s5 + $0x28] sm:$0xff]  ;;  %4412 = vmatpush.msra.mxu1 %v6357_v36 }
 0x326   :  { %3118 = vmatpush.msra.mxu2 %v642_v58  ;;  %v3000_v7 = vld [vmem:[%s6782_s3 + $0x28] sm:$0xff] }
 0x327   :  { %v2960_v51 = vadd.f32 %v6251_v60, %v2927_v22  ;;  %4413 = vmatpush.msra.mxu1 %v6364_v20  ;;  %v3008_v22 = vld [vmem:[%s6782_s3 + $0x68] sm:$0x1] }
 0x328   :  { %3119 = vmatpush.msra.mxu2 %v641_v6 }
 0x329   :  { %v2522_v46 = vpop.f32.mrf.mxu3  ;;  %v2992_v0 = vmax.f32 %v2960_v51, 0.0  ;;  %4414 = vmatpush.msra.mxu1 %v6377_v57 }
 0x32a   :  { %v2642_v12 = vadd.f32 %v2641_v59, %v2522_v46  ;;  %v2998_v46 = vld [vmem:[%s6782_s3 + $0x18] sm:$0xff]  ;;  %v639_v59 = vld [vmem:[%s6783_s5 + $0x10] sm:$0xff] }
 0x32b   :  { %4415 = vmatpush.msra.mxu1 %v6390_v45 }
 0x32c   :  { %v2892_v52 = vpop.f32.mrf.mxu1 }
 0x32d   :  { %v2928_v47 = vadd.f32 %v2892_v52, %v2639_v39  ;;  %v640_v52 = vld [vmem:[%s6783_s5 + $0x18] sm:$0xff]  ;;  %v3005_v39 = vld [vmem:[%s6782_s3 + $0x50] sm:$0xff] }
 0x32e   :  { %3120 = vmatpush.msra.mxu2 %v640_v52 }
 0x32f   :  { %v2961_v44 = vadd.f32 %v6251_v60, %v2928_v47  ;;  %3040 = vmatmul.f32.gmra.mxu2 %v3005_v39  ;;  %v3002_v47 = vld [vmem:[%s6782_s3 + $0x38] sm:$0xff] }
 0x330   :  { %3121 = vmatpush.msra.mxu2 %v639_v59 }
 0x331   :  { %v2993_v55 = vmax.f32 %v2961_v44, 0.0 }
 0x334   :  { %v2895_v32 = vpop.f32.mrf.mxu1 }
 0x335   :  { %v2929_v61 = vadd.f32 %v2895_v32, %v2642_v12  ;;  %v3007_v12 = vld [vmem:[%s6782_s3 + $0x60] sm:$0x1]  ;;  %v3004_v32 = vld [vmem:[%s6782_s3 + $0x48] sm:$0xff] }
 0x337   :  { %v2962_v27 = vadd.f32 %v6251_v60, %v2929_v61  ;;  %v2979_v60 = vmax.f32 %v2947_v11, 0.0  ;;  %3043 = vmatmul.f32.gmra.mxu2 %v3007_v12  ;;  %v638_v61 = vld [vmem:[%s6783_s5 + $0x8] sm:$0xff] }
 0x338   :  { %3122 = vmatpush.msra.mxu2 %v638_v61 }
 0x339   :  { %v2994_v48 = vmax.f32 %v2962_v27, 0.0 }
 0x33a   :  { %3123 = vmatpush.msra.mxu2 %v637_v23 }
 0x33b   :  { %3047 = vmatpush.msra.mxu3 %v2994_v48 }
 0x33c   :  { %3305 = vmatpush.msrb.mxu2 %v6357_v36 }
 0x33d   :  { %3048 = vmatpush.msra.mxu3 %v2993_v55 }
 0x33e   :  { %3306 = vmatpush.msrb.mxu2 %v6364_v20 }
 0x33f   :  { %3049 = vmatpush.msra.mxu3 %v2992_v0 }
 0x340   :  { %3307 = vmatpush.msrb.mxu2 %v6377_v57 }
 0x341   :  { %3050 = vmatpush.msra.mxu3 %v2991_v38 }
 0x342   :  { %3308 = vmatpush.msrb.mxu2 %v6390_v45 }
 0x343   :  { %3051 = vmatpush.msra.mxu3 %v2990_v10 }
 0x345   :  { %3052 = vmatpush.msra.mxu3 %v2989_v34 }
 0x347   :  { %3053 = vmatpush.msra.mxu3 %v2988_v37 }
 0x349   :  { %3054 = vmatpush.msra.mxu3 %v2987_v3 }
 0x34b   :  { %3055 = vmatpush.msra.mxu3 %v2986_v24 }
 0x34d   :  { %3056 = vmatpush.msra.mxu3 %v2985_v54 }
 0x34f   :  { %3057 = vmatpush.msra.mxu3 %v2984_v53 }
 0x351   :  { %3058 = vmatpush.msra.mxu3 %v2983_v1 }
 0x353   :  { %3059 = vmatpush.msra.mxu3 %v2982_v33 }
 0x355   :  { %3060 = vmatpush.msra.mxu3 %v2981_v43 }
 0x357   :  { %3061 = vmatpush.msra.mxu3 %v2980_v50 }
 0x359   :  { %3062 = vmatpush.msra.mxu3 %v2979_v60 }
 0x35a   :  { %3063 = vmatmul.f32.vlgmr.msra.gmra.mxu3 %v2996_v35 }
 0x35b   :  { %3170 = vmatpush.msrb.mxu3 %v6357_v36 }
 0x35d   :  { %3171 = vmatpush.msrb.mxu3 %v6364_v20  ;;  %v3026_v44 = vpop.f32.mrf.mxu2 }
 0x35f   :  { %3172 = vmatpush.msrb.mxu3 %v6377_v57 }
 0x361   :  { %3173 = vmatpush.msrb.mxu3 %v6390_v45 }
 0x362   :  { %3066 = vmatmul.f32.gmra.mxu3 %v2998_v46 }
 0x363   :  { %3197 = vmatpush.msra.mxu3 %v6357_v36 }
 0x365   :  { %3198 = vmatpush.msra.mxu3 %v6364_v20 }
 0x367   :  { %3199 = vmatpush.msra.mxu3 %v6377_v57 }
 0x369   :  { %3200 = vmatpush.msra.mxu3 %v6390_v45 }
 0x36a   :  { %3069 = vmatmul.f32.gmra.mxu3 %v3000_v7 }
 0x371   :  { %v3029_v27 = vpop.f32.mrf.mxu2 }
 0x372   :  { %3072 = vmatmul.f32.gmra.mxu3 %v3002_v47 }
 0x37a   :  { %3075 = vmatmul.f32.gmra.mxu3 %v3004_v32 }
 0x381   :  { %v3032_v51 = vpop.f32.mrf.mxu2 }
 0x382   :  { %3078 = vmatmul.f32.gmra.mxu3 %v3006_v28 }
 0x389   :  { %v3035_v16 = vpop.f32.mrf.mxu2 }
 0x38a   :  { %3081 = vmatmul.f32.gmra.mxu3 %v3008_v22 }
 0x392   :  { %4826 = vmatmul.msk.f32.vlgmr.msrb.gmra.mxu3 %vm1870_vm0, %v635_v26 }
 0x393   :  { %3224 = vmatpush.msrb.mxu3 %v6357_v36 }
 0x395   :  { %3225 = vmatpush.msrb.mxu3 %v6364_v20 }
 0x397   :  { %3226 = vmatpush.msrb.mxu3 %v6377_v57 }
 0x399   :  { %3227 = vmatpush.msrb.mxu3 %v6390_v45 }
 0x39e   :  { %v3038_v63 = vpop.f32.mrf.mxu2 }
 0x3b2   :  { %v3041_v38 = vpop.f32.mrf.mxu2 }
 0x3ba   :  { %v3044_v10 = vpop.f32.mrf.mxu2 }
 0x3dd   :  { %v3064_v13 = vpop.f32.mrf.mxu3 }
 0x3de   :  { %v3065_v25 = vadd.f32 %v3064_v13, %v3026_v44 }
 0x3e0   :  { %4819 = vmatmul.msk.f32.vlgmr.msra.gmra.mxu2 %vm3086_vm12, %v3065_v25 }
 0x3e1   :  { %3359 = vmatpush.msra.mxu2 %v6357_v36 }
 0x3e3   :  { %3360 = vmatpush.msra.mxu2 %v6364_v20 }
 0x3e5   :  { %v3067_v48 = vpop.f32.mrf.mxu3  ;;  %3361 = vmatpush.msra.mxu2 %v6377_v57 }
 0x3e6   :  { %v3068_v56 = vadd.f32 %v3067_v48, %v3029_v27 }
 0x3e7   :  { %3362 = vmatpush.msra.mxu2 %v6390_v45 }
 0x3e8   :  { %4820 = vmatmul.msk.f32.gmra.mxu2 %vm3086_vm12, %v3068_v56 }
 0x3ed   :  { %v3070_v29 = vpop.f32.mrf.mxu3 }
 0x3ee   :  { %v3071_v30 = vadd.f32 %v3070_v29, %v3032_v51 }
 0x3f0   :  { %4821 = vmatmul.msk.f32.gmra.mxu2 %vm3086_vm12, %v3071_v30 }
 0x3f5   :  { %v3073_v55 = vpop.f32.mrf.mxu3 }
 0x3f6   :  { %v3074_v17 = vadd.f32 %v3073_v55, %v3035_v16 }
 0x3f8   :  { %4822 = vmatmul.msk.f32.gmra.mxu2 %vm3086_vm12, %v3074_v17 }
 0x3fd   :  { %v3076_v0 = vpop.f32.mrf.mxu3 }
 0x3fe   :  { %v3077_v19 = vadd.f32 %v3076_v0, %v3038_v63 }
 0x400   :  { %4823 = vmatmul.msk.f32.gmra.mxu2 %vm3086_vm12, %v3077_v19 }
 0x405   :  { %v3079_v31 = vpop.f32.mrf.mxu3 }
 0x406   :  { %v3080_v2 = vadd.f32 %v3079_v31, %v3041_v38 }
 0x408   :  { %4824 = vmatmul.msk.f32.gmra.mxu2 %vm3086_vm12, %v3080_v2 }
 0x40d   :  { %v3082_v8 = vpop.f32.mrf.mxu3 }
 0x40e   :  { %v3083_v34 = vadd.f32 %v3082_v8, %v3044_v10 }
 0x410   :  { %4825 = vmatmul.msk.f32.gmra.mxu2 %vm3086_vm12, %v3083_v34 }
 0x415   :  { %v3175_v3 = vpop.f32.mrf.mxu3 }
 0x463   :  { %v3125_v37 = vpop.f32.mrf.mxu2 }
 0x464   :  { %v3126_v14 = vadd.f32 %v4893_v18, %v3125_v37 }
 0x466   :  { %3146 = vst.msk [vmem:[#allocation4] sm:$0xff] %vm1870_vm0, %v3126_v14 }
 0x46b   :  { %v3128_v40 = vpop.f32.mrf.mxu2 }
 0x46c   :  { %v3129_v54 = vadd.f32 %v4893_v18, %v3128_v40 }
 0x46d   :  { %v3154_v21 = vld [vmem:[#allocation4] sm:$0x1]  ;;  %v3181_v50 = vld [vmem:[#allocation4 + $0x1] sm:$0x1]  ;;  %v3208_v5 = vld [vmem:[#allocation4 + $0x2] sm:$0x1] }
 0x46e   :  { %v3178_v15 = vadd.f32 %v3175_v3, %v3154_v21  ;;  %3147 = vst.msk [vmem:[#allocation4 + $0x8] sm:$0xff] %vm1870_vm0, %v3129_v54  ;;  %v3235_v46 = vld [vmem:[#allocation4 + $0x3] sm:$0x1]  ;;  %v3262_v12 = vld [vmem:[#allocation4 + $0x4] sm:$0x1] }
 0x46f   :  { %v3289_v22 = vld [vmem:[#allocation4 + $0x5] sm:$0x1]  ;;  %v3316_v44 = vld [vmem:[#allocation4 + $0x6] sm:$0x1]  ;;  %v3343_v51 = vld [vmem:[#allocation4 + $0x7] sm:$0x1] }
 0x470   :  { %4895 = vtanh.f32 %v3178_v15 }
 0x473   :  { %v3131_v4 = vpop.f32.mrf.mxu2 }
 0x474   :  { %v3132_v53 = vadd.f32 %v4893_v18, %v3131_v4 }
 0x475   :  { %v3370_v30 = vld [vmem:[#allocation4 + $0x8] sm:$0x1]  ;;  %v3397_v63 = vld [vmem:[#allocation4 + $0x9] sm:$0x1]  ;;  %v3424_v31 = vld [vmem:[#allocation4 + $0xa] sm:$0x1] }
 0x476   :  { %v4896_v24 = vpop.eup %4895  ;;  %3148 = vst.msk [vmem:[#allocation4 + $0x10] sm:$0xff] %vm1870_vm0, %v3132_v53  ;;  %v3451_v34 = vld [vmem:[#allocation4 + $0xb] sm:$0x1]  ;;  %v3478_v3 = vld [vmem:[#allocation4 + $0xc] sm:$0x1] }
 0x477   :  { %3180 = vst.msk [vmem:[#allocation5] sm:$0x1] %vm3152_vm13, %v4896_v24  ;;  %4827 = vmatmul.msk.f32.vlgmr.msra.gmra.mxu3 %vm1870_vm0, %v4896_v24  ;;  %v3505_v40 = vld [vmem:[#allocation4 + $0xd] sm:$0x1] }
 0x478   :  { %3251 = vmatpush.msra.mxu3 %v6357_v36 }
 0x47a   :  { %3252 = vmatpush.msra.mxu3 %v6364_v20 }
 0x47b   :  { %v3134_v41 = vpop.f32.mrf.mxu2 }
 0x47c   :  { %3253 = vmatpush.msra.mxu3 %v6377_v57  ;;  %v3135_v1 = vadd.f32 %v4893_v18, %v3134_v41  ;;  %v3532_v41 = vld [vmem:[#allocation4 + $0xe] sm:$0x1] }
 0x47e   :  { %3254 = vmatpush.msra.mxu3 %v6390_v45  ;;  %3149 = vst.msk [vmem:[#allocation4 + $0x18] sm:$0xff] %vm1870_vm0, %v3135_v1 }
 0x483   :  { %v3137_v42 = vpop.f32.mrf.mxu2 }
 0x484   :  { %v3138_v49 = vadd.f32 %v4893_v18, %v3137_v42 }
 0x486   :  { %3150 = vst.msk [vmem:[#allocation4 + $0x20] sm:$0xff] %vm1870_vm0, %v3138_v49 }
 0x48b   :  { %v3140_v33 = vpop.f32.mrf.mxu2 }
 0x48c   :  { %v3141_v9 = vadd.f32 %v4893_v18, %v3140_v33  ;;  %v3559_v33 = vld [vmem:[#allocation4 + $0xf] sm:$0x1] }
 0x48e   :  { %3151 = vst.msk [vmem:[#allocation4 + $0x28] sm:$0xff] %vm1870_vm0, %v3141_v9 }
 0x493   :  { %v3143_v11 = vpop.f32.mrf.mxu2 }
 0x494   :  { %v3144_v43 = vadd.f32 %v4893_v18, %v3143_v11 }
 0x496   :  { %3153 = vst.msk [vmem:[#allocation4 + $0x30] sm:$0x1] %vm3152_vm13, %v3144_v43 }
 0x4fa   :  { %v3202_v60 = vpop.f32.mrf.mxu3 }
 0x4fb   :  { %v3205_v35 = vadd.f32 %v3202_v60, %v3181_v50  ;;  %v3586_v50 = vld [vmem:[#allocation4 + $0x10] sm:$0x1] }
 0x4fd   :  { %4897 = vtanh.f32 %v3205_v35 }
 0x503   :  { %v4898_v62 = vpop.eup %4897 }
 0x504   :  { %3207 = vst.msk [vmem:[#allocation5 + $0x1] sm:$0x1] %vm3152_vm13, %v4898_v62  ;;  %4828 = vmatmul.msk.f32.vlgmr.msrb.gmra.mxu3 %vm1870_vm0, %v4898_v62 }
 0x505   :  { %3278 = vmatpush.msrb.mxu3 %v6357_v36 }
 0x507   :  { %3279 = vmatpush.msrb.mxu3 %v6364_v20 }
 0x509   :  { %3280 = vmatpush.msrb.mxu3 %v6377_v57 }
 0x50b   :  { %3281 = vmatpush.msrb.mxu3 %v6390_v45 }
 0x587   :  { %v3229_v58 = vpop.f32.mrf.mxu3 }
 0x588   :  { %v3232_v6 = vadd.f32 %v3229_v58, %v3208_v5  ;;  %v3613_v5 = vld [vmem:[#allocation4 + $0x11] sm:$0x1] }
 0x58a   :  { %4899 = vtanh.f32 %v3232_v6 }
 0x590   :  { %v4900_v52 = vpop.eup %4899 }
 0x591   :  { %3234 = vst.msk [vmem:[#allocation5 + $0x2] sm:$0x1] %vm3152_vm13, %v4900_v52  ;;  %4829 = vmatmul.msk.f32.vlgmr.msra.gmra.mxu3 %vm1870_vm0, %v4900_v52 }
 0x592   :  { %3332 = vmatpush.msra.mxu3 %v6357_v36 }
 0x594   :  { %3333 = vmatpush.msra.mxu3 %v6364_v20 }
 0x596   :  { %3334 = vmatpush.msra.mxu3 %v6377_v57 }
 0x598   :  { %3335 = vmatpush.msra.mxu3 %v6390_v45 }
 0x614   :  { %v3256_v39 = vpop.f32.mrf.mxu3 }
 0x615   :  { %v3259_v59 = vadd.f32 %v3256_v39, %v3235_v46  ;;  %v3640_v46 = vld [vmem:[#allocation4 + $0x12] sm:$0x1] }
 0x617   :  { %4901 = vtanh.f32 %v3259_v59 }
 0x61d   :  { %v4902_v7 = vpop.eup %4901 }
 0x61e   :  { %3261 = vst.msk [vmem:[#allocation5 + $0x3] sm:$0x1] %vm3152_vm13, %v4902_v7  ;;  %4830 = vmatmul.msk.f32.vlgmr.msrb.gmra.mxu3 %vm1870_vm0, %v4902_v7 }
 0x61f   :  { %3386 = vmatpush.msrb.mxu3 %v6357_v36 }
 0x621   :  { %3387 = vmatpush.msrb.mxu3 %v6364_v20 }
 0x623   :  { %3388 = vmatpush.msrb.mxu3 %v6377_v57 }
 0x625   :  { %3389 = vmatpush.msrb.mxu3 %v6390_v45 }
 0x6a1   :  { %v3283_v47 = vpop.f32.mrf.mxu3 }
 0x6a2   :  { %v3286_v32 = vadd.f32 %v3283_v47, %v3262_v12  ;;  %v3667_v12 = vld [vmem:[#allocation4 + $0x13] sm:$0x1] }
 0x6a4   :  { %4903 = vtanh.f32 %v3286_v32 }
 0x6aa   :  { %v4904_v28 = vpop.eup %4903 }
 0x6ab   :  { %3288 = vst.msk [vmem:[#allocation5 + $0x4] sm:$0x1] %vm3152_vm13, %v4904_v28  ;;  %4831 = vmatmul.msk.f32.vlgmr.msrb.gmra.mxu2 %vm1870_vm0, %v4904_v28 }
 0x6ac   :  { %3413 = vmatpush.msrb.mxu2 %v6357_v36 }
 0x6ae   :  { %3414 = vmatpush.msrb.mxu2 %v6364_v20 }
 0x6b0   :  { %3415 = vmatpush.msrb.mxu2 %v6377_v57 }
 0x6b2   :  { %3416 = vmatpush.msrb.mxu2 %v6390_v45 }
 0x72e   :  { %v3310_v61 = vpop.f32.mrf.mxu2 }
 0x72f   :  { %v3313_v23 = vadd.f32 %v3310_v61, %v3289_v22  ;;  %v3694_v22 = vld [vmem:[#allocation4 + $0x14] sm:$0x1] }
 0x731   :  { %4905 = vtanh.f32 %v3313_v23 }
 0x737   :  { %v4906_v26 = vpop.eup %4905 }
 0x738   :  { %3315 = vst.msk [vmem:[#allocation5 + $0x5] sm:$0x1] %vm3152_vm13, %v4906_v26  ;;  %4832 = vmatmul.msk.f32.vlgmr.msra.gmra.mxu3 %vm1870_vm0, %v4906_v26 }
 0x739   :  { %3440 = vmatpush.msra.mxu3 %v6357_v36 }
 0x73b   :  { %3441 = vmatpush.msra.mxu3 %v6364_v20 }
 0x73d   :  { %3442 = vmatpush.msra.mxu3 %v6377_v57 }
 0x73f   :  { %3443 = vmatpush.msra.mxu3 %v6390_v45 }
 0x7bb   :  { %v3337_v27 = vpop.f32.mrf.mxu3 }
 0x7bc   :  { %v3340_v13 = vadd.f32 %v3337_v27, %v3316_v44  ;;  %v3721_v44 = vld [vmem:[#allocation4 + $0x15] sm:$0x1] }
 0x7be   :  { %4907 = vtanh.f32 %v3340_v13 }
 0x7c4   :  { %v4908_v25 = vpop.eup %4907 }
 0x7c5   :  { %3342 = vst.msk [vmem:[#allocation5 + $0x6] sm:$0x1] %vm3152_vm13, %v4908_v25  ;;  %4833 = vmatmul.msk.f32.vlgmr.msra.gmra.mxu2 %vm1870_vm0, %v4908_v25 }
 0x7c6   :  { %3467 = vmatpush.msra.mxu2 %v6357_v36 }
 0x7c8   :  { %3468 = vmatpush.msra.mxu2 %v6364_v20 }
 0x7ca   :  { %3469 = vmatpush.msra.mxu2 %v6377_v57 }
 0x7cc   :  { %3470 = vmatpush.msra.mxu2 %v6390_v45 }
 0x848   :  { %v3364_v48 = vpop.f32.mrf.mxu2 }
 0x849   :  { %v3367_v56 = vadd.f32 %v3364_v48, %v3343_v51  ;;  %v3748_v51 = vld [vmem:[#allocation4 + $0x16] sm:$0x1] }
 0x84b   :  { %4909 = vtanh.f32 %v3367_v56 }
 0x851   :  { %v4910_v29 = vpop.eup %4909 }
 0x852   :  { %3369 = vst.msk [vmem:[#allocation5 + $0x7] sm:$0x1] %vm3152_vm13, %v4910_v29  ;;  %4834 = vmatmul.msk.f32.vlgmr.msrb.gmra.mxu3 %vm1870_vm0, %v4910_v29 }
 0x853   :  { %3494 = vmatpush.msrb.mxu3 %v6357_v36 }
 0x855   :  { %3495 = vmatpush.msrb.mxu3 %v6364_v20 }
 0x857   :  { %3496 = vmatpush.msrb.mxu3 %v6377_v57 }
 0x859   :  { %3497 = vmatpush.msrb.mxu3 %v6390_v45 }
 0x8d5   :  { %v3391_v16 = vpop.f32.mrf.mxu3 }
 0x8d6   :  { %v3394_v55 = vadd.f32 %v3391_v16, %v3370_v30  ;;  %v3775_v30 = vld [vmem:[#allocation4 + $0x17] sm:$0x1] }
 0x8d8   :  { %4911 = vtanh.f32 %v3394_v55 }
 0x8de   :  { %v4912_v17 = vpop.eup %4911 }
 0x8df   :  { %3396 = vst.msk [vmem:[#allocation5 + $0x8] sm:$0x1] %vm3152_vm13, %v4912_v17  ;;  %4835 = vmatmul.msk.f32.vlgmr.msrb.gmra.mxu2 %vm1870_vm0, %v4912_v17 }
 0x8e0   :  { %3521 = vmatpush.msrb.mxu2 %v6357_v36 }
 0x8e2   :  { %3522 = vmatpush.msrb.mxu2 %v6364_v20 }
 0x8e4   :  { %3523 = vmatpush.msrb.mxu2 %v6377_v57 }
 0x8e6   :  { %3524 = vmatpush.msrb.mxu2 %v6390_v45 }
 0x962   :  { %v3418_v0 = vpop.f32.mrf.mxu2 }
 0x963   :  { %v3421_v19 = vadd.f32 %v3418_v0, %v3397_v63  ;;  %v3802_v63 = vld [vmem:[#allocation4 + $0x18] sm:$0x1] }
 0x965   :  { %4913 = vtanh.f32 %v3421_v19 }
 0x96b   :  { %v4914_v38 = vpop.eup %4913 }
 0x96c   :  { %3423 = vst.msk [vmem:[#allocation5 + $0x9] sm:$0x1] %vm3152_vm13, %v4914_v38  ;;  %4836 = vmatmul.msk.f32.vlgmr.msra.gmra.mxu3 %vm1870_vm0, %v4914_v38 }
 0x96d   :  { %3548 = vmatpush.msra.mxu3 %v6357_v36 }
 0x96f   :  { %3549 = vmatpush.msra.mxu3 %v6364_v20 }
 0x971   :  { %3550 = vmatpush.msra.mxu3 %v6377_v57 }
 0x973   :  { %3551 = vmatpush.msra.mxu3 %v6390_v45 }
 0x9ef   :  { %v3445_v2 = vpop.f32.mrf.mxu3 }
 0x9f0   :  { %v3448_v10 = vadd.f32 %v3445_v2, %v3424_v31  ;;  %v3829_v31 = vld [vmem:[#allocation4 + $0x19] sm:$0x1] }
 0x9f2   :  { %4915 = vtanh.f32 %v3448_v10 }
 0x9f8   :  { %v4916_v8 = vpop.eup %4915 }
 0x9f9   :  { %3450 = vst.msk [vmem:[#allocation5 + $0xa] sm:$0x1] %vm3152_vm13, %v4916_v8  ;;  %4837 = vmatmul.msk.f32.vlgmr.msra.gmra.mxu2 %vm1870_vm0, %v4916_v8 }
 0x9fa   :  { %3575 = vmatpush.msra.mxu2 %v6357_v36 }
 0x9fc   :  { %3576 = vmatpush.msra.mxu2 %v6364_v20 }
 0x9fe   :  { %3577 = vmatpush.msra.mxu2 %v6377_v57 }
 0xa00   :  { %3578 = vmatpush.msra.mxu2 %v6390_v45 }
 0xa7c   :  { %v3472_v18 = vpop.f32.mrf.mxu2 }
 0xa7d   :  { %v3475_v37 = vadd.f32 %v3472_v18, %v3451_v34  ;;  %v3856_v34 = vld [vmem:[#allocation4 + $0x1a] sm:$0x1] }
 0xa7f   :  { %4917 = vtanh.f32 %v3475_v37 }
 0xa85   :  { %v4918_v14 = vpop.eup %4917 }
 0xa86   :  { %3477 = vst.msk [vmem:[#allocation5 + $0xb] sm:$0x1] %vm3152_vm13, %v4918_v14  ;;  %4838 = vmatmul.msk.f32.vlgmr.msrb.gmra.mxu3 %vm1870_vm0, %v4918_v14 }
 0xa87   :  { %3602 = vmatpush.msrb.mxu3 %v6357_v36 }
 0xa89   :  { %3603 = vmatpush.msrb.mxu3 %v6364_v20 }
 0xa8b   :  { %3604 = vmatpush.msrb.mxu3 %v6377_v57 }
 0xa8d   :  { %3605 = vmatpush.msrb.mxu3 %v6390_v45 }
 0xb09   :  { %v3499_v21 = vpop.f32.mrf.mxu3 }
 0xb0a   :  { %v3502_v15 = vadd.f32 %v3499_v21, %v3478_v3  ;;  %v3883_v3 = vld [vmem:[#allocation4 + $0x1b] sm:$0x1] }
 0xb0c   :  { %4919 = vtanh.f32 %v3502_v15 }
 0xb12   :  { %v4920_v24 = vpop.eup %4919 }
 0xb13   :  { %3504 = vst.msk [vmem:[#allocation5 + $0xc] sm:$0x1] %vm3152_vm13, %v4920_v24  ;;  %4839 = vmatmul.msk.f32.vlgmr.msrb.gmra.mxu2 %vm1870_vm0, %v4920_v24 }
 0xb14   :  { %3629 = vmatpush.msrb.mxu2 %v6357_v36 }
 0xb16   :  { %3630 = vmatpush.msrb.mxu2 %v6364_v20 }
 0xb18   :  { %3631 = vmatpush.msrb.mxu2 %v6377_v57 }
 0xb1a   :  { %3632 = vmatpush.msrb.mxu2 %v6390_v45 }
 0xb96   :  { %v3526_v54 = vpop.f32.mrf.mxu2 }
 0xb97   :  { %v3529_v4 = vadd.f32 %v3526_v54, %v3505_v40  ;;  %v3910_v40 = vld [vmem:[#allocation4 + $0x1c] sm:$0x1] }
 0xb99   :  { %4921 = vtanh.f32 %v3529_v4 }
 0xb9f   :  { %v4922_v53 = vpop.eup %4921 }
 0xba0   :  { %3531 = vst.msk [vmem:[#allocation5 + $0xd] sm:$0x1] %vm3152_vm13, %v4922_v53  ;;  %4840 = vmatmul.msk.f32.vlgmr.msra.gmra.mxu3 %vm1870_vm0, %v4922_v53 }
 0xba1   :  { %3656 = vmatpush.msra.mxu3 %v6357_v36 }
 0xba3   :  { %3657 = vmatpush.msra.mxu3 %v6364_v20 }
 0xba5   :  { %3658 = vmatpush.msra.mxu3 %v6377_v57 }
 0xba7   :  { %3659 = vmatpush.msra.mxu3 %v6390_v45 }
 0xc23   :  { %v3553_v1 = vpop.f32.mrf.mxu3 }
 0xc24   :  { %v3556_v42 = vadd.f32 %v3553_v1, %v3532_v41  ;;  %v3937_v41 = vld [vmem:[#allocation4 + $0x1d] sm:$0x1] }
 0xc26   :  { %4923 = vtanh.f32 %v3556_v42 }
 0xc2c   :  { %v4924_v49 = vpop.eup %4923 }
 0xc2d   :  { %3558 = vst.msk [vmem:[#allocation5 + $0xe] sm:$0x1] %vm3152_vm13, %v4924_v49  ;;  %4841 = vmatmul.msk.f32.vlgmr.msra.gmra.mxu2 %vm1870_vm0, %v4924_v49 }
 0xc2e   :  { %3683 = vmatpush.msra.mxu2 %v6357_v36 }
 0xc30   :  { %3684 = vmatpush.msra.mxu2 %v6364_v20 }
 0xc32   :  { %3685 = vmatpush.msra.mxu2 %v6377_v57 }
 0xc34   :  { %3686 = vmatpush.msra.mxu2 %v6390_v45 }
 0xcb0   :  { %v3580_v9 = vpop.f32.mrf.mxu2 }
 0xcb1   :  { %v3583_v11 = vadd.f32 %v3580_v9, %v3559_v33  ;;  %v3964_v33 = vld [vmem:[#allocation4 + $0x1e] sm:$0x1] }
 0xcb3   :  { %4925 = vtanh.f32 %v3583_v11 }
 0xcb9   :  { %v4926_v43 = vpop.eup %4925 }
 0xcba   :  { %3585 = vst.msk [vmem:[#allocation5 + $0xf] sm:$0x1] %vm3152_vm13, %v4926_v43  ;;  %4842 = vmatmul.msk.f32.vlgmr.msrb.gmra.mxu3 %vm1870_vm0, %v4926_v43 }
 0xcbb   :  { %3710 = vmatpush.msrb.mxu3 %v6357_v36 }
 0xcbd   :  { %3711 = vmatpush.msrb.mxu3 %v6364_v20 }
 0xcbf   :  { %3712 = vmatpush.msrb.mxu3 %v6377_v57 }
 0xcc1   :  { %3713 = vmatpush.msrb.mxu3 %v6390_v45 }
 0xd3d   :  { %v3607_v60 = vpop.f32.mrf.mxu3 }
 0xd3e   :  { %v3610_v35 = vadd.f32 %v3607_v60, %v3586_v50  ;;  %v3991_v50 = vld [vmem:[#allocation4 + $0x1f] sm:$0x1] }
 0xd40   :  { %4927 = vtanh.f32 %v3610_v35 }
 0xd46   :  { %v4928_v62 = vpop.eup %4927 }
 0xd47   :  { %3612 = vst.msk [vmem:[#allocation5 + $0x10] sm:$0x1] %vm3152_vm13, %v4928_v62  ;;  %4843 = vmatmul.msk.f32.vlgmr.msrb.gmra.mxu2 %vm1870_vm0, %v4928_v62 }
 0xd48   :  { %3737 = vmatpush.msrb.mxu2 %v6357_v36 }
 0xd4a   :  { %3738 = vmatpush.msrb.mxu2 %v6364_v20 }
 0xd4c   :  { %3739 = vmatpush.msrb.mxu2 %v6377_v57 }
 0xd4e   :  { %3740 = vmatpush.msrb.mxu2 %v6390_v45 }
 0xdca   :  { %v3634_v58 = vpop.f32.mrf.mxu2 }
 0xdcb   :  { %v3637_v6 = vadd.f32 %v3634_v58, %v3613_v5  ;;  %v4018_v5 = vld [vmem:[#allocation4 + $0x20] sm:$0x1] }
 0xdcd   :  { %4929 = vtanh.f32 %v3637_v6 }
 0xdd3   :  { %v4930_v52 = vpop.eup %4929 }
 0xdd4   :  { %3639 = vst.msk [vmem:[#allocation5 + $0x11] sm:$0x1] %vm3152_vm13, %v4930_v52  ;;  %4844 = vmatmul.msk.f32.vlgmr.msra.gmra.mxu3 %vm1870_vm0, %v4930_v52 }
 0xdd5   :  { %3764 = vmatpush.msra.mxu3 %v6357_v36 }
 0xdd7   :  { %3765 = vmatpush.msra.mxu3 %v6364_v20 }
 0xdd9   :  { %3766 = vmatpush.msra.mxu3 %v6377_v57 }
 0xddb   :  { %3767 = vmatpush.msra.mxu3 %v6390_v45 }
 0xe57   :  { %v3661_v39 = vpop.f32.mrf.mxu3 }
 0xe58   :  { %v3664_v59 = vadd.f32 %v3661_v39, %v3640_v46  ;;  %v4045_v46 = vld [vmem:[#allocation4 + $0x21] sm:$0x1] }
 0xe5a   :  { %4931 = vtanh.f32 %v3664_v59 }
 0xe60   :  { %v4932_v7 = vpop.eup %4931 }
 0xe61   :  { %3666 = vst.msk [vmem:[#allocation5 + $0x12] sm:$0x1] %vm3152_vm13, %v4932_v7  ;;  %4845 = vmatmul.msk.f32.vlgmr.msra.gmra.mxu2 %vm1870_vm0, %v4932_v7 }
 0xe62   :  { %3791 = vmatpush.msra.mxu2 %v6357_v36 }
 0xe64   :  { %3792 = vmatpush.msra.mxu2 %v6364_v20 }
 0xe66   :  { %3793 = vmatpush.msra.mxu2 %v6377_v57 }
 0xe68   :  { %3794 = vmatpush.msra.mxu2 %v6390_v45 }
 0xee4   :  { %v3688_v47 = vpop.f32.mrf.mxu2 }
 0xee5   :  { %v3691_v32 = vadd.f32 %v3688_v47, %v3667_v12  ;;  %v4072_v12 = vld [vmem:[#allocation4 + $0x22] sm:$0x1] }
 0xee7   :  { %4933 = vtanh.f32 %v3691_v32 }
 0xeed   :  { %v4934_v28 = vpop.eup %4933 }
 0xeee   :  { %3693 = vst.msk [vmem:[#allocation5 + $0x13] sm:$0x1] %vm3152_vm13, %v4934_v28  ;;  %4846 = vmatmul.msk.f32.vlgmr.msrb.gmra.mxu3 %vm1870_vm0, %v4934_v28 }
 0xeef   :  { %3818 = vmatpush.msrb.mxu3 %v6357_v36 }
 0xef1   :  { %3819 = vmatpush.msrb.mxu3 %v6364_v20 }
 0xef3   :  { %3820 = vmatpush.msrb.mxu3 %v6377_v57 }
 0xef5   :  { %3821 = vmatpush.msrb.mxu3 %v6390_v45 }
 0xf71   :  { %v3715_v61 = vpop.f32.mrf.mxu3 }
 0xf72   :  { %v3718_v23 = vadd.f32 %v3715_v61, %v3694_v22  ;;  %v4099_v22 = vld [vmem:[#allocation4 + $0x23] sm:$0x1] }
 0xf74   :  { %4935 = vtanh.f32 %v3718_v23 }
 0xf7a   :  { %v4936_v26 = vpop.eup %4935 }
 0xf7b   :  { %3720 = vst.msk [vmem:[#allocation5 + $0x14] sm:$0x1] %vm3152_vm13, %v4936_v26  ;;  %4847 = vmatmul.msk.f32.vlgmr.msrb.gmra.mxu2 %vm1870_vm0, %v4936_v26 }
 0xf7c   :  { %3845 = vmatpush.msrb.mxu2 %v6357_v36 }
 0xf7e   :  { %3846 = vmatpush.msrb.mxu2 %v6364_v20 }
 0xf80   :  { %3847 = vmatpush.msrb.mxu2 %v6377_v57 }
 0xf82   :  { %3848 = vmatpush.msrb.mxu2 %v6390_v45 }
 0xffe   :  { %v3742_v27 = vpop.f32.mrf.mxu2 }
 0xfff   :  { %v3745_v13 = vadd.f32 %v3742_v27, %v3721_v44  ;;  %v5008_v44 = vld [vmem:[%s6783_s5 + $0x58] sm:$0xff] }
0x1001   :  { %4937 = vtanh.f32 %v3745_v13 }
0x1007   :  { %v4938_v25 = vpop.eup %4937 }
0x1008   :  { %3747 = vst.msk [vmem:[#allocation5 + $0x15] sm:$0x1] %vm3152_vm13, %v4938_v25  ;;  %4848 = vmatmul.msk.f32.vlgmr.msra.gmra.mxu3 %vm1870_vm0, %v4938_v25 }
0x1009   :  { %3872 = vmatpush.msra.mxu3 %v6357_v36 }
0x100b   :  { %3873 = vmatpush.msra.mxu3 %v6364_v20 }
0x100d   :  { %3874 = vmatpush.msra.mxu3 %v6377_v57 }
0x100f   :  { %3875 = vmatpush.msra.mxu3 %v6390_v45 }
0x108b   :  { %v3769_v48 = vpop.f32.mrf.mxu3 }
0x108c   :  { %v3772_v56 = vadd.f32 %v3769_v48, %v3748_v51  ;;  %v5010_v51 = vld [vmem:[%s6783_s5 + $0x48] sm:$0xff] }
0x108e   :  { %4939 = vtanh.f32 %v3772_v56 }
0x1094   :  { %v4940_v29 = vpop.eup %4939 }
0x1095   :  { %3774 = vst.msk [vmem:[#allocation5 + $0x16] sm:$0x1] %vm3152_vm13, %v4940_v29  ;;  %4849 = vmatmul.msk.f32.vlgmr.msra.gmra.mxu2 %vm1870_vm0, %v4940_v29 }
0x1096   :  { %3899 = vmatpush.msra.mxu2 %v6357_v36 }
0x1098   :  { %3900 = vmatpush.msra.mxu2 %v6364_v20 }
0x109a   :  { %3901 = vmatpush.msra.mxu2 %v6377_v57 }
0x109c   :  { %3902 = vmatpush.msra.mxu2 %v6390_v45 }
0x1118   :  { %v3796_v16 = vpop.f32.mrf.mxu2 }
0x1119   :  { %v3799_v55 = vadd.f32 %v3796_v16, %v3775_v30  ;;  %v4180_v30 = vld [vmem:[#allocation4 + $0x26] sm:$0x1] }
0x111b   :  { %4941 = vtanh.f32 %v3799_v55 }
0x1121   :  { %v4942_v17 = vpop.eup %4941 }
0x1122   :  { %3801 = vst.msk [vmem:[#allocation5 + $0x17] sm:$0x1] %vm3152_vm13, %v4942_v17  ;;  %4850 = vmatmul.msk.f32.vlgmr.msrb.gmra.mxu3 %vm1870_vm0, %v4942_v17 }
0x1123   :  { %3926 = vmatpush.msrb.mxu3 %v6357_v36 }
0x1125   :  { %3927 = vmatpush.msrb.mxu3 %v6364_v20 }
0x1127   :  { %3928 = vmatpush.msrb.mxu3 %v6377_v57 }
0x1129   :  { %3929 = vmatpush.msrb.mxu3 %v6390_v45 }
0x11a5   :  { %v3823_v0 = vpop.f32.mrf.mxu3 }
0x11a6   :  { %v3826_v19 = vadd.f32 %v3823_v0, %v3802_v63  ;;  %v4207_v63 = vld [vmem:[#allocation4 + $0x27] sm:$0x1] }
0x11a8   :  { %4943 = vtanh.f32 %v3826_v19 }
0x11ae   :  { %v4944_v38 = vpop.eup %4943 }
0x11af   :  { %3828 = vst.msk [vmem:[#allocation5 + $0x18] sm:$0x1] %vm3152_vm13, %v4944_v38  ;;  %4851 = vmatmul.msk.f32.vlgmr.msrb.gmra.mxu2 %vm1870_vm0, %v4944_v38 }
0x11b0   :  { %3953 = vmatpush.msrb.mxu2 %v6357_v36 }
0x11b2   :  { %3954 = vmatpush.msrb.mxu2 %v6364_v20 }
0x11b4   :  { %3955 = vmatpush.msrb.mxu2 %v6377_v57 }
0x11b6   :  { %3956 = vmatpush.msrb.mxu2 %v6390_v45 }
0x1232   :  { %v3850_v2 = vpop.f32.mrf.mxu2 }
0x1233   :  { %v3853_v10 = vadd.f32 %v3850_v2, %v3829_v31  ;;  %v4234_v31 = vld [vmem:[#allocation4 + $0x28] sm:$0x1] }
0x1235   :  { %4945 = vtanh.f32 %v3853_v10 }
0x123b   :  { %v4946_v8 = vpop.eup %4945 }
0x123c   :  { %3855 = vst.msk [vmem:[#allocation5 + $0x19] sm:$0x1] %vm3152_vm13, %v4946_v8  ;;  %4852 = vmatmul.msk.f32.vlgmr.msra.gmra.mxu3 %vm1870_vm0, %v4946_v8 }
0x123d   :  { %3980 = vmatpush.msra.mxu3 %v6357_v36 }
0x123f   :  { %3981 = vmatpush.msra.mxu3 %v6364_v20 }
0x1241   :  { %3982 = vmatpush.msra.mxu3 %v6377_v57 }
0x1243   :  { %3983 = vmatpush.msra.mxu3 %v6390_v45 }
0x12bf   :  { %v3877_v18 = vpop.f32.mrf.mxu3 }
0x12c0   :  { %v3880_v37 = vadd.f32 %v3877_v18, %v3856_v34  ;;  %v4261_v34 = vld [vmem:[#allocation4 + $0x29] sm:$0x1] }
0x12c2   :  { %4947 = vtanh.f32 %v3880_v37 }
0x12c8   :  { %v4948_v14 = vpop.eup %4947 }
0x12c9   :  { %3882 = vst.msk [vmem:[#allocation5 + $0x1a] sm:$0x1] %vm3152_vm13, %v4948_v14  ;;  %4853 = vmatmul.msk.f32.vlgmr.msra.gmra.mxu2 %vm1870_vm0, %v4948_v14 }
0x12ca   :  { %4007 = vmatpush.msra.mxu2 %v6357_v36 }
0x12cc   :  { %4008 = vmatpush.msra.mxu2 %v6364_v20 }
0x12ce   :  { %4009 = vmatpush.msra.mxu2 %v6377_v57 }
0x12d0   :  { %4010 = vmatpush.msra.mxu2 %v6390_v45 }
0x134c   :  { %v3904_v21 = vpop.f32.mrf.mxu2 }
0x134d   :  { %v3907_v15 = vadd.f32 %v3904_v21, %v3883_v3  ;;  %v4288_v3 = vld [vmem:[#allocation4 + $0x2a] sm:$0x1] }
0x134f   :  { %4949 = vtanh.f32 %v3907_v15 }
0x1355   :  { %v4950_v24 = vpop.eup %4949 }
0x1356   :  { %3909 = vst.msk [vmem:[#allocation5 + $0x1b] sm:$0x1] %vm3152_vm13, %v4950_v24  ;;  %4854 = vmatmul.msk.f32.vlgmr.msrb.gmra.mxu3 %vm1870_vm0, %v4950_v24 }
0x1357   :  { %4034 = vmatpush.msrb.mxu3 %v6357_v36 }
0x1359   :  { %4035 = vmatpush.msrb.mxu3 %v6364_v20 }
0x135b   :  { %4036 = vmatpush.msrb.mxu3 %v6377_v57 }
0x135d   :  { %4037 = vmatpush.msrb.mxu3 %v6390_v45 }
0x13d9   :  { %v3931_v54 = vpop.f32.mrf.mxu3 }
0x13da   :  { %v3934_v4 = vadd.f32 %v3931_v54, %v3910_v40  ;;  %v4315_v40 = vld [vmem:[#allocation4 + $0x2b] sm:$0x1] }
0x13dc   :  { %4951 = vtanh.f32 %v3934_v4 }
0x13e2   :  { %v4952_v53 = vpop.eup %4951 }
0x13e3   :  { %3936 = vst.msk [vmem:[#allocation5 + $0x1c] sm:$0x1] %vm3152_vm13, %v4952_v53  ;;  %4855 = vmatmul.msk.f32.vlgmr.msrb.gmra.mxu2 %vm1870_vm0, %v4952_v53 }
0x13e4   :  { %4061 = vmatpush.msrb.mxu2 %v6357_v36 }
0x13e6   :  { %4062 = vmatpush.msrb.mxu2 %v6364_v20 }
0x13e8   :  { %4063 = vmatpush.msrb.mxu2 %v6377_v57 }
0x13ea   :  { %4064 = vmatpush.msrb.mxu2 %v6390_v45 }
0x1466   :  { %v3958_v1 = vpop.f32.mrf.mxu2 }
0x1467   :  { %v3961_v42 = vadd.f32 %v3958_v1, %v3937_v41  ;;  %v652_v41 = vld [vmem:[%s6783_s5 + $0x78] sm:$0xff]  ;;  %v651_v1 = vld [vmem:[%s6783_s5 + $0x70] sm:$0xff] }
0x1468   :  { %4518 = vmatpush.msrb.mxu0 %v652_v41 }
0x1469   :  { %4953 = vtanh.f32 %v3961_v42  ;;  %v650_v42 = vld [vmem:[%s6783_s5 + $0x68] sm:$0xff] }
0x146a   :  { %4519 = vmatpush.msrb.mxu0 %v651_v1 }
0x146c   :  { %4520 = vmatpush.msrb.mxu0 %v650_v42 }
0x146f   :  { %v4954_v49 = vpop.eup %4953 }
0x1470   :  { %3963 = vst.msk [vmem:[#allocation5 + $0x1d] sm:$0x1] %vm3152_vm13, %v4954_v49  ;;  %4856 = vmatmul.msk.f32.vlgmr.msra.gmra.mxu3 %vm1870_vm0, %v4954_v49  ;;  %v649_v49 = vld [vmem:[%s6783_s5 + $0x60] sm:$0xff] }
0x1471   :  { %4088 = vmatpush.msra.mxu3 %v6357_v36  ;;  %4521 = vmatpush.msrb.mxu0 %v649_v49 }
0x1473   :  { %4089 = vmatpush.msra.mxu3 %v6364_v20 }
0x1475   :  { %4090 = vmatpush.msra.mxu3 %v6377_v57 }
0x1477   :  { %4091 = vmatpush.msra.mxu3 %v6390_v45 }
0x14f3   :  { %v3985_v9 = vpop.f32.mrf.mxu3 }
0x14f4   :  { %v3988_v11 = vadd.f32 %v3985_v9, %v3964_v33  ;;  %v4342_v33 = vld [vmem:[#allocation4 + $0x2c] sm:$0x1] }
0x14f6   :  { %4955 = vtanh.f32 %v3988_v11 }
0x14fc   :  { %v4956_v43 = vpop.eup %4955 }
0x14fd   :  { %3990 = vst.msk [vmem:[#allocation5 + $0x1e] sm:$0x1] %vm3152_vm13, %v4956_v43  ;;  %4857 = vmatmul.msk.f32.vlgmr.msra.gmra.mxu2 %vm1870_vm0, %v4956_v43 }
0x14fe   :  { %4115 = vmatpush.msra.mxu2 %v6357_v36 }
0x1500   :  { %4116 = vmatpush.msra.mxu2 %v6364_v20 }
0x1502   :  { %4117 = vmatpush.msra.mxu2 %v6377_v57 }
0x1504   :  { %4118 = vmatpush.msra.mxu2 %v6390_v45 }
0x1580   :  { %v4012_v60 = vpop.f32.mrf.mxu2 }
0x1581   :  { %v4015_v35 = vadd.f32 %v4012_v60, %v3991_v50  ;;  %v4477_v50 = vld [vmem:[#allocation5] sm:$0xff]  ;;  %v4478_v60 = vld [vmem:[#allocation5 + $0x8] sm:$0xff] }
0x1583   :  { %4957 = vtanh.f32 %v4015_v35  ;;  %v4479_v35 = vld [vmem:[#allocation5 + $0x10] sm:$0xff] }
0x1589   :  { %v4958_v62 = vpop.eup %4957 }
0x158a   :  { %4017 = vst.msk [vmem:[#allocation5 + $0x1f] sm:$0x1] %vm3152_vm13, %v4958_v62  ;;  %4858 = vmatmul.msk.f32.vlgmr.msrb.gmra.mxu3 %vm1870_vm0, %v4958_v62 }
0x158b   :  { %4142 = vmatpush.msrb.mxu3 %v6357_v36 }
0x158d   :  { %4143 = vmatpush.msrb.mxu3 %v6364_v20 }
0x158f   :  { %4144 = vmatpush.msrb.mxu3 %v6377_v57 }
0x1591   :  { %4145 = vmatpush.msrb.mxu3 %v6390_v45  ;;  %v4480_v62 = vld [vmem:[#allocation5 + $0x18] sm:$0xff] }
0x160d   :  { %v4039_v58 = vpop.f32.mrf.mxu3 }
0x160e   :  { %v4042_v6 = vadd.f32 %v4039_v58, %v4018_v5  ;;  %v4369_v58 = vld [vmem:[#allocation4 + $0x2d] sm:$0x1] }
0x1610   :  { %4959 = vtanh.f32 %v4042_v6 }
0x1616   :  { %v4960_v52 = vpop.eup %4959 }
0x1617   :  { %4044 = vst.msk [vmem:[#allocation5 + $0x20] sm:$0x1] %vm3152_vm13, %v4960_v52  ;;  %4859 = vmatmul.msk.f32.vlgmr.msrb.gmra.mxu2 %vm1870_vm0, %v4960_v52 }
0x1618   :  { %4169 = vmatpush.msrb.mxu2 %v6357_v36 }
0x161a   :  { %4170 = vmatpush.msrb.mxu2 %v6364_v20 }
0x161c   :  { %4171 = vmatpush.msrb.mxu2 %v6377_v57 }
0x161e   :  { %4172 = vmatpush.msrb.mxu2 %v6390_v45 }
0x169a   :  { %v4066_v39 = vpop.f32.mrf.mxu2 }
0x169b   :  { %v4069_v59 = vadd.f32 %v4066_v39, %v4045_v46  ;;  %v4894_v46 = vld [vmem:[%s6780_s4 + $0x4] ss:$0 sm:$0xff] }
0x169d   :  { %4961 = vtanh.f32 %v4069_v59 }
0x16a3   :  { %v4962_v7 = vpop.eup %4961 }
0x16a4   :  { %4071 = vst.msk [vmem:[#allocation5 + $0x21] sm:$0x1] %vm3152_vm13, %v4962_v7  ;;  %4860 = vmatmul.msk.f32.vlgmr.msra.gmra.mxu3 %vm1870_vm0, %v4962_v7 }
0x16a5   :  { %4196 = vmatpush.msra.mxu3 %v6357_v36 }
0x16a7   :  { %4197 = vmatpush.msra.mxu3 %v6364_v20 }
0x16a9   :  { %4198 = vmatpush.msra.mxu3 %v6377_v57 }
0x16ab   :  { %4199 = vmatpush.msra.mxu3 %v6390_v45 }
0x1727   :  { %v4093_v47 = vpop.f32.mrf.mxu3 }
0x1728   :  { %v4096_v32 = vadd.f32 %v4093_v47, %v4072_v12 }
0x172a   :  { %4963 = vtanh.f32 %v4096_v32 }
0x1730   :  { %v4964_v28 = vpop.eup %4963 }
0x1731   :  { %4098 = vst.msk [vmem:[#allocation5 + $0x22] sm:$0x1] %vm3152_vm13, %v4964_v28  ;;  %4861 = vmatmul.msk.f32.vlgmr.msra.gmra.mxu2 %vm1870_vm0, %v4964_v28 }
0x1732   :  { %4223 = vmatpush.msra.mxu2 %v6357_v36  ;;  %v5009_v36 = vld [vmem:[%s6783_s5 + $0x50] sm:$0xff] }
0x1734   :  { %4224 = vmatpush.msra.mxu2 %v6364_v20  ;;  %v4126_v20 = vld [vmem:[#allocation4 + $0x24] sm:$0x1] }
0x1736   :  { %4225 = vmatpush.msra.mxu2 %v6377_v57 }
0x1738   :  { %4226 = vmatpush.msra.mxu2 %v6390_v45 }
0x17b4   :  { %v4120_v61 = vpop.f32.mrf.mxu2 }
0x17b5   :  { %v4123_v23 = vadd.f32 %v4120_v61, %v4099_v22 }
0x17b7   :  { %4965 = vtanh.f32 %v4123_v23 }
0x17bd   :  { %v4966_v26 = vpop.eup %4965 }
0x17be   :  { %4125 = vst.msk [vmem:[#allocation5 + $0x23] sm:$0x1] %vm3152_vm13, %v4966_v26  ;;  %4862 = vmatmul.msk.f32.vlgmr.msrb.gmra.mxu3 %vm1870_vm0, %v4966_v26 }
0x17bf   :  { %4250 = vmatpush.msrb.mxu3 %v5008_v44 }
0x17c1   :  { %4251 = vmatpush.msrb.mxu3 %v5009_v36 }
0x17c3   :  { %4252 = vmatpush.msrb.mxu3 %v6377_v57  ;;  %v5011_v57 = vld [vmem:[%s6783_s5 + $0x40] sm:$0xff] }
0x17c5   :  { %4253 = vmatpush.msrb.mxu3 %v6390_v45  ;;  %v4153_v45 = vld [vmem:[#allocation4 + $0x25] sm:$0x1] }
0x1841   :  { %v4147_v27 = vpop.f32.mrf.mxu3 }
0x1842   :  { %v4150_v13 = vadd.f32 %v4147_v27, %v4126_v20 }
0x1844   :  { %4967 = vtanh.f32 %v4150_v13 }
0x184a   :  { %v4968_v25 = vpop.eup %4967 }
0x184b   :  { %4152 = vst.msk [vmem:[#allocation5 + $0x24] sm:$0x1] %vm3152_vm13, %v4968_v25  ;;  %4863 = vmatmul.msk.f32.vlgmr.msrb.gmra.mxu2 %vm1870_vm0, %v4968_v25  ;;  %v4396_v25 = vld [vmem:[#allocation4 + $0x2e] sm:$0x1] }
0x184c   :  { %4277 = vmatpush.msrb.mxu2 %v5008_v44 }
0x184e   :  { %4278 = vmatpush.msrb.mxu2 %v5009_v36 }
0x1850   :  { %4279 = vmatpush.msrb.mxu2 %v5010_v51 }
0x1852   :  { %4280 = vmatpush.msrb.mxu2 %v5011_v57 }
0x18ce   :  { %v4174_v48 = vpop.f32.mrf.mxu2 }
0x18cf   :  { %v4177_v56 = vadd.f32 %v4174_v48, %v4153_v45  ;;  %v4423_v48 = vld [vmem:[#allocation4 + $0x2f] sm:$0x1] }
0x18d1   :  { %4969 = vtanh.f32 %v4177_v56 }
0x18d7   :  { %v4970_v29 = vpop.eup %4969 }
0x18d8   :  { %4179 = vst.msk [vmem:[#allocation5 + $0x25] sm:$0x1] %vm3152_vm13, %v4970_v29  ;;  %4864 = vmatmul.msk.f32.vlgmr.msra.gmra.mxu3 %vm1870_vm0, %v4970_v29 }
0x18d9   :  { %4358 = vmatpush.msra.mxu3 %v5008_v44 }
0x18db   :  { %4359 = vmatpush.msra.mxu3 %v5009_v36 }
0x18dd   :  { %4360 = vmatpush.msra.mxu3 %v5010_v51 }
0x18df   :  { %4361 = vmatpush.msra.mxu3 %v5011_v57 }
0x195b   :  { %v4201_v16 = vpop.f32.mrf.mxu3 }
0x195c   :  { %v4204_v55 = vadd.f32 %v4201_v16, %v4180_v30 }
0x195e   :  { %4971 = vtanh.f32 %v4204_v55  ;;  %v4450_v55 = vld [vmem:[#allocation4 + $0x30] sm:$0x1] }
0x1964   :  { %v4972_v17 = vpop.eup %4971 }
0x1965   :  { %4206 = vst.msk [vmem:[#allocation5 + $0x26] sm:$0x1] %vm3152_vm13, %v4972_v17  ;;  %4865 = vmatmul.msk.f32.vlgmr.msra.gmra.mxu2 %vm1870_vm0, %v4972_v17 }
0x1966   :  { %4331 = vmatpush.msra.mxu2 %v5008_v44 }
0x1968   :  { %4332 = vmatpush.msra.mxu2 %v5009_v36 }
0x196a   :  { %4333 = vmatpush.msra.mxu2 %v5010_v51 }
0x196c   :  { %4334 = vmatpush.msra.mxu2 %v5011_v57 }
0x19e8   :  { %v4228_v0 = vpop.f32.mrf.mxu2 }
0x19e9   :  { %v4231_v19 = vadd.f32 %v4228_v0, %v4207_v63 }
0x19eb   :  { %4973 = vtanh.f32 %v4231_v19 }
0x19f1   :  { %v4974_v38 = vpop.eup %4973 }
0x19f2   :  { %4233 = vst.msk [vmem:[#allocation5 + $0x27] sm:$0x1] %vm3152_vm13, %v4974_v38  ;;  %4866 = vmatmul.msk.f32.vlgmr.msrb.gmra.mxu3 %vm1870_vm0, %v4974_v38 }
0x19f3   :  { %4466 = vmatpush.msrb.mxu3 %v5008_v44 }
0x19f5   :  { %4467 = vmatpush.msrb.mxu3 %v5009_v36 }
0x19f7   :  { %4468 = vmatpush.msrb.mxu3 %v5010_v51 }
0x19f9   :  { %4469 = vmatpush.msrb.mxu3 %v5011_v57  ;;  %v4481_v5 = vld [vmem:[#allocation5 + $0x20] sm:$0xff] }
0x1a75   :  { %v4255_v2 = vpop.f32.mrf.mxu3 }
0x1a76   :  { %v4258_v10 = vadd.f32 %v4255_v2, %v4234_v31 }
0x1a78   :  { %4975 = vtanh.f32 %v4258_v10 }
0x1a7e   :  { %v4976_v8 = vpop.eup %4975 }
0x1a7f   :  { %4260 = vst.msk [vmem:[#allocation5 + $0x28] sm:$0x1] %vm3152_vm13, %v4976_v8  ;;  %4867 = vmatmul.msk.f32.vlgmr.msrb.gmra.mxu2 %vm1870_vm0, %v4976_v8 }
0x1a80   :  { %4439 = vmatpush.msrb.mxu2 %v5008_v44 }
0x1a82   :  { %4440 = vmatpush.msrb.mxu2 %v5009_v36 }
0x1a84   :  { %4441 = vmatpush.msrb.mxu2 %v5010_v51 }
0x1a86   :  { %4442 = vmatpush.msrb.mxu2 %v5011_v57 }
0x1b02   :  { %v4282_v18 = vpop.f32.mrf.mxu2 }
0x1b03   :  { %v4285_v37 = vadd.f32 %v4282_v18, %v4261_v34 }
0x1b05   :  { %4977 = vtanh.f32 %v4285_v37 }
0x1b0b   :  { %v4978_v14 = vpop.eup %4977 }
0x1b0c   :  { %4287 = vst.msk [vmem:[#allocation5 + $0x29] sm:$0x1] %vm3152_vm13, %v4978_v14  ;;  %4868 = vmatmul.msk.f32.vlgmr.msrb.gmra.mxu1 %vm1870_vm0, %v4978_v14 }
0x1b89   :  { %v4309_v21 = vpop.f32.mrf.mxu1 }
0x1b8a   :  { %v4312_v15 = vadd.f32 %v4309_v21, %v4288_v3 }
0x1b8c   :  { %4979 = vtanh.f32 %v4312_v15 }
0x1b92   :  { %v4980_v24 = vpop.eup %4979 }
0x1b93   :  { %4314 = vst.msk [vmem:[#allocation5 + $0x2a] sm:$0x1] %vm3152_vm13, %v4980_v24  ;;  %4869 = vmatmul.msk.f32.vlgmr.msra.gmra.mxu2 %vm1870_vm0, %v4980_v24 }
0x1c16   :  { %v4336_v54 = vpop.f32.mrf.mxu2 }
0x1c17   :  { %v4339_v4 = vadd.f32 %v4336_v54, %v4315_v40 }
0x1c19   :  { %4981 = vtanh.f32 %v4339_v4 }
0x1c1f   :  { %v4982_v53 = vpop.eup %4981 }
0x1c20   :  { %4341 = vst.msk [vmem:[#allocation5 + $0x2b] sm:$0x1] %vm3152_vm13, %v4982_v53  ;;  %4870 = vmatmul.msk.f32.vlgmr.msra.gmra.mxu3 %vm1870_vm0, %v4982_v53 }
0x1ca3   :  { %v4363_v9 = vpop.f32.mrf.mxu3 }
0x1ca4   :  { %v4366_v11 = vadd.f32 %v4363_v9, %v4342_v33 }
0x1ca6   :  { %4983 = vtanh.f32 %v4366_v11 }
0x1cac   :  { %v4984_v43 = vpop.eup %4983 }
0x1cad   :  { %4368 = vst.msk [vmem:[#allocation5 + $0x2c] sm:$0x1] %vm3152_vm13, %v4984_v43  ;;  %4871 = vmatmul.msk.f32.vlgmr.msra.gmra.mxu0 %vm1870_vm0, %v4984_v43 }
0x1cb5   :  { %4875 = vmatmul.msk.f32.vlgmr.msrb.gmra.mxu0 %vm1870_vm0, %v4477_v50 }
0x1cbd   :  { %4876 = vmatmul.msk.f32.gmra.mxu0 %vm1870_vm0, %v4478_v60 }
0x1cc5   :  { %4877 = vmatmul.msk.f32.gmra.mxu0 %vm1870_vm0, %v4479_v35 }
0x1ccd   :  { %4878 = vmatmul.msk.f32.gmra.mxu0 %vm1870_vm0, %v4480_v62 }
0x1cd5   :  { %4879 = vmatmul.msk.f32.gmra.mxu0 %vm1870_vm0, %v4481_v5 }
0x1d2a   :  { %v4390_v6 = vpop.f32.mrf.mxu0 }
0x1d2b   :  { %v4393_v52 = vadd.f32 %v4390_v6, %v4369_v58 }
0x1d2d   :  { %4985 = vtanh.f32 %v4393_v52 }
0x1d32   :  { %v4523_v39 = vpop.f32.mrf.mxu0 }
0x1d33   :  { %v4986_v59 = vpop.eup %4985  ;;  %v4524_v7 = vadd.f32 %v4894_v46, %v4523_v39 }
0x1d34   :  { %4395 = vst.msk [vmem:[#allocation5 + $0x2d] sm:$0x1] %vm3152_vm13, %v4986_v59  ;;  %4872 = vmatmul.msk.f32.vlgmr.msra.gmra.mxu1 %vm1870_vm0, %v4986_v59 }
0x1d35   :  { %4987 = vtanh.f32 %v4524_v7 }
0x1d3a   :  { %v4526_v12 = vpop.f32.mrf.mxu0 }
0x1d3b   :  { %v4988_v47 = vpop.eup %4987  ;;  %v4527_v32 = vadd.f32 %v4894_v46, %v4526_v12 }
0x1d3c   :  { %4552 = vst.msk [vmem:[%s6784_s6] sm:$0xff] %vm4551_vm14, %v4988_v47 }
0x1d3d   :  { %4989 = vtanh.f32 %v4527_v32 }
0x1d42   :  { %v4529_v28 = vpop.f32.mrf.mxu0 }
0x1d43   :  { %v4990_v22 = vpop.eup %4989  ;;  %v4530_v61 = vadd.f32 %v4894_v46, %v4529_v28 }
0x1d44   :  { %4553 = vst.msk [vmem:[%s6784_s6 + $0x8] sm:$0xff] %vm4551_vm14, %v4990_v22 }
0x1d45   :  { %4991 = vtanh.f32 %v4530_v61 }
0x1d4a   :  { %v4532_v23 = vpop.f32.mrf.mxu0 }
0x1d4b   :  { %v4992_v26 = vpop.eup %4991  ;;  %v4533_v44 = vadd.f32 %v4894_v46, %v4532_v23 }
0x1d4c   :  { %4554 = vst.msk [vmem:[%s6784_s6 + $0x10] sm:$0xff] %vm4551_vm14, %v4992_v26 }
0x1d4d   :  { %4993 = vtanh.f32 %v4533_v44 }
0x1d52   :  { %v4535_v36 = vpop.f32.mrf.mxu0 }
0x1d53   :  { %v4994_v20 = vpop.eup %4993  ;;  %v4536_v27 = vadd.f32 %v4894_v46, %v4535_v36 }
0x1d54   :  { %4555 = vst.msk [vmem:[%s6784_s6 + $0x18] sm:$0xff] %vm4551_vm14, %v4994_v20 }
0x1d55   :  { %4995 = vtanh.f32 %v4536_v27 }
0x1d5b   :  { %v4996_v13 = vpop.eup %4995 }
0x1d5c   :  { %4556 = vst.msk [vmem:[%s6784_s6 + $0x20] sm:$0xff] %vm4551_vm14, %v4996_v13 }
0x1db1   :  { %v4417_v51 = vpop.f32.mrf.mxu1 }
0x1db2   :  { %v4420_v57 = vadd.f32 %v4417_v51, %v4396_v25 }
0x1db4   :  { %4997 = vtanh.f32 %v4420_v57 }
0x1dba   :  { %v4998_v45 = vpop.eup %4997 }
0x1dbb   :  { %4422 = vst.msk [vmem:[#allocation5 + $0x2e] sm:$0x1] %vm3152_vm13, %v4998_v45  ;;  %4873 = vmatmul.msk.f32.vlgmr.msrb.gmra.mxu2 %vm1870_vm0, %v4998_v45 }
0x1e3e   :  { %v4444_v56 = vpop.f32.mrf.mxu2 }
0x1e3f   :  { %v4447_v29 = vadd.f32 %v4444_v56, %v4423_v48 }
0x1e41   :  { %4999 = vtanh.f32 %v4447_v29 }
0x1e47   :  { %v5000_v30 = vpop.eup %4999 }
0x1e48   :  { %4449 = vst.msk [vmem:[#allocation5 + $0x2f] sm:$0x1] %vm3152_vm13, %v5000_v30  ;;  %4874 = vmatmul.msk.f32.vlgmr.msrb.gmra.mxu3 %vm1870_vm0, %v5000_v30 }
0x1e4f   :  { %v4482_v16 = vld [vmem:[#allocation5 + $0x28] sm:$0xff] }
0x1e50   :  { %4880 = vmatmul.msk.f32.gmra.mxu0 %vm1870_vm0, %v4482_v16 }
0x1ecb   :  { %v4471_v17 = vpop.f32.mrf.mxu3 }
0x1ecc   :  { %v4474_v63 = vadd.f32 %v4471_v17, %v4450_v55 }
0x1ecd   :  { %v4538_v0 = vpop.f32.mrf.mxu0 }
0x1ece   :  { %5001 = vtanh.f32 %v4474_v63  ;;  %v4539_v19 = vadd.f32 %v4894_v46, %v4538_v0 }
0x1ed0   :  { %5003 = vtanh.f32 %v4539_v19 }
0x1ed4   :  { %v5002_v38 = vpop.eup %5001 }
0x1ed5   :  { %4476 = vst.msk [vmem:[#allocation5 + $0x30] sm:$0x1] %vm3152_vm13, %v5002_v38 }
0x1ed6   :  { %v5004_v31 = vpop.eup %5003 }
0x1ed7   :  { %4557 = vst.msk [vmem:[%s6784_s6 + $0x28] sm:$0xff] %vm4551_vm14, %v5004_v31 }
0x1edc   :  { %v4483_v2 = vld [vmem:[#allocation5 + $0x30] sm:$0x1] }
0x1edd   :  { %4881 = vmatmul.msk.f32.gmra.mxu0 %vm1870_vm0, %v4483_v2 }
0x1f5a   :  { %v4541_v10 = vpop.f32.mrf.mxu0 }
0x1f5b   :  { %v4542_v8 = vadd.f32 %v4894_v46, %v4541_v10 }
0x1f5d   :  { %5005 = vtanh.f32 %v4542_v8 }
0x1f63   :  { %v5006_v34 = vpop.eup %5005 }
0x1f64   :  { %4559 = vst.msk [vmem:[%s6784_s6 + $0x30] sm:$0x1] %vm4558_vm15, %v5006_v34 }

</bundles_post_ra>
